<compile_context>
chip_gen: v7x
topology: tpu7x:2x2x1
jax: 0.10.0
libtpu: 0.0.40
codegen_flags: <defaults>
</compile_context>

<pallas_src>
import functools

import jax
import jax.numpy as jnp
import numpy as np
from jax import lax
from jax.experimental import pallas as pl
from jax.experimental.pallas import tpu as pltpu

LN_EPS = 1e-5
_LANE = 128
_SUBLANE = 8
_UNROLL = 8          # static inner unroll of the stage-2 time loop


# --------------------------------------------------------------------------- helpers
def _round_up(n, m):
    return ((n + m - 1) // m) * m


def _one_pass_ln(v, gamma, beta, inv_n):
    """LayerNorm with var = E[x^2] - mean^2 (two independent reductions).

    `inv_n` is 1/valid_count.  Padded lanes of `v` are exactly zero (zero weight
    columns + zero bias), so sums over the padded width equal sums over the valid
    lanes; gamma/beta are zero on padded lanes so the LN output stays zero there.
    """
    s = jnp.sum(v, axis=-1, keepdims=True)
    ss = jnp.sum(v * v, axis=-1, keepdims=True)
    mu = s * inv_n
    var = ss * inv_n - mu * mu
    return (v - mu) * lax.rsqrt(var + LN_EPS) * gamma + beta


def _vmem_capacity_bytes():
    try:
        return int(pltpu.get_tpu_info().vmem_capacity_bytes)
    except Exception:
        return 64 * 1024 * 1024          # v7x-safe fallback


def _pick_row_block(M, D, K, itemsize, budget_bytes):
    """Largest power-of-two row tile whose double-buffered blocks fit the budget."""
    tm = 1024
    while tm > _SUBLANE and (2 * tm * (D + K) + D * K) * itemsize > budget_bytes:
        tm //= 2
    return max(_SUBLANE, min(tm, _round_up(M, _SUBLANE)))


def _pick_time_block(T, max_tb=32):
    """Pad T to a multiple of 8 and pick the largest TB in {8,16,24,32} dividing it."""
    t_pad = _round_up(T, _UNROLL)
    tb = _UNROLL
    cand = _UNROLL
    while cand <= max_tb:
        if t_pad % cand == 0:
            tb = cand
        cand += _UNROLL
    return t_pad, tb


def _pad_last(a, new):
    if a.shape[-1] == new:
        return a
    pad = [(0, 0)] * (a.ndim - 1) + [(0, new - a.shape[-1])]
    return jnp.pad(a, pad)


def _split_pad(a, n_sections, Hd, Hp):
    """Split last axis into n_sections of width Hd, zero-pad each section to Hp."""
    if n_sections == 1:
        return _pad_last(a, Hp)
    parts = [_pad_last(a[..., i * Hd:(i + 1) * Hd], Hp) for i in range(n_sections)]
    return jnp.concatenate(parts, axis=-1)


def _fuse_params(params, Hd, Hp, mxu_dtype):
    """Fuse + lane-pad parameters into the [r|z|n] layout with Hp-wide sections."""
    wx = jnp.concatenate([_split_pad(params["wxrz"], 2, Hd, Hp),
                          _split_pad(params["wxn"], 1, Hd, Hp)], axis=-1)     # (D, 3Hp)
    bx = jnp.concatenate([_split_pad(params["bxrz"], 2, Hd, Hp),
                          _split_pad(params["bxn"], 1, Hd, Hp)], axis=-1)     # (1, 3Hp)
    wh = jnp.concatenate([_split_pad(params["whrz"], 2, Hd, Hp),
                          _split_pad(params["whn"], 1, Hd, Hp)], axis=-1)     # (Hd, 3Hp)
    wh = jnp.pad(wh, ((0, Hp - Hd), (0, 0)))                                  # (Hp, 3Hp)
    bh = jnp.concatenate([_split_pad(params["bhrz"], 2, Hd, Hp),
                          _split_pad(params["bhn"], 1, Hd, Hp)], axis=-1)     # (1, 3Hp)
    ln = {}
    for k in ("gx1", "bx1", "gh1", "bh1"):
        ln[k] = _split_pad(params[k], 2, Hd, Hp)                              # (1, 2Hp)
    for k in ("gx2", "bx2", "gh2", "bh2"):
        ln[k] = _split_pad(params[k], 1, Hd, Hp)                              # (1, Hp)
    return wx.astype(mxu_dtype), bx, wh.astype(mxu_dtype), bh, ln


# --------------------------------------------------------------------------- stage 1
def _xproj_kernel(x_ref, wx_ref, bx_ref, gx1_ref, bx1_ref, gx2_ref, bx2_ref,
                  out_ref, *, Hd, Hp):
    """Rows-parallel fused input projection: out = [LNx1(x@Wx[r|z]+b) | LNx2(x@Wxn+b)]."""
    H2p = 2 * Hp
    proj = jnp.dot(x_ref[...], wx_ref[...],
                   preferred_element_type=jnp.float32) + bx_ref[...]
    rz = _one_pass_ln(proj[:, :H2p], gx1_ref[...], bx1_ref[...], 1.0 / (2 * Hd))
    nn = _one_pass_ln(proj[:, H2p:], gx2_ref[...], bx2_ref[...], 1.0 / Hd)
    out_ref[:, :H2p] = rz.astype(out_ref.dtype)     # 128-lane aligned partial stores
    out_ref[:, H2p:] = nn.astype(out_ref.dtype)


# --------------------------------------------------------------------------- stage 2
def _recurrent_kernel(x_ref, wh_ref, bh_ref, gh1_ref, bh1_ref, gh2_ref, bh2_ref,
                      out_ref, h_ref, *, Hd, Hp, TB):
    """TB time steps per grid step over a time-major (TB, Rb, 3Hp) block.

    Grid is (Dgrid, G): the leading "parallel" axis carries the direction split
    (Dgrid=2 -> one direction per TensorCore on v7x, Dgrid=1 -> directions fused
    into the row dimension, best on single-TC v5e/v6e)."""

    @pl.when(pl.program_id(1) == 0)
    def _():
        h_ref[...] = jnp.zeros_like(h_ref)

    H2p = 2 * Hp
    Rb = h_ref.shape[0]
    inv_h2 = 1.0 / (2 * Hd)
    inv_h1 = 1.0 / Hd

    # Weights stay resident (constant index_map); hoist the (1, k) broadcasts out of the
    # time loop (JAX does not CSE broadcast_in_dim).
    wh = wh_ref[...]                                            # (Hp, 3Hp) fused [Whr|Whz|Whn]
    bh = jnp.broadcast_to(bh_ref[...], (Rb, 3 * Hp))
    gh1 = jnp.broadcast_to(gh1_ref[...], (Rb, H2p))
    bh1 = jnp.broadcast_to(bh1_ref[...], (Rb, H2p))
    gh2 = jnp.broadcast_to(gh2_ref[...], (Rb, Hp))
    bh2 = jnp.broadcast_to(bh2_ref[...], (Rb, Hp))

    def step(t, h):
        xx = x_ref[t].astype(jnp.float32)                       # (Rb, 3Hp) precomputed x-side
        hp = jnp.dot(h.astype(wh.dtype), wh,
                     preferred_element_type=jnp.float32) + bh   # ONE MXU matmul per step
        hrz = _one_pass_ln(hp[:, :H2p], gh1, bh1, inv_h2)       # LNh1 (lane-aligned slice)
        hn = _one_pass_ln(hp[:, H2p:], gh2, bh2, inv_h1)        # LNh2
        gates = jax.nn.sigmoid(xx[:, :H2p] + hrz)
        rt = gates[:, :Hp]
        zt = gates[:, Hp:]
        nt = jnp.tanh(xx[:, H2p:] + rt * hn)
        h = nt + zt * (h - nt)                                  # == (1-z)*n + z*h
        out_ref[t] = h                                          # lane-dense (Rb, Hp) store
        return h

    def unrolled(j, h):
        base = j * _UNROLL
        for u in range(_UNROLL):                                # bounded static unroll
            h = step(base + u, h)
        return h

    h_ref[...] = lax.fori_loop(0, TB // _UNROLL, unrolled, h_ref[...])


# --------------------------------------------------------------------------- wrapper
@functools.partial(jax.jit,
                   static_argnames=("bidirectional", "use_bf16_mxu", "split_directions"))
def gru_forward(x, params, bidirectional=True, use_bf16_mxu=False,
                split_directions=False):
    """Pallas equivalent of GRU.forward. x: (B, T, D). Returns (output, None)."""
    x = x.astype(jnp.float32)
    B, T, D = x.shape
    Hd = params["whn"].shape[0]                   # per-direction hidden size
    Hp = _round_up(Hd, _LANE)                     # lane-padded gate section width
    K = 3 * Hp
    mxu_dtype = jnp.bfloat16 if use_bf16_mxu else jnp.float32
    itemsize = jnp.dtype(mxu_dtype).itemsize

    wx, bx, wh, bh, ln = _fuse_params(params, Hd, Hp, mxu_dtype)

    vmem_cap = _vmem_capacity_bytes()             # 64 MiB on v7x, 128 MiB on v5e/v6e
    vmem_limit = int(max(32 << 20, min(vmem_cap - (16 << 20), 96 << 20)))

    # -------- stage 1: time-parallel fused input projection + x-side layer norms ------
    M = B * T
    TM = _pick_row_block(M, D, K, itemsize, budget_bytes=vmem_limit // 2)
    M_pad = _round_up(M, TM)
    x2d = x.reshape(M, D)
    if M_pad != M:
        x2d = jnp.pad(x2d, ((0, M_pad - M), (0, 0)))
    x2d = x2d.astype(mxu_dtype)

    xproj = pl.pallas_call(
        functools.partial(_xproj_kernel, Hd=Hd, Hp=Hp),
        out_shape=jax.ShapeDtypeStruct((M_pad, K), mxu_dtype),
        grid_spec=pltpu.PrefetchScalarGridSpec(
            num_scalar_prefetch=0,
            grid=(M_pad // TM,),
            in_specs=[
                pl.BlockSpec((TM, D), lambda m: (m, 0)),
                pl.BlockSpec((D, K), lambda m: (0, 0)),
                pl.BlockSpec((1, K), lambda m: (0, 0)),
                pl.BlockSpec((1, 2 * Hp), lambda m: (0, 0)),
                pl.BlockSpec((1, 2 * Hp), lambda m: (0, 0)),
                pl.BlockSpec((1, Hp), lambda m: (0, 0)),
                pl.BlockSpec((1, Hp), lambda m: (0, 0)),
            ],
            out_specs=pl.BlockSpec((TM, K), lambda m: (m, 0)),
        ),
        compiler_params=pltpu.CompilerParams(
            dimension_semantics=("parallel",),
            vmem_limit_bytes=vmem_limit),
    )(x2d, wx, bx, ln["gx1"], ln["bx1"], ln["gx2"], ln["bx2"])

    # -------- build the stacked, time-major stage-2 input (one parallel XLA pass) -----
    xproj = xproj[:M].reshape(B, T, K)
    xf = jnp.transpose(xproj, (1, 0, 2))                      # (T, B, K) time-major
    row_mult = 16 if use_bf16_mxu else _SUBLANE               # sublane-tile-friendly rows
    B_pad = _round_up(B, row_mult)
    if B_pad != B:
        xf = jnp.pad(xf, ((0, 0), (0, B_pad - B), (0, 0)))
    num_dirs = 2 if bidirectional else 1
    if bidirectional:
        x_tm = jnp.concatenate([xf, xf[::-1]], axis=1)        # fwd rows | time-reversed bwd rows
    else:
        x_tm = xf
    T_pad, TB = _pick_time_block(T)
    if T_pad != T:
        x_tm = jnp.pad(x_tm, ((0, T_pad - T), (0, 0), (0, 0)))
    G = T_pad // TB
    R_all = num_dirs * B_pad
    Dgrid = 2 if (split_directions and bidirectional) else 1  # 2 -> one dir per TC (v7x)
    Rb = R_all // Dgrid

    # -------- stage 2: sequential recurrence -------------------------------------------
    out_tm = pl.pallas_call(
        functools.partial(_recurrent_kernel, Hd=Hd, Hp=Hp, TB=TB),
        out_shape=jax.ShapeDtypeStruct((T_pad, R_all, Hp), jnp.float32),
        grid_spec=pltpu.PrefetchScalarGridSpec(
            num_scalar_prefetch=0,
            grid=(Dgrid, G),
            in_specs=[
                pl.BlockSpec((TB, Rb, K), lambda d, g: (g, d, 0)),
                pl.BlockSpec((Hp, K), lambda d, g: (0, 0)),      # resident weights
                pl.BlockSpec((1, K), lambda d, g: (0, 0)),
                pl.BlockSpec((1, 2 * Hp), lambda d, g: (0, 0)),
                pl.BlockSpec((1, 2 * Hp), lambda d, g: (0, 0)),
                pl.BlockSpec((1, Hp), lambda d, g: (0, 0)),
                pl.BlockSpec((1, Hp), lambda d, g: (0, 0)),
            ],
            out_specs=pl.BlockSpec((TB, Rb, Hp), lambda d, g: (g, d, 0)),
            scratch_shapes=[pltpu.VMEM((Rb, Hp), jnp.float32)],
        ),
        compiler_params=pltpu.CompilerParams(
            dimension_semantics=("parallel", "arbitrary"),
            vmem_limit_bytes=vmem_limit),
    )(x_tm, wh, bh, ln["gh1"], ln["bh1"], ln["gh2"], ln["bh2"])

    # -------- unpad / reassemble (cheap parallel XLA copies) ---------------------------
    out_f = jnp.transpose(out_tm[:T, :B, :Hd], (1, 0, 2))
    if bidirectional:
        out_b = jnp.transpose(out_tm[:T, B_pad:B_pad + B, :Hd][::-1], (1, 0, 2))
        return jnp.concatenate([out_f, out_b], axis=-1), None
    return out_f, None


# --------------------------------------------------------------------------- params
def init_params(key, input_size, hidden_size_per_dir):
    """Deterministic parameter init mirroring nn.Linear / nn.LayerNorm defaults."""
    D, H = input_size, hidden_size_per_dir
    ks = jax.random.split(key, 4)

    def linear(k, fan_in, fan_out):
        kw, kb = jax.random.split(k)
        bound = 1.0 / np.sqrt(fan_in)
        # stored pre-transposed as (in, out) so kernels compute x @ W
        w = jax.random.uniform(kw, (fan_in, fan_out), jnp.float32, -bound, bound)
        b = jax.random.uniform(kb, (1, fan_out), jnp.float32, -bound, bound)
        return w, b

    wxrz, bxrz = linear(ks[0], D, 2 * H)
    whrz, bhrz = linear(ks[1], H, 2 * H)
    wxn, bxn = linear(ks[2], D, H)
    whn, bhn = linear(ks[3], H, H)
    return dict(
        wxrz=wxrz, bxrz=bxrz, whrz=whrz, bhrz=bhrz,
        wxn=wxn, bxn=bxn, whn=whn, bhn=bhn,
        gx1=jnp.ones((1, 2 * H), jnp.float32), bx1=jnp.zeros((1, 2 * H), jnp.float32),
        gh1=jnp.ones((1, 2 * H), jnp.float32), bh1=jnp.zeros((1, 2 * H), jnp.float32),
        gx2=jnp.ones((1, H), jnp.float32), bx2=jnp.zeros((1, H), jnp.float32),
        gh2=jnp.ones((1, H), jnp.float32), bh2=jnp.zeros((1, H), jnp.float32),
    )


# --------------------------------------------------------------------------- reference
def _layer_norm_ref(v, gamma, beta):
    mu = jnp.mean(v, axis=-1, keepdims=True)
    var = jnp.mean((v - mu) ** 2, axis=-1, keepdims=True)
    return (v - mu) * lax.rsqrt(var + LN_EPS) * gamma + beta


def gru_reference(x, params, bidirectional=True):
    """Pure-JAX reference (lax.scan) reproducing the PyTorch forward semantics."""
    B, T, D = x.shape
    H = params["whn"].shape[0]

    def step(h, xt):
        ax = xt @ params["wxrz"] + params["bxrz"]
        ah = h @ params["whrz"] + params["bhrz"]
        gates = jax.nn.sigmoid(_layer_norm_ref(ax, params["gx1"], params["bx1"])
                               + _layer_norm_ref(ah, params["gh1"], params["bh1"]))
        rt, zt = gates[:, :H], gates[:, H:]
        nx = _layer_norm_ref(xt @ params["wxn"] + params["bxn"],
                             params["gx2"], params["bx2"])
        nh = _layer_norm_ref(h @ params["whn"] + params["bhn"],
                             params["gh2"], params["bh2"])
        nt = jnp.tanh(nx + rt * nh)
        ht = (1.0 - zt) * nt + zt * h
        return ht, ht

    x_t = jnp.transpose(x, (1, 0, 2))
    h0 = jnp.zeros((B, H), jnp.float32)
    _, out_f = jax.lax.scan(step, h0, x_t)
    out_f = jnp.transpose(out_f, (1, 0, 2))
    if not bidirectional:
        return out_f
    _, out_b_rev = jax.lax.scan(step, h0, x_t[::-1])
    out_b = jnp.transpose(out_b_rev[::-1], (1, 0, 2))
    return jnp.concatenate([out_f, out_b], axis=-1)


if __name__ == "__main__":
    # Small shapes consistent with the module: (batch, seq, input_size), hidden_size even.
    B, T, D = 2, 8, 16
    hidden_size = 32            # bidirectional -> 16 per direction
    H = hidden_size // 2

    key = jax.random.PRNGKey(0)
    k_x, k_p = jax.random.split(key)
    x = jax.random.normal(k_x, (B, T, D), jnp.float32)
    params = init_params(k_p, D, H)

    ref_bi = np.asarray(gru_reference(x, params, bidirectional=True))
    ref_uni = np.asarray(gru_reference(x, params, bidirectional=False))

    # f32, directions fused into one 2B-row batch (best on single-TC v5e/v6e).
    out, _ = gru_forward(x, params, bidirectional=True)
    out = np.asarray(jax.block_until_ready(out))
    assert out.shape == (B, T, hidden_size), out.shape
    np.testing.assert_allclose(out, ref_bi, rtol=1e-4, atol=1e-4)

    # f32, directions split onto the leading "parallel" grid axis (use on v7x: 2 TCs).
    out_s, _ = gru_forward(x, params, bidirectional=True, split_directions=True)
    out_s = np.asarray(jax.block_until_ready(out_s))
    np.testing.assert_allclose(out_s, ref_bi, rtol=1e-4, atol=1e-4)

    # Unidirectional path.
    out_u, _ = gru_forward(x, params, bidirectional=False)
    out_u = np.asarray(jax.block_until_ready(out_u))
    np.testing.assert_allclose(out_u, ref_uni, rtol=1e-4, atol=1e-4)

    # bf16 MXU operands + bf16 xproj intermediate (looser tolerance, v6e/v7x speed path).
    out_bf, _ = gru_forward(x, params, bidirectional=True, use_bf16_mxu=True)
    out_bf = np.asarray(jax.block_until_ready(out_bf))
    np.testing.assert_allclose(out_bf, ref_bi, rtol=5e-2, atol=8e-2)

    print("KERNEL_OK")
</pallas_src>

<mosaic_0001>
module attributes {stable_mosaic.version = 11 : i64} {
  func.func @_xproj_kernel(%arg0: i32, %arg1: memref<16x16xf32, #tpu.memory_space<vmem>>, %arg2: memref<16x384xf32, #tpu.memory_space<vmem>>, %arg3: memref<1x384xf32, #tpu.memory_space<vmem>>, %arg4: memref<1x256xf32, #tpu.memory_space<vmem>>, %arg5: memref<1x256xf32, #tpu.memory_space<vmem>>, %arg6: memref<1x128xf32, #tpu.memory_space<vmem>>, %arg7: memref<1x128xf32, #tpu.memory_space<vmem>>, %arg8: memref<16x384xf32, #tpu.memory_space<vmem>>) attributes {dimension_semantics = [#tpu.dimension_semantics<parallel>], iteration_bounds = array<i64: 1>, scalar_prefetch = 0 : i64, scratch_operands = 0 : i64, tpu.core_type = #tpu.core_type<tc>, window_params = [{transform_indices = @transform_0, window_bounds = array<i64: 16, 16>}, {pipeline_mode = #tpu.pipeline_mode<synchronous>, transform_indices = @transform_1, window_bounds = array<i64: 16, 384>}, {pipeline_mode = #tpu.pipeline_mode<synchronous>, transform_indices = @transform_2, window_bounds = array<i64: 1, 384>}, {pipeline_mode = #tpu.pipeline_mode<synchronous>, transform_indices = @transform_3, window_bounds = array<i64: 1, 256>}, {pipeline_mode = #tpu.pipeline_mode<synchronous>, transform_indices = @transform_4, window_bounds = array<i64: 1, 256>}, {pipeline_mode = #tpu.pipeline_mode<synchronous>, transform_indices = @transform_5, window_bounds = array<i64: 1, 128>}, {pipeline_mode = #tpu.pipeline_mode<synchronous>, transform_indices = @transform_6, window_bounds = array<i64: 1, 128>}, {transform_indices = @transform_7, window_bounds = array<i64: 16, 384>}]} {
    %c0 = arith.constant 0 : index
    %c0_0 = arith.constant 0 : index
    %0 = vector.load %arg1[%c0, %c0_0] : memref<16x16xf32, #tpu.memory_space<vmem>>, vector<16x16xf32>
    %c0_1 = arith.constant 0 : index
    %c0_2 = arith.constant 0 : index
    %1 = vector.load %arg2[%c0_1, %c0_2] : memref<16x384xf32, #tpu.memory_space<vmem>>, vector<16x384xf32>
    %cst = arith.constant dense<0.000000e+00> : vector<16x384xf32>
    %2 = tpu.matmul %0, %1, %cst {dimension_numbers = #tpu.dot_dimension_numbers<[1], [0], [0], [1], [0, 0, 1, 1], [], []>} : vector<16x16xf32>, vector<16x384xf32>, vector<16x384xf32> -> vector<16x384xf32>
    %c0_3 = arith.constant 0 : index
    %c0_4 = arith.constant 0 : index
    %3 = vector.load %arg3[%c0_3, %c0_4] : memref<1x384xf32, #tpu.memory_space<vmem>>, vector<1x384xf32>
    %4 = vector.broadcast %3 : vector<1x384xf32> to vector<16x384xf32>
    %5 = arith.addf %2, %4 : vector<16x384xf32>
    %6 = vector.extract_strided_slice %5 {offsets = [0, 0], sizes = [16, 256], strides = [1, 1]} : vector<16x384xf32> to vector<16x256xf32>
    %c0_5 = arith.constant 0 : index
    %c0_6 = arith.constant 0 : index
    %7 = vector.load %arg4[%c0_5, %c0_6] : memref<1x256xf32, #tpu.memory_space<vmem>>, vector<1x256xf32>
    %c0_7 = arith.constant 0 : index
    %c0_8 = arith.constant 0 : index
    %8 = vector.load %arg5[%c0_7, %c0_8] : memref<1x256xf32, #tpu.memory_space<vmem>>, vector<1x256xf32>
    %cst_9 = arith.constant dense<0.000000e+00> : vector<16xf32>
    %9 = vector.multi_reduction <add>, %6, %cst_9 [1] : vector<16x256xf32> to vector<16xf32>
    %10 = vector.shape_cast %9 : vector<16xf32> to vector<16x1xf32>
    %11 = arith.mulf %6, %6 : vector<16x256xf32>
    %cst_10 = arith.constant dense<0.000000e+00> : vector<16xf32>
    %12 = vector.multi_reduction <add>, %11, %cst_10 [1] : vector<16x256xf32> to vector<16xf32>
    %13 = vector.shape_cast %12 : vector<16xf32> to vector<16x1xf32>
    %cst_11 = arith.constant 3.125000e-02 : f32
    %14 = vector.broadcast %cst_11 : f32 to vector<16x1xf32>
    %15 = arith.mulf %10, %14 : vector<16x1xf32>
    %cst_12 = arith.constant 3.125000e-02 : f32
    %16 = vector.broadcast %cst_12 : f32 to vector<16x1xf32>
    %17 = arith.mulf %13, %16 : vector<16x1xf32>
    %18 = arith.mulf %15, %15 : vector<16x1xf32>
    %19 = arith.subf %17, %18 : vector<16x1xf32>
    %20 = vector.broadcast %15 : vector<16x1xf32> to vector<16x256xf32>
    %21 = arith.subf %6, %20 : vector<16x256xf32>
    %cst_13 = arith.constant 9.99999974E-6 : f32
    %22 = vector.broadcast %cst_13 : f32 to vector<16x1xf32>
    %23 = arith.addf %19, %22 : vector<16x1xf32>
    %24 = math.rsqrt %23 : vector<16x1xf32>
    %25 = vector.broadcast %24 : vector<16x1xf32> to vector<16x256xf32>
    %26 = arith.mulf %21, %25 : vector<16x256xf32>
    %27 = vector.broadcast %7 : vector<1x256xf32> to vector<16x256xf32>
    %28 = arith.mulf %26, %27 : vector<16x256xf32>
    %29 = vector.broadcast %8 : vector<1x256xf32> to vector<16x256xf32>
    %30 = arith.addf %28, %29 : vector<16x256xf32>
    %31 = vector.extract_strided_slice %5 {offsets = [0, 256], sizes = [16, 128], strides = [1, 1]} : vector<16x384xf32> to vector<16x128xf32>
    %c0_14 = arith.constant 0 : index
    %c0_15 = arith.constant 0 : index
    %32 = vector.load %arg6[%c0_14, %c0_15] : memref<1x128xf32, #tpu.memory_space<vmem>>, vector<1x128xf32>
    %c0_16 = arith.constant 0 : index
    %c0_17 = arith.constant 0 : index
    %33 = vector.load %arg7[%c0_16, %c0_17] : memref<1x128xf32, #tpu.memory_space<vmem>>, vector<1x128xf32>
    %cst_18 = arith.constant dense<0.000000e+00> : vector<16xf32>
    %34 = vector.multi_reduction <add>, %31, %cst_18 [1] : vector<16x128xf32> to vector<16xf32>
    %35 = vector.shape_cast %34 : vector<16xf32> to vector<16x1xf32>
    %36 = arith.mulf %31, %31 : vector<16x128xf32>
    %cst_19 = arith.constant dense<0.000000e+00> : vector<16xf32>
    %37 = vector.multi_reduction <add>, %36, %cst_19 [1] : vector<16x128xf32> to vector<16xf32>
    %38 = vector.shape_cast %37 : vector<16xf32> to vector<16x1xf32>
    %cst_20 = arith.constant 6.250000e-02 : f32
    %39 = vector.broadcast %cst_20 : f32 to vector<16x1xf32>
    %40 = arith.mulf %35, %39 : vector<16x1xf32>
    %cst_21 = arith.constant 6.250000e-02 : f32
    %41 = vector.broadcast %cst_21 : f32 to vector<16x1xf32>
    %42 = arith.mulf %38, %41 : vector<16x1xf32>
    %43 = arith.mulf %40, %40 : vector<16x1xf32>
    %44 = arith.subf %42, %43 : vector<16x1xf32>
    %45 = vector.broadcast %40 : vector<16x1xf32> to vector<16x128xf32>
    %46 = arith.subf %31, %45 : vector<16x128xf32>
    %cst_22 = arith.constant 9.99999974E-6 : f32
    %47 = vector.broadcast %cst_22 : f32 to vector<16x1xf32>
    %48 = arith.addf %44, %47 : vector<16x1xf32>
    %49 = math.rsqrt %48 : vector<16x1xf32>
    %50 = vector.broadcast %49 : vector<16x1xf32> to vector<16x128xf32>
    %51 = arith.mulf %46, %50 : vector<16x128xf32>
    %52 = vector.broadcast %32 : vector<1x128xf32> to vector<16x128xf32>
    %53 = arith.mulf %51, %52 : vector<16x128xf32>
    %54 = vector.broadcast %33 : vector<1x128xf32> to vector<16x128xf32>
    %55 = arith.addf %53, %54 : vector<16x128xf32>
    %c0_23 = arith.constant 0 : index
    %c0_24 = arith.constant 0 : index
    %56 = vector.load %arg8[%c0_23, %c0_24] : memref<16x384xf32, #tpu.memory_space<vmem>>, vector<16x256xf32>
    tpu.vector_store %arg8[%c0_23, %c0_24], %30 {strides = array<i32>} : memref<16x384xf32, #tpu.memory_space<vmem>>, vector<16x256xf32>,
    %c0_25 = arith.constant 0 : index
    %c256 = arith.constant 256 : index
    %57 = vector.load %arg8[%c0_25, %c256] : memref<16x384xf32, #tpu.memory_space<vmem>>, vector<16x128xf32>
    tpu.vector_store %arg8[%c0_25, %c256], %55 {strides = array<i32>} : memref<16x384xf32, #tpu.memory_space<vmem>>, vector<16x128xf32>,
    return
  }
  func.func @transform_0(%arg0: i32) -> (i32, i32) {
    %c0_i32 = arith.constant 0 : i32
    %c0_i32_0 = arith.constant 0 : i32
    return %arg0, %c0_i32 : i32, i32
  }
  func.func @transform_1(%arg0: i32) -> (i32, i32) {
    %c0_i32 = arith.constant 0 : i32
    %c0_i32_0 = arith.constant 0 : i32
    %c0_i32_1 = arith.constant 0 : i32
    return %c0_i32, %c0_i32_0 : i32, i32
  }
  func.func @transform_2(%arg0: i32) -> (i32, i32) {
    %c0_i32 = arith.constant 0 : i32
    %c0_i32_0 = arith.constant 0 : i32
    %c0_i32_1 = arith.constant 0 : i32
    return %c0_i32, %c0_i32_0 : i32, i32
  }
  func.func @transform_3(%arg0: i32) -> (i32, i32) {
    %c0_i32 = arith.constant 0 : i32
    %c0_i32_0 = arith.constant 0 : i32
    %c0_i32_1 = arith.constant 0 : i32
    return %c0_i32, %c0_i32_0 : i32, i32
  }
  func.func @transform_4(%arg0: i32) -> (i32, i32) {
    %c0_i32 = arith.constant 0 : i32
    %c0_i32_0 = arith.constant 0 : i32
    %c0_i32_1 = arith.constant 0 : i32
    return %c0_i32, %c0_i32_0 : i32, i32
  }
  func.func @transform_5(%arg0: i32) -> (i32, i32) {
    %c0_i32 = arith.constant 0 : i32
    %c0_i32_0 = arith.constant 0 : i32
    %c0_i32_1 = arith.constant 0 : i32
    return %c0_i32, %c0_i32_0 : i32, i32
  }
  func.func @transform_6(%arg0: i32) -> (i32, i32) {
    %c0_i32 = arith.constant 0 : i32
    %c0_i32_0 = arith.constant 0 : i32
    %c0_i32_1 = arith.constant 0 : i32
    return %c0_i32, %c0_i32_0 : i32, i32
  }
  func.func @transform_7(%arg0: i32) -> (i32, i32) {
    %c0_i32 = arith.constant 0 : i32
    %c0_i32_0 = arith.constant 0 : i32
    return %arg0, %c0_i32 : i32, i32
  }
}

module attributes {stable_mosaic.version = 11 : i64} {
  func.func @_recurrent_kernel(%arg0: i32, %arg1: i32, %arg2: memref<8x16x384xf32, #tpu.memory_space<vmem>>, %arg3: memref<128x384xf32, #tpu.memory_space<vmem>>, %arg4: memref<1x384xf32, #tpu.memory_space<vmem>>, %arg5: memref<1x256xf32, #tpu.memory_space<vmem>>, %arg6: memref<1x256xf32, #tpu.memory_space<vmem>>, %arg7: memref<1x128xf32, #tpu.memory_space<vmem>>, %arg8: memref<1x128xf32, #tpu.memory_space<vmem>>, %arg9: memref<8x16x128xf32, #tpu.memory_space<vmem>>, %arg10: memref<16x128xf32, #tpu.memory_space<vmem>>) attributes {dimension_semantics = [#tpu.dimension_semantics<parallel>, #tpu.dimension_semantics<arbitrary>], iteration_bounds = array<i64: 1, 1>, scalar_prefetch = 0 : i64, scratch_operands = 1 : i64, tpu.core_type = #tpu.core_type<tc>, window_params = [{transform_indices = @transform_0, window_bounds = array<i64: 8, 16, 384>}, {pipeline_mode = #tpu.pipeline_mode<synchronous>, transform_indices = @transform_1, window_bounds = array<i64: 128, 384>}, {pipeline_mode = #tpu.pipeline_mode<synchronous>, transform_indices = @transform_2, window_bounds = array<i64: 1, 384>}, {pipeline_mode = #tpu.pipeline_mode<synchronous>, transform_indices = @transform_3, window_bounds = array<i64: 1, 256>}, {pipeline_mode = #tpu.pipeline_mode<synchronous>, transform_indices = @transform_4, window_bounds = array<i64: 1, 256>}, {pipeline_mode = #tpu.pipeline_mode<synchronous>, transform_indices = @transform_5, window_bounds = array<i64: 1, 128>}, {pipeline_mode = #tpu.pipeline_mode<synchronous>, transform_indices = @transform_6, window_bounds = array<i64: 1, 128>}, {transform_indices = @transform_7, window_bounds = array<i64: 8, 16, 128>}]} {
    %c0_i32 = arith.constant 0 : i32
    %0 = arith.cmpi eq, %arg1, %c0_i32 : i32
    %1 = arith.extui %0 : i1 to i32
    %c0_i32_0 = arith.constant 0 : i32
    %2 = arith.cmpi ne, %1, %c0_i32_0 : i32
    scf.if %2 {
      %cst_146 = arith.constant 0.000000e+00 : f32
      %566 = vector.broadcast %cst_146 : f32 to vector<16x128xf32>
      %c0_147 = arith.constant 0 : index
      %c0_148 = arith.constant 0 : index
      %567 = vector.load %arg10[%c0_147, %c0_148] : memref<16x128xf32, #tpu.memory_space<vmem>>, vector<16x128xf32>
      tpu.vector_store %arg10[%c0_147, %c0_148], %566 {strides = array<i32>} : memref<16x128xf32, #tpu.memory_space<vmem>>, vector<16x128xf32>,
    } else {
    }
    %c0 = arith.constant 0 : index
    %c0_1 = arith.constant 0 : index
    %3 = vector.load %arg3[%c0, %c0_1] : memref<128x384xf32, #tpu.memory_space<vmem>>, vector<128x384xf32>
    %c0_2 = arith.constant 0 : index
    %c0_3 = arith.constant 0 : index
    %4 = vector.load %arg4[%c0_2, %c0_3] : memref<1x384xf32, #tpu.memory_space<vmem>>, vector<1x384xf32>
    %5 = vector.shape_cast %4 : vector<1x384xf32> to vector<1x384xf32>
    %6 = vector.broadcast %5 : vector<1x384xf32> to vector<16x384xf32>
    %c0_4 = arith.constant 0 : index
    %c0_5 = arith.constant 0 : index
    %7 = vector.load %arg5[%c0_4, %c0_5] : memref<1x256xf32, #tpu.memory_space<vmem>>, vector<1x256xf32>
    %8 = vector.shape_cast %7 : vector<1x256xf32> to vector<1x256xf32>
    %9 = vector.broadcast %8 : vector<1x256xf32> to vector<16x256xf32>
    %c0_6 = arith.constant 0 : index
    %c0_7 = arith.constant 0 : index
    %10 = vector.load %arg6[%c0_6, %c0_7] : memref<1x256xf32, #tpu.memory_space<vmem>>, vector<1x256xf32>
    %11 = vector.shape_cast %10 : vector<1x256xf32> to vector<1x256xf32>
    %12 = vector.broadcast %11 : vector<1x256xf32> to vector<16x256xf32>
    %c0_8 = arith.constant 0 : index
    %c0_9 = arith.constant 0 : index
    %13 = vector.load %arg7[%c0_8, %c0_9] : memref<1x128xf32, #tpu.memory_space<vmem>>, vector<1x128xf32>
    %14 = vector.shape_cast %13 : vector<1x128xf32> to vector<1x128xf32>
    %15 = vector.broadcast %14 : vector<1x128xf32> to vector<16x128xf32>
    %c0_10 = arith.constant 0 : index
    %c0_11 = arith.constant 0 : index
    %16 = vector.load %arg8[%c0_10, %c0_11] : memref<1x128xf32, #tpu.memory_space<vmem>>, vector<1x128xf32>
    %17 = vector.shape_cast %16 : vector<1x128xf32> to vector<1x128xf32>
    %18 = vector.broadcast %17 : vector<1x128xf32> to vector<16x128xf32>
    %c0_12 = arith.constant 0 : index
    %c0_13 = arith.constant 0 : index
    %19 = vector.load %arg10[%c0_12, %c0_13] : memref<16x128xf32, #tpu.memory_space<vmem>>, vector<16x128xf32>
    %c0_i32_14 = arith.constant 0 : i32
    %c8_i32 = arith.constant 8 : i32
    %20 = arith.muli %c0_i32_14, %c8_i32 : i32
    %c0_i32_15 = arith.constant 0 : i32
    %21 = arith.addi %20, %c0_i32_15 : i32
    %22 = arith.index_cast %21 : i32 to index
    %c0_16 = arith.constant 0 : index
    %c0_17 = arith.constant 0 : index
    %23 = vector.load %arg2[%22, %c0_16, %c0_17] : memref<8x16x384xf32, #tpu.memory_space<vmem>>, vector<1x16x384xf32>
    %24 = vector.shape_cast %23 : vector<1x16x384xf32> to vector<16x384xf32>
    %cst = arith.constant dense<0.000000e+00> : vector<16x384xf32>
    %25 = tpu.matmul %19, %3, %cst {dimension_numbers = #tpu.dot_dimension_numbers<[1], [0], [0], [1], [0, 0, 1, 1], [], []>} : vector<16x128xf32>, vector<128x384xf32>, vector<16x384xf32> -> vector<16x384xf32>
    %26 = arith.addf %25, %6 : vector<16x384xf32>
    %27 = vector.extract_strided_slice %26 {offsets = [0, 0], sizes = [16, 256], strides = [1, 1]} : vector<16x384xf32> to vector<16x256xf32>
    %cst_18 = arith.constant dense<0.000000e+00> : vector<16xf32>
    %28 = vector.multi_reduction <add>, %27, %cst_18 [1] : vector<16x256xf32> to vector<16xf32>
    %29 = vector.shape_cast %28 : vector<16xf32> to vector<16x1xf32>
    %30 = arith.mulf %27, %27 : vector<16x256xf32>
    %cst_19 = arith.constant dense<0.000000e+00> : vector<16xf32>
    %31 = vector.multi_reduction <add>, %30, %cst_19 [1] : vector<16x256xf32> to vector<16xf32>
    %32 = vector.shape_cast %31 : vector<16xf32> to vector<16x1xf32>
    %cst_20 = arith.constant 3.125000e-02 : f32
    %33 = vector.broadcast %cst_20 : f32 to vector<16x1xf32>
    %34 = arith.mulf %29, %33 : vector<16x1xf32>
    %cst_21 = arith.constant 3.125000e-02 : f32
    %35 = vector.broadcast %cst_21 : f32 to vector<16x1xf32>
    %36 = arith.mulf %32, %35 : vector<16x1xf32>
    %37 = arith.mulf %34, %34 : vector<16x1xf32>
    %38 = arith.subf %36, %37 : vector<16x1xf32>
    %39 = vector.broadcast %34 : vector<16x1xf32> to vector<16x256xf32>
    %40 = arith.subf %27, %39 : vector<16x256xf32>
    %cst_22 = arith.constant 9.99999974E-6 : f32
    %41 = vector.broadcast %cst_22 : f32 to vector<16x1xf32>
    %42 = arith.addf %38, %41 : vector<16x1xf32>
    %43 = math.rsqrt %42 : vector<16x1xf32>
    %44 = vector.broadcast %43 : vector<16x1xf32> to vector<16x256xf32>
    %45 = arith.mulf %40, %44 : vector<16x256xf32>
    %46 = arith.mulf %45, %9 : vector<16x256xf32>
    %47 = arith.addf %46, %12 : vector<16x256xf32>
    %48 = vector.extract_strided_slice %26 {offsets = [0, 256], sizes = [16, 128], strides = [1, 1]} : vector<16x384xf32> to vector<16x128xf32>
    %cst_23 = arith.constant dense<0.000000e+00> : vector<16xf32>
    %49 = vector.multi_reduction <add>, %48, %cst_23 [1] : vector<16x128xf32> to vector<16xf32>
    %50 = vector.shape_cast %49 : vector<16xf32> to vector<16x1xf32>
    %51 = arith.mulf %48, %48 : vector<16x128xf32>
    %cst_24 = arith.constant dense<0.000000e+00> : vector<16xf32>
    %52 = vector.multi_reduction <add>, %51, %cst_24 [1] : vector<16x128xf32> to vector<16xf32>
    %53 = vector.shape_cast %52 : vector<16xf32> to vector<16x1xf32>
    %cst_25 = arith.constant 6.250000e-02 : f32
    %54 = vector.broadcast %cst_25 : f32 to vector<16x1xf32>
    %55 = arith.mulf %50, %54 : vector<16x1xf32>
    %cst_26 = arith.constant 6.250000e-02 : f32
    %56 = vector.broadcast %cst_26 : f32 to vector<16x1xf32>
    %57 = arith.mulf %53, %56 : vector<16x1xf32>
    %58 = arith.mulf %55, %55 : vector<16x1xf32>
    %59 = arith.subf %57, %58 : vector<16x1xf32>
    %60 = vector.broadcast %55 : vector<16x1xf32> to vector<16x128xf32>
    %61 = arith.subf %48, %60 : vector<16x128xf32>
    %cst_27 = arith.constant 9.99999974E-6 : f32
    %62 = vector.broadcast %cst_27 : f32 to vector<16x1xf32>
    %63 = arith.addf %59, %62 : vector<16x1xf32>
    %64 = math.rsqrt %63 : vector<16x1xf32>
    %65 = vector.broadcast %64 : vector<16x1xf32> to vector<16x128xf32>
    %66 = arith.mulf %61, %65 : vector<16x128xf32>
    %67 = arith.mulf %66, %15 : vector<16x128xf32>
    %68 = arith.addf %67, %18 : vector<16x128xf32>
    %69 = vector.extract_strided_slice %24 {offsets = [0, 0], sizes = [16, 256], strides = [1, 1]} : vector<16x384xf32> to vector<16x256xf32>
    %70 = arith.addf %69, %47 : vector<16x256xf32>
    %71 = arith.negf %70 : vector<16x256xf32>
    %72 = math.exp %71 : vector<16x256xf32>
    %cst_28 = arith.constant 1.000000e+00 : f32
    %73 = vector.broadcast %cst_28 : f32 to vector<16x256xf32>
    %74 = arith.addf %73, %72 : vector<16x256xf32>
    %75 = arith.divf %73, %74 : vector<16x256xf32>
    %76 = vector.extract_strided_slice %75 {offsets = [0, 0], sizes = [16, 128], strides = [1, 1]} : vector<16x256xf32> to vector<16x128xf32>
    %77 = vector.extract_strided_slice %75 {offsets = [0, 128], sizes = [16, 128], strides = [1, 1]} : vector<16x256xf32> to vector<16x128xf32>
    %78 = vector.extract_strided_slice %24 {offsets = [0, 256], sizes = [16, 128], strides = [1, 1]} : vector<16x384xf32> to vector<16x128xf32>
    %79 = arith.mulf %76, %68 : vector<16x128xf32>
    %80 = arith.addf %78, %79 : vector<16x128xf32>
    %81 = math.tanh %80 : vector<16x128xf32>
    %82 = arith.subf %19, %81 : vector<16x128xf32>
    %83 = arith.mulf %77, %82 : vector<16x128xf32>
    %84 = arith.addf %81, %83 : vector<16x128xf32>
    %85 = arith.index_cast %21 : i32 to index
    %c0_29 = arith.constant 0 : index
    %c0_30 = arith.constant 0 : index
    %86 = vector.load %arg9[%85, %c0_29, %c0_30] : memref<8x16x128xf32, #tpu.memory_space<vmem>>, vector<1x16x128xf32>
    %87 = vector.shape_cast %86 : vector<1x16x128xf32> to vector<16x128xf32>
    %88 = vector.shape_cast %84 : vector<16x128xf32> to vector<1x16x128xf32>
    tpu.vector_store %arg9[%85, %c0_29, %c0_30], %88 {strides = array<i32>} : memref<8x16x128xf32, #tpu.memory_space<vmem>>, vector<1x16x128xf32>,
    %c1_i32 = arith.constant 1 : i32
    %89 = arith.addi %20, %c1_i32 : i32
    %90 = arith.index_cast %89 : i32 to index
    %c0_31 = arith.constant 0 : index
    %c0_32 = arith.constant 0 : index
    %91 = vector.load %arg2[%90, %c0_31, %c0_32] : memref<8x16x384xf32, #tpu.memory_space<vmem>>, vector<1x16x384xf32>
    %92 = vector.shape_cast %91 : vector<1x16x384xf32> to vector<16x384xf32>
    %cst_33 = arith.constant dense<0.000000e+00> : vector<16x384xf32>
    %93 = tpu.matmul %84, %3, %cst_33 {dimension_numbers = #tpu.dot_dimension_numbers<[1], [0], [0], [1], [0, 0, 1, 1], [], []>} : vector<16x128xf32>, vector<128x384xf32>, vector<16x384xf32> -> vector<16x384xf32>
    %94 = arith.addf %93, %6 : vector<16x384xf32>
    %95 = vector.extract_strided_slice %94 {offsets = [0, 0], sizes = [16, 256], strides = [1, 1]} : vector<16x384xf32> to vector<16x256xf32>
    %cst_34 = arith.constant dense<0.000000e+00> : vector<16xf32>
    %96 = vector.multi_reduction <add>, %95, %cst_34 [1] : vector<16x256xf32> to vector<16xf32>
    %97 = vector.shape_cast %96 : vector<16xf32> to vector<16x1xf32>
    %98 = arith.mulf %95, %95 : vector<16x256xf32>
    %cst_35 = arith.constant dense<0.000000e+00> : vector<16xf32>
    %99 = vector.multi_reduction <add>, %98, %cst_35 [1] : vector<16x256xf32> to vector<16xf32>
    %100 = vector.shape_cast %99 : vector<16xf32> to vector<16x1xf32>
    %cst_36 = arith.constant 3.125000e-02 : f32
    %101 = vector.broadcast %cst_36 : f32 to vector<16x1xf32>
    %102 = arith.mulf %97, %101 : vector<16x1xf32>
    %cst_37 = arith.constant 3.125000e-02 : f32
    %103 = vector.broadcast %cst_37 : f32 to vector<16x1xf32>
    %104 = arith.mulf %100, %103 : vector<16x1xf32>
    %105 = arith.mulf %102, %102 : vector<16x1xf32>
    %106 = arith.subf %104, %105 : vector<16x1xf32>
    %107 = vector.broadcast %102 : vector<16x1xf32> to vector<16x256xf32>
    %108 = arith.subf %95, %107 : vector<16x256xf32>
    %cst_38 = arith.constant 9.99999974E-6 : f32
    %109 = vector.broadcast %cst_38 : f32 to vector<16x1xf32>
    %110 = arith.addf %106, %109 : vector<16x1xf32>
    %111 = math.rsqrt %110 : vector<16x1xf32>
    %112 = vector.broadcast %111 : vector<16x1xf32> to vector<16x256xf32>
    %113 = arith.mulf %108, %112 : vector<16x256xf32>
    %114 = arith.mulf %113, %9 : vector<16x256xf32>
    %115 = arith.addf %114, %12 : vector<16x256xf32>
    %116 = vector.extract_strided_slice %94 {offsets = [0, 256], sizes = [16, 128], strides = [1, 1]} : vector<16x384xf32> to vector<16x128xf32>
    %cst_39 = arith.constant dense<0.000000e+00> : vector<16xf32>
    %117 = vector.multi_reduction <add>, %116, %cst_39 [1] : vector<16x128xf32> to vector<16xf32>
    %118 = vector.shape_cast %117 : vector<16xf32> to vector<16x1xf32>
    %119 = arith.mulf %116, %116 : vector<16x128xf32>
    %cst_40 = arith.constant dense<0.000000e+00> : vector<16xf32>
    %120 = vector.multi_reduction <add>, %119, %cst_40 [1] : vector<16x128xf32> to vector<16xf32>
    %121 = vector.shape_cast %120 : vector<16xf32> to vector<16x1xf32>
    %cst_41 = arith.constant 6.250000e-02 : f32
    %122 = vector.broadcast %cst_41 : f32 to vector<16x1xf32>
    %123 = arith.mulf %118, %122 : vector<16x1xf32>
    %cst_42 = arith.constant 6.250000e-02 : f32
    %124 = vector.broadcast %cst_42 : f32 to vector<16x1xf32>
    %125 = arith.mulf %121, %124 : vector<16x1xf32>
    %126 = arith.mulf %123, %123 : vector<16x1xf32>
    %127 = arith.subf %125, %126 : vector<16x1xf32>
    %128 = vector.broadcast %123 : vector<16x1xf32> to vector<16x128xf32>
    %129 = arith.subf %116, %128 : vector<16x128xf32>
    %cst_43 = arith.constant 9.99999974E-6 : f32
    %130 = vector.broadcast %cst_43 : f32 to vector<16x1xf32>
    %131 = arith.addf %127, %130 : vector<16x1xf32>
    %132 = math.rsqrt %131 : vector<16x1xf32>
    %133 = vector.broadcast %132 : vector<16x1xf32> to vector<16x128xf32>
    %134 = arith.mulf %129, %133 : vector<16x128xf32>
    %135 = arith.mulf %134, %15 : vector<16x128xf32>
    %136 = arith.addf %135, %18 : vector<16x128xf32>
    %137 = vector.extract_strided_slice %92 {offsets = [0, 0], sizes = [16, 256], strides = [1, 1]} : vector<16x384xf32> to vector<16x256xf32>
    %138 = arith.addf %137, %115 : vector<16x256xf32>
    %139 = arith.negf %138 : vector<16x256xf32>
    %140 = math.exp %139 : vector<16x256xf32>
    %cst_44 = arith.constant 1.000000e+00 : f32
    %141 = vector.broadcast %cst_44 : f32 to vector<16x256xf32>
    %142 = arith.addf %141, %140 : vector<16x256xf32>
    %143 = arith.divf %141, %142 : vector<16x256xf32>
    %144 = vector.extract_strided_slice %143 {offsets = [0, 0], sizes = [16, 128], strides = [1, 1]} : vector<16x256xf32> to vector<16x128xf32>
    %145 = vector.extract_strided_slice %143 {offsets = [0, 128], sizes = [16, 128], strides = [1, 1]} : vector<16x256xf32> to vector<16x128xf32>
    %146 = vector.extract_strided_slice %92 {offsets = [0, 256], sizes = [16, 128], strides = [1, 1]} : vector<16x384xf32> to vector<16x128xf32>
    %147 = arith.mulf %144, %136 : vector<16x128xf32>
    %148 = arith.addf %146, %147 : vector<16x128xf32>
    %149 = math.tanh %148 : vector<16x128xf32>
    %150 = arith.subf %84, %149 : vector<16x128xf32>
    %151 = arith.mulf %145, %150 : vector<16x128xf32>
    %152 = arith.addf %149, %151 : vector<16x128xf32>
    %153 = arith.index_cast %89 : i32 to index
    %c0_45 = arith.constant 0 : index
    %c0_46 = arith.constant 0 : index
    %154 = vector.load %arg9[%153, %c0_45, %c0_46] : memref<8x16x128xf32, #tpu.memory_space<vmem>>, vector<1x16x128xf32>
    %155 = vector.shape_cast %154 : vector<1x16x128xf32> to vector<16x128xf32>
    %156 = vector.shape_cast %152 : vector<16x128xf32> to vector<1x16x128xf32>
    tpu.vector_store %arg9[%153, %c0_45, %c0_46], %156 {strides = array<i32>} : memref<8x16x128xf32, #tpu.memory_space<vmem>>, vector<1x16x128xf32>,
    %c2_i32 = arith.constant 2 : i32
    %157 = arith.addi %20, %c2_i32 : i32
    %158 = arith.index_cast %157 : i32 to index
    %c0_47 = arith.constant 0 : index
    %c0_48 = arith.constant 0 : index
    %159 = vector.load %arg2[%158, %c0_47, %c0_48] : memref<8x16x384xf32, #tpu.memory_space<vmem>>, vector<1x16x384xf32>
    %160 = vector.shape_cast %159 : vector<1x16x384xf32> to vector<16x384xf32>
    %cst_49 = arith.constant dense<0.000000e+00> : vector<16x384xf32>
    %161 = tpu.matmul %152, %3, %cst_49 {dimension_numbers = #tpu.dot_dimension_numbers<[1], [0], [0], [1], [0, 0, 1, 1], [], []>} : vector<16x128xf32>, vector<128x384xf32>, vector<16x384xf32> -> vector<16x384xf32>
    %162 = arith.addf %161, %6 : vector<16x384xf32>
    %163 = vector.extract_strided_slice %162 {offsets = [0, 0], sizes = [16, 256], strides = [1, 1]} : vector<16x384xf32> to vector<16x256xf32>
    %cst_50 = arith.constant dense<0.000000e+00> : vector<16xf32>
    %164 = vector.multi_reduction <add>, %163, %cst_50 [1] : vector<16x256xf32> to vector<16xf32>
    %165 = vector.shape_cast %164 : vector<16xf32> to vector<16x1xf32>
    %166 = arith.mulf %163, %163 : vector<16x256xf32>
    %cst_51 = arith.constant dense<0.000000e+00> : vector<16xf32>
    %167 = vector.multi_reduction <add>, %166, %cst_51 [1] : vector<16x256xf32> to vector<16xf32>
    %168 = vector.shape_cast %167 : vector<16xf32> to vector<16x1xf32>
    %cst_52 = arith.constant 3.125000e-02 : f32
    %169 = vector.broadcast %cst_52 : f32 to vector<16x1xf32>
    %170 = arith.mulf %165, %169 : vector<16x1xf32>
    %cst_53 = arith.constant 3.125000e-02 : f32
    %171 = vector.broadcast %cst_53 : f32 to vector<16x1xf32>
    %172 = arith.mulf %168, %171 : vector<16x1xf32>
    %173 = arith.mulf %170, %170 : vector<16x1xf32>
    %174 = arith.subf %172, %173 : vector<16x1xf32>
    %175 = vector.broadcast %170 : vector<16x1xf32> to vector<16x256xf32>
    %176 = arith.subf %163, %175 : vector<16x256xf32>
    %cst_54 = arith.constant 9.99999974E-6 : f32
    %177 = vector.broadcast %cst_54 : f32 to vector<16x1xf32>
    %178 = arith.addf %174, %177 : vector<16x1xf32>
    %179 = math.rsqrt %178 : vector<16x1xf32>
    %180 = vector.broadcast %179 : vector<16x1xf32> to vector<16x256xf32>
    %181 = arith.mulf %176, %180 : vector<16x256xf32>
    %182 = arith.mulf %181, %9 : vector<16x256xf32>
    %183 = arith.addf %182, %12 : vector<16x256xf32>
    %184 = vector.extract_strided_slice %162 {offsets = [0, 256], sizes = [16, 128], strides = [1, 1]} : vector<16x384xf32> to vector<16x128xf32>
    %cst_55 = arith.constant dense<0.000000e+00> : vector<16xf32>
    %185 = vector.multi_reduction <add>, %184, %cst_55 [1] : vector<16x128xf32> to vector<16xf32>
    %186 = vector.shape_cast %185 : vector<16xf32> to vector<16x1xf32>
    %187 = arith.mulf %184, %184 : vector<16x128xf32>
    %cst_56 = arith.constant dense<0.000000e+00> : vector<16xf32>
    %188 = vector.multi_reduction <add>, %187, %cst_56 [1] : vector<16x128xf32> to vector<16xf32>
    %189 = vector.shape_cast %188 : vector<16xf32> to vector<16x1xf32>
    %cst_57 = arith.constant 6.250000e-02 : f32
    %190 = vector.broadcast %cst_57 : f32 to vector<16x1xf32>
    %191 = arith.mulf %186, %190 : vector<16x1xf32>
    %cst_58 = arith.constant 6.250000e-02 : f32
    %192 = vector.broadcast %cst_58 : f32 to vector<16x1xf32>
    %193 = arith.mulf %189, %192 : vector<16x1xf32>
    %194 = arith.mulf %191, %191 : vector<16x1xf32>
    %195 = arith.subf %193, %194 : vector<16x1xf32>
    %196 = vector.broadcast %191 : vector<16x1xf32> to vector<16x128xf32>
    %197 = arith.subf %184, %196 : vector<16x128xf32>
    %cst_59 = arith.constant 9.99999974E-6 : f32
    %198 = vector.broadcast %cst_59 : f32 to vector<16x1xf32>
    %199 = arith.addf %195, %198 : vector<16x1xf32>
    %200 = math.rsqrt %199 : vector<16x1xf32>
    %201 = vector.broadcast %200 : vector<16x1xf32> to vector<16x128xf32>
    %202 = arith.mulf %197, %201 : vector<16x128xf32>
    %203 = arith.mulf %202, %15 : vector<16x128xf32>
    %204 = arith.addf %203, %18 : vector<16x128xf32>
    %205 = vector.extract_strided_slice %160 {offsets = [0, 0], sizes = [16, 256], strides = [1, 1]} : vector<16x384xf32> to vector<16x256xf32>
    %206 = arith.addf %205, %183 : vector<16x256xf32>
    %207 = arith.negf %206 : vector<16x256xf32>
    %208 = math.exp %207 : vector<16x256xf32>
    %cst_60 = arith.constant 1.000000e+00 : f32
    %209 = vector.broadcast %cst_60 : f32 to vector<16x256xf32>
    %210 = arith.addf %209, %208 : vector<16x256xf32>
    %211 = arith.divf %209, %210 : vector<16x256xf32>
    %212 = vector.extract_strided_slice %211 {offsets = [0, 0], sizes = [16, 128], strides = [1, 1]} : vector<16x256xf32> to vector<16x128xf32>
    %213 = vector.extract_strided_slice %211 {offsets = [0, 128], sizes = [16, 128], strides = [1, 1]} : vector<16x256xf32> to vector<16x128xf32>
    %214 = vector.extract_strided_slice %160 {offsets = [0, 256], sizes = [16, 128], strides = [1, 1]} : vector<16x384xf32> to vector<16x128xf32>
    %215 = arith.mulf %212, %204 : vector<16x128xf32>
    %216 = arith.addf %214, %215 : vector<16x128xf32>
    %217 = math.tanh %216 : vector<16x128xf32>
    %218 = arith.subf %152, %217 : vector<16x128xf32>
    %219 = arith.mulf %213, %218 : vector<16x128xf32>
    %220 = arith.addf %217, %219 : vector<16x128xf32>
    %221 = arith.index_cast %157 : i32 to index
    %c0_61 = arith.constant 0 : index
    %c0_62 = arith.constant 0 : index
    %222 = vector.load %arg9[%221, %c0_61, %c0_62] : memref<8x16x128xf32, #tpu.memory_space<vmem>>, vector<1x16x128xf32>
    %223 = vector.shape_cast %222 : vector<1x16x128xf32> to vector<16x128xf32>
    %224 = vector.shape_cast %220 : vector<16x128xf32> to vector<1x16x128xf32>
    tpu.vector_store %arg9[%221, %c0_61, %c0_62], %224 {strides = array<i32>} : memref<8x16x128xf32, #tpu.memory_space<vmem>>, vector<1x16x128xf32>,
    %c3_i32 = arith.constant 3 : i32
    %225 = arith.addi %20, %c3_i32 : i32
    %226 = arith.index_cast %225 : i32 to index
    %c0_63 = arith.constant 0 : index
    %c0_64 = arith.constant 0 : index
    %227 = vector.load %arg2[%226, %c0_63, %c0_64] : memref<8x16x384xf32, #tpu.memory_space<vmem>>, vector<1x16x384xf32>
    %228 = vector.shape_cast %227 : vector<1x16x384xf32> to vector<16x384xf32>
    %cst_65 = arith.constant dense<0.000000e+00> : vector<16x384xf32>
    %229 = tpu.matmul %220, %3, %cst_65 {dimension_numbers = #tpu.dot_dimension_numbers<[1], [0], [0], [1], [0, 0, 1, 1], [], []>} : vector<16x128xf32>, vector<128x384xf32>, vector<16x384xf32> -> vector<16x384xf32>
    %230 = arith.addf %229, %6 : vector<16x384xf32>
    %231 = vector.extract_strided_slice %230 {offsets = [0, 0], sizes = [16, 256], strides = [1, 1]} : vector<16x384xf32> to vector<16x256xf32>
    %cst_66 = arith.constant dense<0.000000e+00> : vector<16xf32>
    %232 = vector.multi_reduction <add>, %231, %cst_66 [1] : vector<16x256xf32> to vector<16xf32>
    %233 = vector.shape_cast %232 : vector<16xf32> to vector<16x1xf32>
    %234 = arith.mulf %231, %231 : vector<16x256xf32>
    %cst_67 = arith.constant dense<0.000000e+00> : vector<16xf32>
    %235 = vector.multi_reduction <add>, %234, %cst_67 [1] : vector<16x256xf32> to vector<16xf32>
    %236 = vector.shape_cast %235 : vector<16xf32> to vector<16x1xf32>
    %cst_68 = arith.constant 3.125000e-02 : f32
    %237 = vector.broadcast %cst_68 : f32 to vector<16x1xf32>
    %238 = arith.mulf %233, %237 : vector<16x1xf32>
    %cst_69 = arith.constant 3.125000e-02 : f32
    %239 = vector.broadcast %cst_69 : f32 to vector<16x1xf32>
    %240 = arith.mulf %236, %239 : vector<16x1xf32>
    %241 = arith.mulf %238, %238 : vector<16x1xf32>
    %242 = arith.subf %240, %241 : vector<16x1xf32>
    %243 = vector.broadcast %238 : vector<16x1xf32> to vector<16x256xf32>
    %244 = arith.subf %231, %243 : vector<16x256xf32>
    %cst_70 = arith.constant 9.99999974E-6 : f32
    %245 = vector.broadcast %cst_70 : f32 to vector<16x1xf32>
    %246 = arith.addf %242, %245 : vector<16x1xf32>
    %247 = math.rsqrt %246 : vector<16x1xf32>
    %248 = vector.broadcast %247 : vector<16x1xf32> to vector<16x256xf32>
    %249 = arith.mulf %244, %248 : vector<16x256xf32>
    %250 = arith.mulf %249, %9 : vector<16x256xf32>
    %251 = arith.addf %250, %12 : vector<16x256xf32>
    %252 = vector.extract_strided_slice %230 {offsets = [0, 256], sizes = [16, 128], strides = [1, 1]} : vector<16x384xf32> to vector<16x128xf32>
    %cst_71 = arith.constant dense<0.000000e+00> : vector<16xf32>
    %253 = vector.multi_reduction <add>, %252, %cst_71 [1] : vector<16x128xf32> to vector<16xf32>
    %254 = vector.shape_cast %253 : vector<16xf32> to vector<16x1xf32>
    %255 = arith.mulf %252, %252 : vector<16x128xf32>
    %cst_72 = arith.constant dense<0.000000e+00> : vector<16xf32>
    %256 = vector.multi_reduction <add>, %255, %cst_72 [1] : vector<16x128xf32> to vector<16xf32>
    %257 = vector.shape_cast %256 : vector<16xf32> to vector<16x1xf32>
    %cst_73 = arith.constant 6.250000e-02 : f32
    %258 = vector.broadcast %cst_73 : f32 to vector<16x1xf32>
    %259 = arith.mulf %254, %258 : vector<16x1xf32>
    %cst_74 = arith.constant 6.250000e-02 : f32
    %260 = vector.broadcast %cst_74 : f32 to vector<16x1xf32>
    %261 = arith.mulf %257, %260 : vector<16x1xf32>
    %262 = arith.mulf %259, %259 : vector<16x1xf32>
    %263 = arith.subf %261, %262 : vector<16x1xf32>
    %264 = vector.broadcast %259 : vector<16x1xf32> to vector<16x128xf32>
    %265 = arith.subf %252, %264 : vector<16x128xf32>
    %cst_75 = arith.constant 9.99999974E-6 : f32
    %266 = vector.broadcast %cst_75 : f32 to vector<16x1xf32>
    %267 = arith.addf %263, %266 : vector<16x1xf32>
    %268 = math.rsqrt %267 : vector<16x1xf32>
    %269 = vector.broadcast %268 : vector<16x1xf32> to vector<16x128xf32>
    %270 = arith.mulf %265, %269 : vector<16x128xf32>
    %271 = arith.mulf %270, %15 : vector<16x128xf32>
    %272 = arith.addf %271, %18 : vector<16x128xf32>
    %273 = vector.extract_strided_slice %228 {offsets = [0, 0], sizes = [16, 256], strides = [1, 1]} : vector<16x384xf32> to vector<16x256xf32>
    %274 = arith.addf %273, %251 : vector<16x256xf32>
    %275 = arith.negf %274 : vector<16x256xf32>
    %276 = math.exp %275 : vector<16x256xf32>
    %cst_76 = arith.constant 1.000000e+00 : f32
    %277 = vector.broadcast %cst_76 : f32 to vector<16x256xf32>
    %278 = arith.addf %277, %276 : vector<16x256xf32>
    %279 = arith.divf %277, %278 : vector<16x256xf32>
    %280 = vector.extract_strided_slice %279 {offsets = [0, 0], sizes = [16, 128], strides = [1, 1]} : vector<16x256xf32> to vector<16x128xf32>
    %281 = vector.extract_strided_slice %279 {offsets = [0, 128], sizes = [16, 128], strides = [1, 1]} : vector<16x256xf32> to vector<16x128xf32>
    %282 = vector.extract_strided_slice %228 {offsets = [0, 256], sizes = [16, 128], strides = [1, 1]} : vector<16x384xf32> to vector<16x128xf32>
    %283 = arith.mulf %280, %272 : vector<16x128xf32>
    %284 = arith.addf %282, %283 : vector<16x128xf32>
    %285 = math.tanh %284 : vector<16x128xf32>
    %286 = arith.subf %220, %285 : vector<16x128xf32>
    %287 = arith.mulf %281, %286 : vector<16x128xf32>
    %288 = arith.addf %285, %287 : vector<16x128xf32>
    %289 = arith.index_cast %225 : i32 to index
    %c0_77 = arith.constant 0 : index
    %c0_78 = arith.constant 0 : index
    %290 = vector.load %arg9[%289, %c0_77, %c0_78] : memref<8x16x128xf32, #tpu.memory_space<vmem>>, vector<1x16x128xf32>
    %291 = vector.shape_cast %290 : vector<1x16x128xf32> to vector<16x128xf32>
    %292 = vector.shape_cast %288 : vector<16x128xf32> to vector<1x16x128xf32>
    tpu.vector_store %arg9[%289, %c0_77, %c0_78], %292 {strides = array<i32>} : memref<8x16x128xf32, #tpu.memory_space<vmem>>, vector<1x16x128xf32>,
    %c4_i32 = arith.constant 4 : i32
    %293 = arith.addi %20, %c4_i32 : i32
    %294 = arith.index_cast %293 : i32 to index
    %c0_79 = arith.constant 0 : index
    %c0_80 = arith.constant 0 : index
    %295 = vector.load %arg2[%294, %c0_79, %c0_80] : memref<8x16x384xf32, #tpu.memory_space<vmem>>, vector<1x16x384xf32>
    %296 = vector.shape_cast %295 : vector<1x16x384xf32> to vector<16x384xf32>
    %cst_81 = arith.constant dense<0.000000e+00> : vector<16x384xf32>
    %297 = tpu.matmul %288, %3, %cst_81 {dimension_numbers = #tpu.dot_dimension_numbers<[1], [0], [0], [1], [0, 0, 1, 1], [], []>} : vector<16x128xf32>, vector<128x384xf32>, vector<16x384xf32> -> vector<16x384xf32>
    %298 = arith.addf %297, %6 : vector<16x384xf32>
    %299 = vector.extract_strided_slice %298 {offsets = [0, 0], sizes = [16, 256], strides = [1, 1]} : vector<16x384xf32> to vector<16x256xf32>
    %cst_82 = arith.constant dense<0.000000e+00> : vector<16xf32>
    %300 = vector.multi_reduction <add>, %299, %cst_82 [1] : vector<16x256xf32> to vector<16xf32>
    %301 = vector.shape_cast %300 : vector<16xf32> to vector<16x1xf32>
    %302 = arith.mulf %299, %299 : vector<16x256xf32>
    %cst_83 = arith.constant dense<0.000000e+00> : vector<16xf32>
    %303 = vector.multi_reduction <add>, %302, %cst_83 [1] : vector<16x256xf32> to vector<16xf32>
    %304 = vector.shape_cast %303 : vector<16xf32> to vector<16x1xf32>
    %cst_84 = arith.constant 3.125000e-02 : f32
    %305 = vector.broadcast %cst_84 : f32 to vector<16x1xf32>
    %306 = arith.mulf %301, %305 : vector<16x1xf32>
    %cst_85 = arith.constant 3.125000e-02 : f32
    %307 = vector.broadcast %cst_85 : f32 to vector<16x1xf32>
    %308 = arith.mulf %304, %307 : vector<16x1xf32>
    %309 = arith.mulf %306, %306 : vector<16x1xf32>
    %310 = arith.subf %308, %309 : vector<16x1xf32>
    %311 = vector.broadcast %306 : vector<16x1xf32> to vector<16x256xf32>
    %312 = arith.subf %299, %311 : vector<16x256xf32>
    %cst_86 = arith.constant 9.99999974E-6 : f32
    %313 = vector.broadcast %cst_86 : f32 to vector<16x1xf32>
    %314 = arith.addf %310, %313 : vector<16x1xf32>
    %315 = math.rsqrt %314 : vector<16x1xf32>
    %316 = vector.broadcast %315 : vector<16x1xf32> to vector<16x256xf32>
    %317 = arith.mulf %312, %316 : vector<16x256xf32>
    %318 = arith.mulf %317, %9 : vector<16x256xf32>
    %319 = arith.addf %318, %12 : vector<16x256xf32>
    %320 = vector.extract_strided_slice %298 {offsets = [0, 256], sizes = [16, 128], strides = [1, 1]} : vector<16x384xf32> to vector<16x128xf32>
    %cst_87 = arith.constant dense<0.000000e+00> : vector<16xf32>
    %321 = vector.multi_reduction <add>, %320, %cst_87 [1] : vector<16x128xf32> to vector<16xf32>
    %322 = vector.shape_cast %321 : vector<16xf32> to vector<16x1xf32>
    %323 = arith.mulf %320, %320 : vector<16x128xf32>
    %cst_88 = arith.constant dense<0.000000e+00> : vector<16xf32>
    %324 = vector.multi_reduction <add>, %323, %cst_88 [1] : vector<16x128xf32> to vector<16xf32>
    %325 = vector.shape_cast %324 : vector<16xf32> to vector<16x1xf32>
    %cst_89 = arith.constant 6.250000e-02 : f32
    %326 = vector.broadcast %cst_89 : f32 to vector<16x1xf32>
    %327 = arith.mulf %322, %326 : vector<16x1xf32>
    %cst_90 = arith.constant 6.250000e-02 : f32
    %328 = vector.broadcast %cst_90 : f32 to vector<16x1xf32>
    %329 = arith.mulf %325, %328 : vector<16x1xf32>
    %330 = arith.mulf %327, %327 : vector<16x1xf32>
    %331 = arith.subf %329, %330 : vector<16x1xf32>
    %332 = vector.broadcast %327 : vector<16x1xf32> to vector<16x128xf32>
    %333 = arith.subf %320, %332 : vector<16x128xf32>
    %cst_91 = arith.constant 9.99999974E-6 : f32
    %334 = vector.broadcast %cst_91 : f32 to vector<16x1xf32>
    %335 = arith.addf %331, %334 : vector<16x1xf32>
    %336 = math.rsqrt %335 : vector<16x1xf32>
    %337 = vector.broadcast %336 : vector<16x1xf32> to vector<16x128xf32>
    %338 = arith.mulf %333, %337 : vector<16x128xf32>
    %339 = arith.mulf %338, %15 : vector<16x128xf32>
    %340 = arith.addf %339, %18 : vector<16x128xf32>
    %341 = vector.extract_strided_slice %296 {offsets = [0, 0], sizes = [16, 256], strides = [1, 1]} : vector<16x384xf32> to vector<16x256xf32>
    %342 = arith.addf %341, %319 : vector<16x256xf32>
    %343 = arith.negf %342 : vector<16x256xf32>
    %344 = math.exp %343 : vector<16x256xf32>
    %cst_92 = arith.constant 1.000000e+00 : f32
    %345 = vector.broadcast %cst_92 : f32 to vector<16x256xf32>
    %346 = arith.addf %345, %344 : vector<16x256xf32>
    %347 = arith.divf %345, %346 : vector<16x256xf32>
    %348 = vector.extract_strided_slice %347 {offsets = [0, 0], sizes = [16, 128], strides = [1, 1]} : vector<16x256xf32> to vector<16x128xf32>
    %349 = vector.extract_strided_slice %347 {offsets = [0, 128], sizes = [16, 128], strides = [1, 1]} : vector<16x256xf32> to vector<16x128xf32>
    %350 = vector.extract_strided_slice %296 {offsets = [0, 256], sizes = [16, 128], strides = [1, 1]} : vector<16x384xf32> to vector<16x128xf32>
    %351 = arith.mulf %348, %340 : vector<16x128xf32>
    %352 = arith.addf %350, %351 : vector<16x128xf32>
    %353 = math.tanh %352 : vector<16x128xf32>
    %354 = arith.subf %288, %353 : vector<16x128xf32>
    %355 = arith.mulf %349, %354 : vector<16x128xf32>
    %356 = arith.addf %353, %355 : vector<16x128xf32>
    %357 = arith.index_cast %293 : i32 to index
    %c0_93 = arith.constant 0 : index
    %c0_94 = arith.constant 0 : index
    %358 = vector.load %arg9[%357, %c0_93, %c0_94] : memref<8x16x128xf32, #tpu.memory_space<vmem>>, vector<1x16x128xf32>
    %359 = vector.shape_cast %358 : vector<1x16x128xf32> to vector<16x128xf32>
    %360 = vector.shape_cast %356 : vector<16x128xf32> to vector<1x16x128xf32>
    tpu.vector_store %arg9[%357, %c0_93, %c0_94], %360 {strides = array<i32>} : memref<8x16x128xf32, #tpu.memory_space<vmem>>, vector<1x16x128xf32>,
    %c5_i32 = arith.constant 5 : i32
    %361 = arith.addi %20, %c5_i32 : i32
    %362 = arith.index_cast %361 : i32 to index
    %c0_95 = arith.constant 0 : index
    %c0_96 = arith.constant 0 : index
    %363 = vector.load %arg2[%362, %c0_95, %c0_96] : memref<8x16x384xf32, #tpu.memory_space<vmem>>, vector<1x16x384xf32>
    %364 = vector.shape_cast %363 : vector<1x16x384xf32> to vector<16x384xf32>
    %cst_97 = arith.constant dense<0.000000e+00> : vector<16x384xf32>
    %365 = tpu.matmul %356, %3, %cst_97 {dimension_numbers = #tpu.dot_dimension_numbers<[1], [0], [0], [1], [0, 0, 1, 1], [], []>} : vector<16x128xf32>, vector<128x384xf32>, vector<16x384xf32> -> vector<16x384xf32>
    %366 = arith.addf %365, %6 : vector<16x384xf32>
    %367 = vector.extract_strided_slice %366 {offsets = [0, 0], sizes = [16, 256], strides = [1, 1]} : vector<16x384xf32> to vector<16x256xf32>
    %cst_98 = arith.constant dense<0.000000e+00> : vector<16xf32>
    %368 = vector.multi_reduction <add>, %367, %cst_98 [1] : vector<16x256xf32> to vector<16xf32>
    %369 = vector.shape_cast %368 : vector<16xf32> to vector<16x1xf32>
    %370 = arith.mulf %367, %367 : vector<16x256xf32>
    %cst_99 = arith.constant dense<0.000000e+00> : vector<16xf32>
    %371 = vector.multi_reduction <add>, %370, %cst_99 [1] : vector<16x256xf32> to vector<16xf32>
    %372 = vector.shape_cast %371 : vector<16xf32> to vector<16x1xf32>
    %cst_100 = arith.constant 3.125000e-02 : f32
    %373 = vector.broadcast %cst_100 : f32 to vector<16x1xf32>
    %374 = arith.mulf %369, %373 : vector<16x1xf32>
    %cst_101 = arith.constant 3.125000e-02 : f32
    %375 = vector.broadcast %cst_101 : f32 to vector<16x1xf32>
    %376 = arith.mulf %372, %375 : vector<16x1xf32>
    %377 = arith.mulf %374, %374 : vector<16x1xf32>
    %378 = arith.subf %376, %377 : vector<16x1xf32>
    %379 = vector.broadcast %374 : vector<16x1xf32> to vector<16x256xf32>
    %380 = arith.subf %367, %379 : vector<16x256xf32>
    %cst_102 = arith.constant 9.99999974E-6 : f32
    %381 = vector.broadcast %cst_102 : f32 to vector<16x1xf32>
    %382 = arith.addf %378, %381 : vector<16x1xf32>
    %383 = math.rsqrt %382 : vector<16x1xf32>
    %384 = vector.broadcast %383 : vector<16x1xf32> to vector<16x256xf32>
    %385 = arith.mulf %380, %384 : vector<16x256xf32>
    %386 = arith.mulf %385, %9 : vector<16x256xf32>
    %387 = arith.addf %386, %12 : vector<16x256xf32>
    %388 = vector.extract_strided_slice %366 {offsets = [0, 256], sizes = [16, 128], strides = [1, 1]} : vector<16x384xf32> to vector<16x128xf32>
    %cst_103 = arith.constant dense<0.000000e+00> : vector<16xf32>
    %389 = vector.multi_reduction <add>, %388, %cst_103 [1] : vector<16x128xf32> to vector<16xf32>
    %390 = vector.shape_cast %389 : vector<16xf32> to vector<16x1xf32>
    %391 = arith.mulf %388, %388 : vector<16x128xf32>
    %cst_104 = arith.constant dense<0.000000e+00> : vector<16xf32>
    %392 = vector.multi_reduction <add>, %391, %cst_104 [1] : vector<16x128xf32> to vector<16xf32>
    %393 = vector.shape_cast %392 : vector<16xf32> to vector<16x1xf32>
    %cst_105 = arith.constant 6.250000e-02 : f32
    %394 = vector.broadcast %cst_105 : f32 to vector<16x1xf32>
    %395 = arith.mulf %390, %394 : vector<16x1xf32>
    %cst_106 = arith.constant 6.250000e-02 : f32
    %396 = vector.broadcast %cst_106 : f32 to vector<16x1xf32>
    %397 = arith.mulf %393, %396 : vector<16x1xf32>
    %398 = arith.mulf %395, %395 : vector<16x1xf32>
    %399 = arith.subf %397, %398 : vector<16x1xf32>
    %400 = vector.broadcast %395 : vector<16x1xf32> to vector<16x128xf32>
    %401 = arith.subf %388, %400 : vector<16x128xf32>
    %cst_107 = arith.constant 9.99999974E-6 : f32
    %402 = vector.broadcast %cst_107 : f32 to vector<16x1xf32>
    %403 = arith.addf %399, %402 : vector<16x1xf32>
    %404 = math.rsqrt %403 : vector<16x1xf32>
    %405 = vector.broadcast %404 : vector<16x1xf32> to vector<16x128xf32>
    %406 = arith.mulf %401, %405 : vector<16x128xf32>
    %407 = arith.mulf %406, %15 : vector<16x128xf32>
    %408 = arith.addf %407, %18 : vector<16x128xf32>
    %409 = vector.extract_strided_slice %364 {offsets = [0, 0], sizes = [16, 256], strides = [1, 1]} : vector<16x384xf32> to vector<16x256xf32>
    %410 = arith.addf %409, %387 : vector<16x256xf32>
    %411 = arith.negf %410 : vector<16x256xf32>
    %412 = math.exp %411 : vector<16x256xf32>
    %cst_108 = arith.constant 1.000000e+00 : f32
    %413 = vector.broadcast %cst_108 : f32 to vector<16x256xf32>
    %414 = arith.addf %413, %412 : vector<16x256xf32>
    %415 = arith.divf %413, %414 : vector<16x256xf32>
    %416 = vector.extract_strided_slice %415 {offsets = [0, 0], sizes = [16, 128], strides = [1, 1]} : vector<16x256xf32> to vector<16x128xf32>
    %417 = vector.extract_strided_slice %415 {offsets = [0, 128], sizes = [16, 128], strides = [1, 1]} : vector<16x256xf32> to vector<16x128xf32>
    %418 = vector.extract_strided_slice %364 {offsets = [0, 256], sizes = [16, 128], strides = [1, 1]} : vector<16x384xf32> to vector<16x128xf32>
    %419 = arith.mulf %416, %408 : vector<16x128xf32>
    %420 = arith.addf %418, %419 : vector<16x128xf32>
    %421 = math.tanh %420 : vector<16x128xf32>
    %422 = arith.subf %356, %421 : vector<16x128xf32>
    %423 = arith.mulf %417, %422 : vector<16x128xf32>
    %424 = arith.addf %421, %423 : vector<16x128xf32>
    %425 = arith.index_cast %361 : i32 to index
    %c0_109 = arith.constant 0 : index
    %c0_110 = arith.constant 0 : index
    %426 = vector.load %arg9[%425, %c0_109, %c0_110] : memref<8x16x128xf32, #tpu.memory_space<vmem>>, vector<1x16x128xf32>
    %427 = vector.shape_cast %426 : vector<1x16x128xf32> to vector<16x128xf32>
    %428 = vector.shape_cast %424 : vector<16x128xf32> to vector<1x16x128xf32>
    tpu.vector_store %arg9[%425, %c0_109, %c0_110], %428 {strides = array<i32>} : memref<8x16x128xf32, #tpu.memory_space<vmem>>, vector<1x16x128xf32>,
    %c6_i32 = arith.constant 6 : i32
    %429 = arith.addi %20, %c6_i32 : i32
    %430 = arith.index_cast %429 : i32 to index
    %c0_111 = arith.constant 0 : index
    %c0_112 = arith.constant 0 : index
    %431 = vector.load %arg2[%430, %c0_111, %c0_112] : memref<8x16x384xf32, #tpu.memory_space<vmem>>, vector<1x16x384xf32>
    %432 = vector.shape_cast %431 : vector<1x16x384xf32> to vector<16x384xf32>
    %cst_113 = arith.constant dense<0.000000e+00> : vector<16x384xf32>
    %433 = tpu.matmul %424, %3, %cst_113 {dimension_numbers = #tpu.dot_dimension_numbers<[1], [0], [0], [1], [0, 0, 1, 1], [], []>} : vector<16x128xf32>, vector<128x384xf32>, vector<16x384xf32> -> vector<16x384xf32>
    %434 = arith.addf %433, %6 : vector<16x384xf32>
    %435 = vector.extract_strided_slice %434 {offsets = [0, 0], sizes = [16, 256], strides = [1, 1]} : vector<16x384xf32> to vector<16x256xf32>
    %cst_114 = arith.constant dense<0.000000e+00> : vector<16xf32>
    %436 = vector.multi_reduction <add>, %435, %cst_114 [1] : vector<16x256xf32> to vector<16xf32>
    %437 = vector.shape_cast %436 : vector<16xf32> to vector<16x1xf32>
    %438 = arith.mulf %435, %435 : vector<16x256xf32>
    %cst_115 = arith.constant dense<0.000000e+00> : vector<16xf32>
    %439 = vector.multi_reduction <add>, %438, %cst_115 [1] : vector<16x256xf32> to vector<16xf32>
    %440 = vector.shape_cast %439 : vector<16xf32> to vector<16x1xf32>
    %cst_116 = arith.constant 3.125000e-02 : f32
    %441 = vector.broadcast %cst_116 : f32 to vector<16x1xf32>
    %442 = arith.mulf %437, %441 : vector<16x1xf32>
    %cst_117 = arith.constant 3.125000e-02 : f32
    %443 = vector.broadcast %cst_117 : f32 to vector<16x1xf32>
    %444 = arith.mulf %440, %443 : vector<16x1xf32>
    %445 = arith.mulf %442, %442 : vector<16x1xf32>
    %446 = arith.subf %444, %445 : vector<16x1xf32>
    %447 = vector.broadcast %442 : vector<16x1xf32> to vector<16x256xf32>
    %448 = arith.subf %435, %447 : vector<16x256xf32>
    %cst_118 = arith.constant 9.99999974E-6 : f32
    %449 = vector.broadcast %cst_118 : f32 to vector<16x1xf32>
    %450 = arith.addf %446, %449 : vector<16x1xf32>
    %451 = math.rsqrt %450 : vector<16x1xf32>
    %452 = vector.broadcast %451 : vector<16x1xf32> to vector<16x256xf32>
    %453 = arith.mulf %448, %452 : vector<16x256xf32>
    %454 = arith.mulf %453, %9 : vector<16x256xf32>
    %455 = arith.addf %454, %12 : vector<16x256xf32>
    %456 = vector.extract_strided_slice %434 {offsets = [0, 256], sizes = [16, 128], strides = [1, 1]} : vector<16x384xf32> to vector<16x128xf32>
    %cst_119 = arith.constant dense<0.000000e+00> : vector<16xf32>
    %457 = vector.multi_reduction <add>, %456, %cst_119 [1] : vector<16x128xf32> to vector<16xf32>
    %458 = vector.shape_cast %457 : vector<16xf32> to vector<16x1xf32>
    %459 = arith.mulf %456, %456 : vector<16x128xf32>
    %cst_120 = arith.constant dense<0.000000e+00> : vector<16xf32>
    %460 = vector.multi_reduction <add>, %459, %cst_120 [1] : vector<16x128xf32> to vector<16xf32>
    %461 = vector.shape_cast %460 : vector<16xf32> to vector<16x1xf32>
    %cst_121 = arith.constant 6.250000e-02 : f32
    %462 = vector.broadcast %cst_121 : f32 to vector<16x1xf32>
    %463 = arith.mulf %458, %462 : vector<16x1xf32>
    %cst_122 = arith.constant 6.250000e-02 : f32
    %464 = vector.broadcast %cst_122 : f32 to vector<16x1xf32>
    %465 = arith.mulf %461, %464 : vector<16x1xf32>
    %466 = arith.mulf %463, %463 : vector<16x1xf32>
    %467 = arith.subf %465, %466 : vector<16x1xf32>
    %468 = vector.broadcast %463 : vector<16x1xf32> to vector<16x128xf32>
    %469 = arith.subf %456, %468 : vector<16x128xf32>
    %cst_123 = arith.constant 9.99999974E-6 : f32
    %470 = vector.broadcast %cst_123 : f32 to vector<16x1xf32>
    %471 = arith.addf %467, %470 : vector<16x1xf32>
    %472 = math.rsqrt %471 : vector<16x1xf32>
    %473 = vector.broadcast %472 : vector<16x1xf32> to vector<16x128xf32>
    %474 = arith.mulf %469, %473 : vector<16x128xf32>
    %475 = arith.mulf %474, %15 : vector<16x128xf32>
    %476 = arith.addf %475, %18 : vector<16x128xf32>
    %477 = vector.extract_strided_slice %432 {offsets = [0, 0], sizes = [16, 256], strides = [1, 1]} : vector<16x384xf32> to vector<16x256xf32>
    %478 = arith.addf %477, %455 : vector<16x256xf32>
    %479 = arith.negf %478 : vector<16x256xf32>
    %480 = math.exp %479 : vector<16x256xf32>
    %cst_124 = arith.constant 1.000000e+00 : f32
    %481 = vector.broadcast %cst_124 : f32 to vector<16x256xf32>
    %482 = arith.addf %481, %480 : vector<16x256xf32>
    %483 = arith.divf %481, %482 : vector<16x256xf32>
    %484 = vector.extract_strided_slice %483 {offsets = [0, 0], sizes = [16, 128], strides = [1, 1]} : vector<16x256xf32> to vector<16x128xf32>
    %485 = vector.extract_strided_slice %483 {offsets = [0, 128], sizes = [16, 128], strides = [1, 1]} : vector<16x256xf32> to vector<16x128xf32>
    %486 = vector.extract_strided_slice %432 {offsets = [0, 256], sizes = [16, 128], strides = [1, 1]} : vector<16x384xf32> to vector<16x128xf32>
    %487 = arith.mulf %484, %476 : vector<16x128xf32>
    %488 = arith.addf %486, %487 : vector<16x128xf32>
    %489 = math.tanh %488 : vector<16x128xf32>
    %490 = arith.subf %424, %489 : vector<16x128xf32>
    %491 = arith.mulf %485, %490 : vector<16x128xf32>
    %492 = arith.addf %489, %491 : vector<16x128xf32>
    %493 = arith.index_cast %429 : i32 to index
    %c0_125 = arith.constant 0 : index
    %c0_126 = arith.constant 0 : index
    %494 = vector.load %arg9[%493, %c0_125, %c0_126] : memref<8x16x128xf32, #tpu.memory_space<vmem>>, vector<1x16x128xf32>
    %495 = vector.shape_cast %494 : vector<1x16x128xf32> to vector<16x128xf32>
    %496 = vector.shape_cast %492 : vector<16x128xf32> to vector<1x16x128xf32>
    tpu.vector_store %arg9[%493, %c0_125, %c0_126], %496 {strides = array<i32>} : memref<8x16x128xf32, #tpu.memory_space<vmem>>, vector<1x16x128xf32>,
    %c7_i32 = arith.constant 7 : i32
    %497 = arith.addi %20, %c7_i32 : i32
    %498 = arith.index_cast %497 : i32 to index
    %c0_127 = arith.constant 0 : index
    %c0_128 = arith.constant 0 : index
    %499 = vector.load %arg2[%498, %c0_127, %c0_128] : memref<8x16x384xf32, #tpu.memory_space<vmem>>, vector<1x16x384xf32>
    %500 = vector.shape_cast %499 : vector<1x16x384xf32> to vector<16x384xf32>
    %cst_129 = arith.constant dense<0.000000e+00> : vector<16x384xf32>
    %501 = tpu.matmul %492, %3, %cst_129 {dimension_numbers = #tpu.dot_dimension_numbers<[1], [0], [0], [1], [0, 0, 1, 1], [], []>} : vector<16x128xf32>, vector<128x384xf32>, vector<16x384xf32> -> vector<16x384xf32>
    %502 = arith.addf %501, %6 : vector<16x384xf32>
    %503 = vector.extract_strided_slice %502 {offsets = [0, 0], sizes = [16, 256], strides = [1, 1]} : vector<16x384xf32> to vector<16x256xf32>
    %cst_130 = arith.constant dense<0.000000e+00> : vector<16xf32>
    %504 = vector.multi_reduction <add>, %503, %cst_130 [1] : vector<16x256xf32> to vector<16xf32>
    %505 = vector.shape_cast %504 : vector<16xf32> to vector<16x1xf32>
    %506 = arith.mulf %503, %503 : vector<16x256xf32>
    %cst_131 = arith.constant dense<0.000000e+00> : vector<16xf32>
    %507 = vector.multi_reduction <add>, %506, %cst_131 [1] : vector<16x256xf32> to vector<16xf32>
    %508 = vector.shape_cast %507 : vector<16xf32> to vector<16x1xf32>
    %cst_132 = arith.constant 3.125000e-02 : f32
    %509 = vector.broadcast %cst_132 : f32 to vector<16x1xf32>
    %510 = arith.mulf %505, %509 : vector<16x1xf32>
    %cst_133 = arith.constant 3.125000e-02 : f32
    %511 = vector.broadcast %cst_133 : f32 to vector<16x1xf32>
    %512 = arith.mulf %508, %511 : vector<16x1xf32>
    %513 = arith.mulf %510, %510 : vector<16x1xf32>
    %514 = arith.subf %512, %513 : vector<16x1xf32>
    %515 = vector.broadcast %510 : vector<16x1xf32> to vector<16x256xf32>
    %516 = arith.subf %503, %515 : vector<16x256xf32>
    %cst_134 = arith.constant 9.99999974E-6 : f32
    %517 = vector.broadcast %cst_134 : f32 to vector<16x1xf32>
    %518 = arith.addf %514, %517 : vector<16x1xf32>
    %519 = math.rsqrt %518 : vector<16x1xf32>
    %520 = vector.broadcast %519 : vector<16x1xf32> to vector<16x256xf32>
    %521 = arith.mulf %516, %520 : vector<16x256xf32>
    %522 = arith.mulf %521, %9 : vector<16x256xf32>
    %523 = arith.addf %522, %12 : vector<16x256xf32>
    %524 = vector.extract_strided_slice %502 {offsets = [0, 256], sizes = [16, 128], strides = [1, 1]} : vector<16x384xf32> to vector<16x128xf32>
    %cst_135 = arith.constant dense<0.000000e+00> : vector<16xf32>
    %525 = vector.multi_reduction <add>, %524, %cst_135 [1] : vector<16x128xf32> to vector<16xf32>
    %526 = vector.shape_cast %525 : vector<16xf32> to vector<16x1xf32>
    %527 = arith.mulf %524, %524 : vector<16x128xf32>
    %cst_136 = arith.constant dense<0.000000e+00> : vector<16xf32>
    %528 = vector.multi_reduction <add>, %527, %cst_136 [1] : vector<16x128xf32> to vector<16xf32>
    %529 = vector.shape_cast %528 : vector<16xf32> to vector<16x1xf32>
    %cst_137 = arith.constant 6.250000e-02 : f32
    %530 = vector.broadcast %cst_137 : f32 to vector<16x1xf32>
    %531 = arith.mulf %526, %530 : vector<16x1xf32>
    %cst_138 = arith.constant 6.250000e-02 : f32
    %532 = vector.broadcast %cst_138 : f32 to vector<16x1xf32>
    %533 = arith.mulf %529, %532 : vector<16x1xf32>
    %534 = arith.mulf %531, %531 : vector<16x1xf32>
    %535 = arith.subf %533, %534 : vector<16x1xf32>
    %536 = vector.broadcast %531 : vector<16x1xf32> to vector<16x128xf32>
    %537 = arith.subf %524, %536 : vector<16x128xf32>
    %cst_139 = arith.constant 9.99999974E-6 : f32
    %538 = vector.broadcast %cst_139 : f32 to vector<16x1xf32>
    %539 = arith.addf %535, %538 : vector<16x1xf32>
    %540 = math.rsqrt %539 : vector<16x1xf32>
    %541 = vector.broadcast %540 : vector<16x1xf32> to vector<16x128xf32>
    %542 = arith.mulf %537, %541 : vector<16x128xf32>
    %543 = arith.mulf %542, %15 : vector<16x128xf32>
    %544 = arith.addf %543, %18 : vector<16x128xf32>
    %545 = vector.extract_strided_slice %500 {offsets = [0, 0], sizes = [16, 256], strides = [1, 1]} : vector<16x384xf32> to vector<16x256xf32>
    %546 = arith.addf %545, %523 : vector<16x256xf32>
    %547 = arith.negf %546 : vector<16x256xf32>
    %548 = math.exp %547 : vector<16x256xf32>
    %cst_140 = arith.constant 1.000000e+00 : f32
    %549 = vector.broadcast %cst_140 : f32 to vector<16x256xf32>
    %550 = arith.addf %549, %548 : vector<16x256xf32>
    %551 = arith.divf %549, %550 : vector<16x256xf32>
    %552 = vector.extract_strided_slice %551 {offsets = [0, 0], sizes = [16, 128], strides = [1, 1]} : vector<16x256xf32> to vector<16x128xf32>
    %553 = vector.extract_strided_slice %551 {offsets = [0, 128], sizes = [16, 128], strides = [1, 1]} : vector<16x256xf32> to vector<16x128xf32>
    %554 = vector.extract_strided_slice %500 {offsets = [0, 256], sizes = [16, 128], strides = [1, 1]} : vector<16x384xf32> to vector<16x128xf32>
    %555 = arith.mulf %552, %544 : vector<16x128xf32>
    %556 = arith.addf %554, %555 : vector<16x128xf32>
    %557 = math.tanh %556 : vector<16x128xf32>
    %558 = arith.subf %492, %557 : vector<16x128xf32>
    %559 = arith.mulf %553, %558 : vector<16x128xf32>
    %560 = arith.addf %557, %559 : vector<16x128xf32>
    %561 = arith.index_cast %497 : i32 to index
    %c0_141 = arith.constant 0 : index
    %c0_142 = arith.constant 0 : index
    %562 = vector.load %arg9[%561, %c0_141, %c0_142] : memref<8x16x128xf32, #tpu.memory_space<vmem>>, vector<1x16x128xf32>
    %563 = vector.shape_cast %562 : vector<1x16x128xf32> to vector<16x128xf32>
    %564 = vector.shape_cast %560 : vector<16x128xf32> to vector<1x16x128xf32>
    tpu.vector_store %arg9[%561, %c0_141, %c0_142], %564 {strides = array<i32>} : memref<8x16x128xf32, #tpu.memory_space<vmem>>, vector<1x16x128xf32>,
    %c1_i32_143 = arith.constant 1 : i32
    %c0_144 = arith.constant 0 : index
    %c0_145 = arith.constant 0 : index
    %565 = vector.load %arg10[%c0_144, %c0_145] : memref<16x128xf32, #tpu.memory_space<vmem>>, vector<16x128xf32>
    tpu.vector_store %arg10[%c0_144, %c0_145], %560 {strides = array<i32>} : memref<16x128xf32, #tpu.memory_space<vmem>>, vector<16x128xf32>,
    return
  }
  func.func @transform_0(%arg0: i32, %arg1: i32) -> (i32, i32, i32) {
    %c0_i32 = arith.constant 0 : i32
    %c0_i32_0 = arith.constant 0 : i32
    return %arg1, %arg0, %c0_i32 : i32, i32, i32
  }
  func.func @transform_1(%arg0: i32, %arg1: i32) -> (i32, i32) {
    %c0_i32 = arith.constant 0 : i32
    %c0_i32_0 = arith.constant 0 : i32
    %c0_i32_1 = arith.constant 0 : i32
    return %c0_i32, %c0_i32_0 : i32, i32
  }
  func.func @transform_2(%arg0: i32, %arg1: i32) -> (i32, i32) {
    %c0_i32 = arith.constant 0 : i32
    %c0_i32_0 = arith.constant 0 : i32
    %c0_i32_1 = arith.constant 0 : i32
    return %c0_i32, %c0_i32_0 : i32, i32
  }
  func.func @transform_3(%arg0: i32, %arg1: i32) -> (i32, i32) {
    %c0_i32 = arith.constant 0 : i32
    %c0_i32_0 = arith.constant 0 : i32
    %c0_i32_1 = arith.constant 0 : i32
    return %c0_i32, %c0_i32_0 : i32, i32
  }
  func.func @transform_4(%arg0: i32, %arg1: i32) -> (i32, i32) {
    %c0_i32 = arith.constant 0 : i32
    %c0_i32_0 = arith.constant 0 : i32
    %c0_i32_1 = arith.constant 0 : i32
    return %c0_i32, %c0_i32_0 : i32, i32
  }
  func.func @transform_5(%arg0: i32, %arg1: i32) -> (i32, i32) {
    %c0_i32 = arith.constant 0 : i32
    %c0_i32_0 = arith.constant 0 : i32
    %c0_i32_1 = arith.constant 0 : i32
    return %c0_i32, %c0_i32_0 : i32, i32
  }
  func.func @transform_6(%arg0: i32, %arg1: i32) -> (i32, i32) {
    %c0_i32 = arith.constant 0 : i32
    %c0_i32_0 = arith.constant 0 : i32
    %c0_i32_1 = arith.constant 0 : i32
    return %c0_i32, %c0_i32_0 : i32, i32
  }
  func.func @transform_7(%arg0: i32, %arg1: i32) -> (i32, i32, i32) {
    %c0_i32 = arith.constant 0 : i32
    %c0_i32_0 = arith.constant 0 : i32
    return %arg1, %arg0, %c0_i32 : i32, i32, i32
  }
}

</mosaic_0001>

<bundles_post_ra>
// kernel: gru_forward.2
= control target key start
LH: loop header
LB: loop body
LE: loop exit
PB: predicated region body
PF: predicated region fallthrough
CT: control target
= control target key end

     0   :  { %v366_v3 = vmov 0.0   ;;  %vm51_vm0 = vcmask 130048   ;;  %v36_v12 = vlaneseq  ;;  %s514_s1 = inlined_call_operand.vmem [shape: f32[16,384], index: 1, kind: input, shape index: {}]   ;;  %s515_s0 = inlined_call_operand.vmem [shape: f32[16,16], index: 0, kind: input, shape index: {}]   ;;  %s516_s2 = inlined_call_operand.vmem [shape: f32[1,384], index: 2, kind: input, shape index: {}]   ;;  %s517_s3 = inlined_call_operand.vmem [shape: f32[1,256], index: 3, kind: input, shape index: {}]   ;;  %s518_s4 = inlined_call_operand.vmem [shape: f32[1,256], index: 4, kind: input, shape index: {}]   ;;  %s519_s7 = inlined_call_operand.vmem [shape: f32[16,384], index: 7, kind: output, shape index: {}]   ;;  %s520_s5 = inlined_call_operand.vmem [shape: f32[1,128], index: 5, kind: input, shape index: {}]   ;;  %s521_s6 = inlined_call_operand.vmem [shape: f32[1,128], index: 6, kind: input, shape index: {}]  }
   0x1   :  { %v29_v0 = vld [vmem:[%s514_s1 + $0x8] sm:$0xff]  ;;  %v32_v1 = vld [vmem:[%s514_s1 + $0x20] sm:$0xff]  ;;  %v30_v2 = vld [vmem:[%s514_s1 + $0x10] sm:$0xff]  ;;  %122 = vmatprep.mubr.f32.mxu0 %v366_v3 }
   0x2   :  { %v349_v4 = vpack.c.bf16 %v32_v1, %v29_v0  ;;  %v33_v5 = vld [vmem:[%s514_s1 + $0x28] sm:$0xff]  ;;  %v28_v6 = vld [vmem:[%s514_s1] sm:$0xff]  ;;  %v31_v7 = vld [vmem:[%s514_s1 + $0x18] sm:$0xff]  ;;  %v37_v13 = vshrl.u32 %v36_v12, 7 }
   0x3   :  { %v353_v8 = vpack.c.bf16 %v33_v5, %v30_v2  ;;  %v351_v9 = vpack.c.bf16 %v31_v7, %v28_v6  ;;  %v26_v10 = vld [vmem:[%s515_s0] sm:$0xff]  ;;  %v27_v11 = vld [vmem:[%s515_s0 + $0x8] sm:$0xff] }
   0x4   :  { %350 = vmatprep.subr.bf16.mxu0 %v349_v4  ;;  %346 = vmatprep.mubr.msk.f32.mxu1 %vm51_vm0, %v26_v10  ;;  %v435_v14 = vsub.s32 0, %v37_v13  ;;  %v34_v15 = vld [vmem:[%s516_s2] sm:$0x7]  ;;  %v46_v16 = vsub.s32 2, %v37_v13  ;;  %v440_v17 = vsub.s32 1, %v37_v13 }
   0x5   :  { %354 = vmatprep.subr.bf16.mxu1 %v353_v8  ;;  %352 = vmatpush1.bf16.msra.mxu0 %v351_v9  ;;  %v210_v6 = vld [vmem:[%s517_s3] sm:$0x3] }
   0x6   :  { %356 = vmatpush3.bf16.msra.mxu1 %v353_v8  ;;  %v39_v18 = vrot.slane %v34_v15, %v435_v14  ;;  %v47_v19 = vrot.slane %v34_v15, %v46_v16  ;;  %v43_v20 = vrot.slane %v34_v15, %v440_v17  ;;  %v211_v8 = vld [vmem:[%s518_s4] sm:$0x3]  ;;  %v256_v12 = vrot.slane %v210_v6, %v440_v17 }
   0x7   :  { %v267_v15 = vrot.slane %v211_v8, %v435_v14  ;;  %v271_v16 = vrot.slane %v211_v8, %v440_v17 }
   0x8   :  { %332 = vmatmul.mubr.msk.f32.vlgmr.msra.gmra.mrb[0].mxu0 %vm51_vm0, %v26_v10 }
   0x9   :  { %347 = vmatmul.mubr.msk.f32.vlgmr.msra.gmra.mrb[0].mxu1 %vm51_vm0, %v27_v11  ;;  %128 = vmatprep.mubr.f32.mxu0 %v366_v3 }
   0xc   :  { %333 = vmatmul.mubr.msk.f32.gmra.mrb[2].mxu0 %vm51_vm0, %v27_v11  ;;  %v252_v11 = vrot.slane %v210_v6, %v435_v14 }
  0xdb   :  { %v124_v21 = vpop.f32.mrb[0].mxu0 }
  0xdc   :  { %v444_v22 = vadd.f32 %v124_v21, %v39_v18  ;;  %v348_v23 = vpop.f32.mrb[0].mxu1  ;;  %v126_v24 = vpop.f32.mrb[1].mxu0 }
  0xdd   :  { %v446_v25 = vadd.f32 %v348_v23, %v47_v19  ;;  %v448_v26 = vadd.f32 %v126_v24, %v43_v20  ;;  %v201_v27 = vpop.f32.mrb[1].mxu1 }
  0xde   :  { %v451_v28 = vadd.f32 %v201_v27, %v47_v19  ;;  %v218_v31 = vmul.f32 %v444_v22, %v444_v22 }
  0xdf   :  { %282 = vadd.xlane.f32.xlu1 %v446_v25  ;;  %v130_v29 = vpop.f32.mrb[2].mxu0  ;;  %v212_v30 = vadd.f32 %v448_v26, %v444_v22  ;;  %v219_v32 = vmul.f32 %v448_v26, %v448_v26  ;;  %v285_v41 = vmul.f32 %v446_v25, %v446_v25 }
  0xe0   :  { %v459_v33 = vadd.f32 %v130_v29, %v39_v18  ;;  %v132_v34 = vpop.f32.mrb[3].mxu0  ;;  %v284_v42 = vmul.f32 %v451_v28, %v451_v28 }
  0xe1   :  { %v461_v35 = vadd.f32 %v132_v34, %v43_v20  ;;  %213 = vadd.xlane.f32.xlu0 %v212_v30  ;;  %v222_v37 = vadd.f32 %v219_v32, %v218_v31  ;;  %v336_v32 = vld [vmem:[%s520_s5] ss:$0 sm:$0xff] }
  0xe2   :  { %v220_v36 = vmul.f32 %v459_v33, %v459_v33 }
  0xe3   :  { %280 = vadd.xlane.f32.xlu1 %v451_v28  ;;  %v221_v38 = vmul.f32 %v461_v35, %v461_v35  ;;  %v215_v40 = vadd.f32 %v461_v35, %v459_v33 }
  0xe5   :  { %223 = vadd.xlane.f32.xlu0 %v222_v37  ;;  %v225_v39 = vadd.f32 %v221_v38, %v220_v36 }
  0xe7   :  { %226 = vadd.xlane.f32.xlu1 %v225_v39 }
  0xe9   :  { %216 = vadd.xlane.f32.xlu0 %v215_v40 }
  0xeb   :  { %288 = vadd.xlane.f32.xlu1 %v285_v41 }
  0xed   :  { %286 = vadd.xlane.f32.xlu0 %v284_v42 }
 0x16c   :  { %v283_v43 = vpop.xlane.xlu1 %282 }
 0x16d   :  { %v291_v56 = vmul.f32 0.0625, %v283_v43 }
 0x16e   :  { %v214_v44 = vpop.xlane.xlu0 %213 }
 0x16f   :  { %v228_v45 = vmul.f32 0.03125, %v214_v44  ;;  %v295_v60 = vmul.f32 %v291_v56, %v291_v56  ;;  %v299_v29 = vsub.f32 %v446_v25, %v291_v56 }
 0x170   :  { %v281_v46 = vpop.xlane.xlu1 %280 }
 0x171   :  { %v232_v48 = vmul.f32 %v228_v45, %v228_v45  ;;  %v290_v53 = vmul.f32 0.0625, %v281_v46  ;;  %v236_v9 = vsub.f32 %v444_v22, %v228_v45  ;;  %v237_v10 = vsub.f32 %v448_v26, %v228_v45 }
 0x172   :  { %v224_v47 = vpop.xlane.xlu0 %223 }
 0x173   :  { %v230_v49 = vmul.f32 0.03125, %v224_v47  ;;  %v294_v63 = vmul.f32 %v290_v53, %v290_v53  ;;  %v298_v31 = vsub.f32 %v451_v28, %v290_v53  ;;  %v337_v28 = vld [vmem:[%s521_s6] ss:$0 sm:$0xff] }
 0x174   :  { %v227_v50 = vpop.xlane.xlu1 %226 }
 0x175   :  { %v234_v51 = vsub.f32 %v230_v49, %v232_v48  ;;  %v231_v58 = vmul.f32 0.03125, %v227_v50 }
 0x176   :  { %v217_v52 = vpop.xlane.xlu0 %216 }
 0x177   :  { %v240_v54 = vadd.f32 1e-05, %v234_v51  ;;  %v229_v55 = vmul.f32 0.03125, %v217_v52 }
 0x178   :  { %v289_v57 = vpop.xlane.xlu1 %288 }
 0x179   :  { %358 = vrsqrt.f32 %v240_v54  ;;  %v233_v59 = vmul.f32 %v229_v55, %v229_v55  ;;  %v293_v61 = vmul.f32 0.0625, %v289_v57  ;;  %v238_v27 = vsub.f32 %v459_v33, %v229_v55 }
 0x17a   :  { %v287_v62 = vpop.xlane.xlu0 %286  ;;  %v239_v22 = vsub.f32 %v461_v35, %v229_v55 }
 0x17b   :  { %v235_v0 = vsub.f32 %v231_v58, %v233_v59  ;;  %v292_v1 = vmul.f32 0.0625, %v287_v62  ;;  %v297_v2 = vsub.f32 %v293_v61, %v295_v60 }
 0x17d   :  { %v241_v3 = vadd.f32 1e-05, %v235_v0  ;;  %v296_v4 = vsub.f32 %v292_v1, %v294_v63  ;;  %v301_v5 = vadd.f32 1e-05, %v297_v2 }
 0x17f   :  { %360 = vrsqrt.f32 %v241_v3  ;;  %v300_v7 = vadd.f32 1e-05, %v296_v4 }
 0x180   :  { %362 = vrsqrt.f32 %v301_v5 }
 0x181   :  { %364 = vrsqrt.f32 %v300_v7 }
 0x183   :  { %v359_v13 = vpop.eup %358 }
 0x184   :  { %v244_v18 = vmul.f32 %v359_v13, %v236_v9  ;;  %v245_v19 = vmul.f32 %v359_v13, %v237_v10 }
 0x186   :  { %v259_v20 = vmul.f32 %v252_v11, %v244_v18  ;;  %v260_v21 = vmul.f32 %v256_v12, %v245_v19 }
 0x188   :  { %v274_v23 = vadd.f32 %v267_v15, %v259_v20  ;;  %v275_v24 = vadd.f32 %v271_v16, %v260_v21 }
 0x189   :  { %v361_v26 = vpop.eup %360 }
 0x18a   :  { %v363_v30 = vpop.eup %362  ;;  %322 = vst [vmem:[%s519_s7] sm:$0xff] %v274_v23  ;;  %323 = vst [vmem:[%s519_s7 + $0x8] sm:$0xff] %v275_v24  ;;  %v246_v14 = vmul.f32 %v361_v26, %v238_v27  ;;  %v247_v17 = vmul.f32 %v361_v26, %v239_v22 }
 0x18b   :  { %v365_v33 = vpop.eup %364  ;;  %v305_v34 = vmul.f32 %v363_v30, %v299_v29 }
 0x18c   :  { %v261_v25 = vmul.f32 %v252_v11, %v246_v14  ;;  %v262_v35 = vmul.f32 %v256_v12, %v247_v17  ;;  %v304_v36 = vmul.f32 %v365_v33, %v298_v31 }
 0x18d   :  { %v313_v37 = vmul.f32 %v336_v32, %v305_v34 }
 0x18e   :  { %v276_v38 = vadd.f32 %v267_v15, %v261_v25  ;;  %v277_v39 = vadd.f32 %v271_v16, %v262_v35  ;;  %v312_v40 = vmul.f32 %v336_v32, %v304_v36 }
 0x18f   :  { %v321_v41 = vadd.f32 %v337_v28, %v313_v37 }
 0x190   :  { %324 = vst [vmem:[%s519_s7 + $0x18] sm:$0xff] %v276_v38  ;;  %325 = vst [vmem:[%s519_s7 + $0x20] sm:$0xff] %v277_v39  ;;  %v320_v42 = vadd.f32 %v337_v28, %v312_v40 }
 0x191   :  { %327 = vst [vmem:[%s519_s7 + $0x28] sm:$0xff] %v321_v41 }
 0x192   :  { %326 = vst [vmem:[%s519_s7 + $0x10] sm:$0xff] %v320_v42 }

// kernel: gru_forward.3
= control target key start
LH: loop header
LB: loop body
LE: loop exit
PB: predicated region body
PF: predicated region fallthrough
CT: control target
= control target key end

     0   :  { %v3604_v3 = vmov 0.0   ;;  %s4716_s1 = inlined_call_operand.vmem [shape: f32[128,384], index: 1, kind: input, shape index: {}]   ;;  %s4717_s2 = inlined_call_operand.vmem [shape: f32[1,384], index: 2, kind: input, shape index: {}]   ;;  %s4718_s3 = inlined_call_operand.vmem [shape: f32[1,256], index: 3, kind: input, shape index: {}]   ;;  %s4719_s4 = inlined_call_operand.vmem [shape: f32[1,256], index: 4, kind: input, shape index: {}]   ;;  %s4720_s0 = inlined_call_operand.vmem [shape: f32[8,16,384], index: 0, kind: input, shape index: {}]   ;;  %s4721_s5 = inlined_call_operand.vmem [shape: f32[1,128], index: 5, kind: input, shape index: {}]   ;;  %s4722_s6 = inlined_call_operand.vmem [shape: f32[1,128], index: 6, kind: input, shape index: {}]   ;;  %s4723_s7 = inlined_call_operand.vmem [shape: f32[8,16,128], index: 7, kind: output, shape index: {}]  }
   0x1   :  { %v33_v0 = vld [vmem:[%s4716_s1 + $0x8] sm:$0xff]  ;;  %v36_v1 = vld [vmem:[%s4716_s1 + $0x20] sm:$0xff]  ;;  %207 = vmatprep.mubr.f32.mxu0 %v3604_v3  ;;  %2615 = vmatprep.mubr.f32.mxu1 %v3604_v3  ;;  %v35_v5 = vld [vmem:[%s4716_s1 + $0x18] sm:$0xff] }
   0x2   :  { %v32_v2 = vld [vmem:[%s4716_s1] sm:$0xff]  ;;  %v3656_v4 = vpack.c.bf16 %v36_v1, %v33_v0  ;;  %v39_v6 = vld [vmem:[%s4716_s1 + $0x38] sm:$0xff]  ;;  %v42_v7 = vld [vmem:[%s4716_s1 + $0x50] sm:$0xff] }
   0x3   :  { %v3667_v8 = vpack.c.bf16 %v35_v5, %v32_v2  ;;  %v3669_v9 = vpack.c.bf16 %v42_v7, %v39_v6  ;;  %v38_v10 = vld [vmem:[%s4716_s1 + $0x30] sm:$0xff]  ;;  %v41_v11 = vld [vmem:[%s4716_s1 + $0x48] sm:$0xff]  ;;  %v48_v13 = vld [vmem:[%s4716_s1 + $0x80] sm:$0xff] }
   0x4   :  { %v45_v12 = vld [vmem:[%s4716_s1 + $0x68] sm:$0xff]  ;;  %2864 = vmatprep.subr.bf16.mxu0 %v3656_v4  ;;  %v3685_v14 = vpack.c.bf16 %v41_v11, %v38_v10  ;;  %v34_v15 = vld [vmem:[%s4716_s1 + $0x10] sm:$0xff]  ;;  %v44_v18 = vld [vmem:[%s4716_s1 + $0x60] sm:$0xff] }
   0x5   :  { %2866 = vmatpush1.bf16.msra.mxu0 %v3667_v8  ;;  %v37_v16 = vld [vmem:[%s4716_s1 + $0x28] sm:$0xff]  ;;  %v3694_v17 = vpack.c.bf16 %v48_v13, %v45_v12  ;;  %v47_v19 = vld [vmem:[%s4716_s1 + $0x78] sm:$0xff]  ;;  %v54_v22 = vld [vmem:[%s4716_s1 + $0xb0] sm:$0xff]  ;;  %v82_v13 = vlaneseq }
   0x6   :  { %2868 = vmatprep.subr.bf16.mxu0 %v3669_v9  ;;  %v3702_v20 = vpack.c.bf16 %v37_v16, %v34_v15  ;;  %v51_v21 = vld [vmem:[%s4716_s1 + $0x98] sm:$0xff]  ;;  %v40_v23 = vld [vmem:[%s4716_s1 + $0x40] sm:$0xff]  ;;  %v3720_v26 = vpack.c.bf16 %v47_v19, %v44_v18  ;;  %v46_v27 = vld [vmem:[%s4716_s1 + $0x70] sm:$0xff] }
   0x7   :  { %v43_v24 = vld [vmem:[%s4716_s1 + $0x58] sm:$0xff]  ;;  %v49_v28 = vld [vmem:[%s4716_s1 + $0x88] sm:$0xff]  ;;  %v3730_v29 = vpack.c.bf16 %v54_v22, %v51_v21  ;;  %v50_v30 = vld [vmem:[%s4716_s1 + $0x90] sm:$0xff]  ;;  %v83_v15 = vshrl.u32 %v82_v13, 7 }
   0x8   :  { %2896 = vmatprep.subr.bf16.mxu1 %v3702_v20  ;;  %v3717_v25 = vpack.c.bf16 %v43_v24, %v40_v23  ;;  %v53_v31 = vld [vmem:[%s4716_s1 + $0xa8] sm:$0xff]  ;;  %v3742_v33 = vpack.c.bf16 %v49_v28, %v46_v27  ;;  %v60_v34 = vld [vmem:[%s4716_s1 + $0xe0] sm:$0xff]  ;;  %v55_v36 = vld [vmem:[%s4716_s1 + $0xb8] sm:$0xff] }
   0x9   :  { %2870 = vmatpush1.bf16.msra.mxu0 %v3685_v14  ;;  %2898 = vmatpush3.bf16.msra.mxu1 %v3702_v20  ;;  %v57_v32 = vld [vmem:[%s4716_s1 + $0xc8] sm:$0xff]  ;;  %v52_v35 = vld [vmem:[%s4716_s1 + $0xa0] sm:$0xff]  ;;  %v3754_v37 = vpack.c.bf16 %v53_v31, %v50_v30  ;;  %v59_v40 = vld [vmem:[%s4716_s1 + $0xd8] sm:$0xff]  ;;  %v3910_v16 = vsub.s32 0, %v83_v15  ;;  %v3915_v19 = vsub.s32 1, %v83_v15  ;;  %v92_v30 = vsub.s32 2, %v83_v15 }
   0xa   :  { %2872 = vmatprep.subr.bf16.mxu0 %v3694_v17  ;;  %2900 = vmatprep.subr.bf16.mxu1 %v3717_v25  ;;  %v3758_v38 = vpack.c.bf16 %v60_v34, %v57_v32  ;;  %v56_v39 = vld [vmem:[%s4716_s1 + $0xc0] sm:$0xff]  ;;  %v63_v41 = vld [vmem:[%s4716_s1 + $0xf8] sm:$0xff]  ;;  %v3770_v42 = vpack.c.bf16 %v55_v36, %v52_v35  ;;  %v66_v43 = vld [vmem:[%s4716_s1 + $0x110] sm:$0xff] }
   0xb   :  { %v58_v44 = vld [vmem:[%s4716_s1 + $0xd0] sm:$0xff]  ;;  %v61_v45 = vld [vmem:[%s4716_s1 + $0xe8] sm:$0xff]  ;;  %v3782_v46 = vpack.c.bf16 %v59_v40, %v56_v39  ;;  %v3786_v47 = vpack.c.bf16 %v66_v43, %v63_v41  ;;  %v72_v52 = vld [vmem:[%s4716_s1 + $0x140] sm:$0xff] }
   0xc   :  { %v62_v48 = vld [vmem:[%s4716_s1 + $0xf0] sm:$0xff]  ;;  %v65_v49 = vld [vmem:[%s4716_s1 + $0x108] sm:$0xff]  ;;  %v3798_v51 = vpack.c.bf16 %v61_v45, %v58_v44  ;;  %v64_v53 = vld [vmem:[%s4716_s1 + $0x100] sm:$0xff] }
   0xd   :  { %2874 = vmatpush1.bf16.msra.mxu0 %v3720_v26  ;;  %2902 = vmatpush3.bf16.msra.mxu1 %v3717_v25  ;;  %v69_v50 = vld [vmem:[%s4716_s1 + $0x128] sm:$0xff]  ;;  %v67_v54 = vld [vmem:[%s4716_s1 + $0x118] sm:$0xff]  ;;  %v3810_v55 = vpack.c.bf16 %v65_v49, %v62_v48  ;;  %v68_v57 = vld [vmem:[%s4716_s1 + $0x120] sm:$0xff] }
   0xe   :  { %2876 = vmatprep.subr.bf16.mxu0 %v3730_v29  ;;  %2904 = vmatprep.subr.bf16.mxu1 %v3742_v33  ;;  %v3814_v56 = vpack.c.bf16 %v72_v52, %v69_v50  ;;  %v71_v58 = vld [vmem:[%s4716_s1 + $0x138] sm:$0xff]  ;;  %v3826_v60 = vpack.c.bf16 %v67_v54, %v64_v53  ;;  %v78_v61 = vld [vmem:[%s4716_s1 + $0x170] sm:$0xff]  ;;  %v73_v63 = vld [vmem:[%s4716_s1 + $0x148] sm:$0xff] }
   0xf   :  { %v75_v59 = vld [vmem:[%s4716_s1 + $0x158] sm:$0xff]  ;;  %v70_v62 = vld [vmem:[%s4716_s1 + $0x130] sm:$0xff]  ;;  %v3838_v0 = vpack.c.bf16 %v71_v58, %v68_v57  ;;  %v77_v5 = vld [vmem:[%s4716_s1 + $0x168] sm:$0xff] }
  0x10   :  { %v3842_v1 = vpack.c.bf16 %v78_v61, %v75_v59  ;;  %v74_v2 = vld [vmem:[%s4716_s1 + $0x150] sm:$0xff]  ;;  %v3851_v6 = vpack.c.bf16 %v73_v63, %v70_v62  ;;  %v76_v7 = vld [vmem:[%s4716_s1 + $0x160] sm:$0xff]  ;;  %v79_v10 = vld [vmem:[%s4716_s1 + $0x178] sm:$0xff] }
  0x11   :  { %2878 = vmatpush1.bf16.msra.mxu0 %v3754_v37  ;;  %2906 = vmatpush3.bf16.msra.mxu1 %v3742_v33  ;;  %v3860_v11 = vpack.c.bf16 %v77_v5, %v74_v2  ;;  %v3865_v12 = vpack.c.bf16 %v79_v10, %v76_v7  ;;  %v80_v18 = vld [vmem:[%s4717_s2] sm:$0x7] }
  0x12   :  { %2880 = vmatprep.subr.bf16.mxu0 %v3758_v38  ;;  %2908 = vmatprep.subr.bf16.mxu1 %v3770_v42  ;;  %v3918_v21 = vrot.slane %v80_v18, %v3910_v16  ;;  %v3921_v22 = vrot.slane %v80_v18, %v3915_v19  ;;  %v3941_v44 = vrot.slane %v80_v18, %v92_v30 }
  0x15   :  { %2882 = vmatpush1.bf16.msra.mxu0 %v3782_v46  ;;  %2910 = vmatpush3.bf16.msra.mxu1 %v3770_v42 }
  0x16   :  { %2884 = vmatprep.subr.bf16.mxu0 %v3786_v47  ;;  %2912 = vmatprep.subr.bf16.mxu1 %v3798_v51 }
  0x19   :  { %2886 = vmatpush1.bf16.msra.mxu0 %v3810_v55  ;;  %2914 = vmatpush3.bf16.msra.mxu1 %v3798_v51 }
  0x1a   :  { %2888 = vmatprep.subr.bf16.mxu0 %v3814_v56  ;;  %2916 = vmatprep.subr.bf16.mxu1 %v3826_v60 }
  0x1d   :  { %2890 = vmatpush1.bf16.msra.mxu0 %v3838_v0  ;;  %2918 = vmatpush3.bf16.msra.mxu1 %v3826_v60 }
  0x1e   :  { %2892 = vmatprep.subr.bf16.mxu0 %v3842_v1  ;;  %2920 = vmatprep.subr.bf16.mxu1 %v3851_v6 }
  0x21   :  { %2894 = vmatpush1.bf16.msra.mxu0 %v3860_v11  ;;  %2922 = vmatpush3.bf16.msra.mxu1 %v3851_v6 }
  0x22   :  { %2924 = vmatprep.subr.bf16.mxu1 %v3865_v12  ;;  %2928 = vmatprep.subr.bf16.mxu0 %v3656_v4 }
  0x24   :  { %208 = vmatmul.mubr.f32.vlgmr.msra.gmra.mrb[0].mxu0 %v3604_v3 }
  0x25   :  { %213 = vmatprep.mubr.f32.mxu0 %v3604_v3  ;;  %2926 = vmatpush3.bf16.msra.mxu1 %v3865_v12 }
  0x26   :  { %2930 = vmatpush1.bf16.msra.mxu0 %v3667_v8  ;;  %2960 = vmatprep.subr.bf16.mxu1 %v3702_v20 }
  0x27   :  { %2932 = vmatprep.subr.bf16.mxu0 %v3669_v9 }
  0x28   :  { %214 = vmatmul.mubr.f32.gmra.mrb[2].mxu0 %v3604_v3  ;;  %2616 = vmatmul.mubr.f32.vlgmr.msra.gmra.mrb[0].mxu1 %v3604_v3 }
  0x29   :  { %2962 = vmatpush3.bf16.msra.mxu1 %v3702_v20  ;;  %482 = vmatprep.mubr.f32.mxu0 %v3604_v3 }
  0x2a   :  { %2934 = vmatpush1.bf16.msra.mxu0 %v3685_v14  ;;  %2964 = vmatprep.subr.bf16.mxu1 %v3717_v25 }
  0x2b   :  { %2936 = vmatprep.subr.bf16.mxu0 %v3694_v17 }
  0x2d   :  { %2966 = vmatpush3.bf16.msra.mxu1 %v3717_v25 }
  0x2e   :  { %2938 = vmatpush1.bf16.msra.mxu0 %v3720_v26  ;;  %2968 = vmatprep.subr.bf16.mxu1 %v3742_v33 }
  0x2f   :  { %2940 = vmatprep.subr.bf16.mxu0 %v3730_v29 }
  0x31   :  { %2970 = vmatpush3.bf16.msra.mxu1 %v3742_v33 }
  0x32   :  { %2942 = vmatpush1.bf16.msra.mxu0 %v3754_v37  ;;  %2972 = vmatprep.subr.bf16.mxu1 %v3770_v42 }
  0x33   :  { %2944 = vmatprep.subr.bf16.mxu0 %v3758_v38 }
  0x35   :  { %2974 = vmatpush3.bf16.msra.mxu1 %v3770_v42 }
  0x36   :  { %2946 = vmatpush1.bf16.msra.mxu0 %v3782_v46  ;;  %2976 = vmatprep.subr.bf16.mxu1 %v3798_v51 }
  0x37   :  { %2948 = vmatprep.subr.bf16.mxu0 %v3786_v47 }
  0x39   :  { %2978 = vmatpush3.bf16.msra.mxu1 %v3798_v51 }
  0x3a   :  { %2950 = vmatpush1.bf16.msra.mxu0 %v3810_v55  ;;  %2980 = vmatprep.subr.bf16.mxu1 %v3826_v60 }
  0x3b   :  { %2952 = vmatprep.subr.bf16.mxu0 %v3814_v56 }
  0x3d   :  { %2982 = vmatpush3.bf16.msra.mxu1 %v3826_v60 }
  0x3e   :  { %2954 = vmatpush1.bf16.msra.mxu0 %v3838_v0  ;;  %2984 = vmatprep.subr.bf16.mxu1 %v3851_v6 }
  0x3f   :  { %2956 = vmatprep.subr.bf16.mxu0 %v3842_v1 }
  0x41   :  { %2986 = vmatpush3.bf16.msra.mxu1 %v3851_v6 }
  0x42   :  { %2958 = vmatpush1.bf16.msra.mxu0 %v3860_v11  ;;  %2988 = vmatprep.subr.bf16.mxu1 %v3865_v12 }
  0x43   :  { %2992 = vmatprep.subr.bf16.mxu0 %v3656_v4 }
  0x45   :  { %2990 = vmatpush3.bf16.msra.mxu1 %v3865_v12 }
  0x46   :  { %3024 = vmatprep.subr.bf16.mxu1 %v3702_v20 }
  0xf7   :  { %v209_v23 = vpop.f32.mrb[0].mxu0 }
  0xf8   :  { %v3924_v24 = vadd.f32 %v209_v23, %v3918_v21  ;;  %v211_v27 = vpop.f32.mrb[1].mxu0 }
  0xf9   :  { %v3927_v28 = vadd.f32 %v211_v27, %v3921_v22 }
  0xfa   :  { %v301_v35 = vmul.f32 %v3924_v24, %v3924_v24 }
  0xfb   :  { %v215_v31 = vpop.f32.mrb[2].mxu0  ;;  %v295_v32 = vadd.f32 %v3927_v28, %v3924_v24  ;;  %v2617_v34 = vpop.f32.mrb[0].mxu1  ;;  %v302_v36 = vmul.f32 %v3927_v28, %v3927_v28 }
  0xfc   :  { %v3936_v39 = vadd.f32 %v215_v31, %v3918_v21  ;;  %v217_v40 = vpop.f32.mrb[3].mxu0  ;;  %v286_v41 = vpop.f32.mrb[1].mxu1  ;;  %v3953_v54 = vadd.f32 %v2617_v34, %v3941_v44  ;;  %v97_v34 = vld [vmem:[%s4718_s3] sm:$0x3] }
  0xfd   :  { %v3939_v43 = vadd.f32 %v217_v40, %v3921_v22  ;;  %296 = vadd.xlane.f32.xlu0 %v295_v32  ;;  %v305_v48 = vadd.f32 %v302_v36, %v301_v35  ;;  %v3950_v52 = vadd.f32 %v286_v41, %v3941_v44  ;;  %v109_v35 = vld [vmem:[%s4719_s4] sm:$0x3]  ;;  %v3968_v40 = vrot.slane %v97_v34, %v3910_v16 }
  0xfe   :  { %v303_v49 = vmul.f32 %v3936_v39, %v3936_v39  ;;  %v344_v58 = vmul.f32 %v3953_v54, %v3953_v54 }
  0xff   :  { %v298_v45 = vadd.f32 %v3939_v43, %v3936_v39  ;;  %v304_v50 = vmul.f32 %v3939_v43, %v3939_v43  ;;  %v343_v57 = vmul.f32 %v3950_v52, %v3950_v52 }
 0x101   :  { %299 = vadd.xlane.f32.xlu1 %v298_v45  ;;  %306 = vadd.xlane.f32.xlu0 %v305_v48  ;;  %v308_v53 = vadd.f32 %v304_v50, %v303_v49 }
 0x105   :  { %309 = vadd.xlane.f32.xlu1 %v308_v53  ;;  %339 = vadd.xlane.f32.xlu0 %v3950_v52  ;;  %v3972_v53 = vrot.slane %v109_v35, %v3910_v16 }
 0x109   :  { %345 = vadd.xlane.f32.xlu1 %v343_v57  ;;  %341 = vadd.xlane.f32.xlu0 %v3953_v54 }
 0x10d   :  { %347 = vadd.xlane.f32.xlu1 %v344_v58 }
 0x18a   :  { %v297_v59 = vpop.xlane.xlu0 %296 }
 0x18b   :  { %v311_v61 = vmul.f32 0.03125, %v297_v59 }
 0x18d   :  { %v315_v5 = vmul.f32 %v311_v61, %v311_v61  ;;  %v319_v41 = vsub.f32 %v3924_v24, %v311_v61  ;;  %v320_v57 = vsub.f32 %v3927_v28, %v311_v61 }
 0x18e   :  { %v300_v62 = vpop.xlane.xlu1 %299  ;;  %v307_v63 = vpop.xlane.xlu0 %306 }
 0x18f   :  { %v312_v2 = vmul.f32 0.03125, %v300_v62  ;;  %v313_v7 = vmul.f32 0.03125, %v307_v63  ;;  %v3976_v63 = vrot.slane %v97_v34, %v3915_v19  ;;  %v140_v34 = vld [vmem:[%s4720_s0 + $0x18] sm:$0xff] }
 0x191   :  { %v317_v10 = vsub.f32 %v313_v7, %v315_v5  ;;  %v316_v18 = vmul.f32 %v312_v2, %v312_v2  ;;  %v321_v5 = vsub.f32 %v3936_v39, %v312_v2  ;;  %v322_v28 = vsub.f32 %v3939_v43, %v312_v2 }
 0x192   :  { %v310_v13 = vpop.xlane.xlu1 %309  ;;  %v340_v31 = vpop.xlane.xlu0 %339 }
 0x193   :  { %v323_v15 = vadd.f32 1e-05, %v317_v10  ;;  %v314_v23 = vmul.f32 0.03125, %v310_v13  ;;  %v349_v36 = vmul.f32 0.0625, %v340_v31  ;;  %v137_v13 = vld [vmem:[%s4720_s0] sm:$0xff] }
 0x195   :  { %3376 = vrsqrt.f32 %v323_v15  ;;  %v318_v27 = vsub.f32 %v314_v23, %v316_v18  ;;  %v353_v49 = vmul.f32 %v349_v36, %v349_v36 }
 0x196   :  { %v346_v32 = vpop.xlane.xlu1 %345  ;;  %v342_v45 = vpop.xlane.xlu0 %341 }
 0x197   :  { %v324_v30 = vadd.f32 1e-05, %v318_v27  ;;  %v351_v50 = vmul.f32 0.0625, %v346_v32  ;;  %v350_v62 = vmul.f32 0.0625, %v342_v45  ;;  %v3986_v27 = vrot.slane %v109_v35, %v3915_v19 }
 0x199   :  { %3378 = vrsqrt.f32 %v324_v30  ;;  %v355_v16 = vsub.f32 %v351_v50, %v353_v49  ;;  %v354_v15 = vmul.f32 %v350_v62, %v350_v62  ;;  %v138_v49 = vld [vmem:[%s4720_s0 + $0x8] sm:$0xff] }
 0x19a   :  { %v348_v59 = vpop.xlane.xlu1 %347 }
 0x19b   :  { %v352_v18 = vmul.f32 0.0625, %v348_v59 }
 0x19d   :  { %v356_v45 = vsub.f32 %v352_v18, %v354_v15  ;;  %v357_v18 = vsub.f32 %v3950_v52, %v349_v36  ;;  %v4014_v52 = vld [vmem:[%s4722_s6] ss:$0 sm:$0xff] }
 0x19f   :  { %v3377_v48 = vpop.eup %3376  ;;  %v360_v50 = vadd.f32 1e-05, %v356_v45 }
 0x1a0   :  { %v327_v58 = vmul.f32 %v3377_v48, %v319_v41  ;;  %v328_v7 = vmul.f32 %v3377_v48, %v320_v57  ;;  %v359_v41 = vadd.f32 1e-05, %v355_v16 }
 0x1a2   :  { %v331_v24 = vmul.f32 %v327_v58, %v3968_v40  ;;  %v332_v39 = vmul.f32 %v328_v7, %v3976_v63 }
 0x1a3   :  { %v3379_v10 = vpop.eup %3378 }
 0x1a4   :  { %v335_v61 = vadd.f32 %v331_v24, %v3972_v53  ;;  %v329_v23 = vmul.f32 %v3379_v10, %v321_v5  ;;  %v330_v31 = vmul.f32 %v3379_v10, %v322_v28  ;;  %v336_v2 = vadd.f32 %v332_v39, %v3986_v27  ;;  %v141_v5 = vld [vmem:[%s4720_s0 + $0x20] sm:$0xff] }
 0x1a6   :  { %v369_v30 = vadd.f32 %v335_v61, %v137_v13  ;;  %v333_v32 = vmul.f32 %v329_v23, %v3968_v40  ;;  %v334_v19 = vmul.f32 %v330_v31, %v3976_v63  ;;  %v370_v58 = vadd.f32 %v336_v2, %v138_v49 }
 0x1a7   :  { %v358_v31 = vsub.f32 %v3953_v54, %v350_v62 }
 0x1a8   :  { %v2351_v48 = vmul.f32 -1.442695, %v369_v30  ;;  %v337_v43 = vadd.f32 %v333_v32, %v3972_v53  ;;  %v338_v59 = vadd.f32 %v334_v19, %v3986_v27  ;;  %v2352_v7 = vmul.f32 -1.442695, %v370_v58  ;;  %v4007_v30 = vld [vmem:[%s4721_s5] ss:$0 sm:$0xff] }
 0x1aa   :  { %3380 = vpow2.f32 %v2351_v48  ;;  %v371_v35 = vadd.f32 %v337_v43, %v140_v34  ;;  %v372_v24 = vadd.f32 %v338_v59, %v141_v5  ;;  %v139_v43 = vld [vmem:[%s4720_s0 + $0x10] sm:$0xff] }
 0x1ab   :  { %3382 = vrsqrt.f32 %v359_v41 }
 0x1ac   :  { %v2353_v57 = vmul.f32 -1.442695, %v371_v35  ;;  %v2354_v15 = vmul.f32 -1.442695, %v372_v24 }
 0x1ae   :  { %3384 = vpow2.f32 %v2353_v57 }
 0x1af   :  { %3386 = vrsqrt.f32 %v360_v50  ;;  %v142_v50 = vld [vmem:[%s4720_s0 + $0x28] sm:$0xff] }
 0x1b0   :  { %3388 = vpow2.f32 %v2352_v7 }
 0x1b4   :  { %v3381_v10 = vpop.eup %3380 }
 0x1b5   :  { %v3383_v13 = vpop.eup %3382  ;;  %v385_v16 = vadd.f32 1.0, %v3381_v10 }
 0x1b6   :  { %v363_v61 = vmul.f32 %v3383_v13, %v357_v18 }
 0x1b7   :  { %3390 = vrcp.f32 %v385_v16 }
 0x1b8   :  { %v3385_v28 = vpop.eup %3384  ;;  %3392 = vpow2.f32 %v2354_v15  ;;  %v365_v32 = vmul.f32 %v4007_v30, %v363_v61 }
 0x1b9   :  { %v3387_v23 = vpop.eup %3386  ;;  %v387_v39 = vadd.f32 1.0, %v3385_v28 }
 0x1ba   :  { %v364_v34 = vmul.f32 %v3387_v23, %v358_v31  ;;  %v3389_v36 = vpop.eup %3388  ;;  %v367_v41 = vadd.f32 %v4014_v52, %v365_v32 }
 0x1bb   :  { %3394 = vrcp.f32 %v387_v39  ;;  %v386_v2 = vadd.f32 1.0, %v3389_v36 }
 0x1bc   :  { %v366_v45 = vmul.f32 %v4007_v30, %v364_v34 }
 0x1be   :  { %v368_v35 = vadd.f32 %v4014_v52, %v366_v45 }
 0x1c1   :  { %v3391_v48 = vpop.eup %3390 }
 0x1c2   :  { %v397_v54 = vmul.f32 %v3391_v48, %v367_v41  ;;  %v3393_v62 = vpop.eup %3392 }
 0x1c3   :  { %v388_v58 = vadd.f32 1.0, %v3393_v62 }
 0x1c4   :  { %v399_v19 = vadd.f32 %v397_v54, %v139_v43 }
 0x1c5   :  { %v3395_v49 = vpop.eup %3394 }
 0x1c6   :  { %v398_v57 = vmul.f32 %v3395_v49, %v368_v35  ;;  %3396 = vtanh.f32 %v399_v19 }
 0x1c7   :  { %3398 = vrcp.f32 %v386_v2 }
 0x1c8   :  { %v400_v59 = vadd.f32 %v398_v57, %v142_v50 }
 0x1ca   :  { %3400 = vtanh.f32 %v400_v59 }
 0x1cb   :  { %3402 = vrcp.f32 %v388_v58 }
 0x1d0   :  { %v3397_v5 = vpop.eup %3396 }
 0x1d1   :  { %v403_v7 = vsub.f32 0.0, %v3397_v5  ;;  %v3399_v24 = vpop.eup %3398 }
 0x1d3   :  { %v405_v10 = vmul.f32 %v3399_v24, %v403_v7 }
 0x1d4   :  { %v3401_v13 = vpop.eup %3400 }
 0x1d5   :  { %v4025_v16 = vadd.f32 %v3397_v5, %v405_v10  ;;  %v404_v15 = vsub.f32 0.0, %v3401_v13  ;;  %v3403_v18 = vpop.eup %3402 }
 0x1d7   :  { %409 = vst [vmem:[%s4723_s7] sm:$0xff] %v4025_v16  ;;  %483 = vmatmul.mubr.f32.vlgmr.msra.gmra.mrb[4].mxu0 %v4025_v16  ;;  %2650 = vmatprep.mubr.f32.mxu1 %v4025_v16  ;;  %v406_v28 = vmul.f32 %v3403_v18, %v404_v15 }
 0x1d8   :  { %488 = vmatprep.mubr.f32.mxu0 %v3604_v3  ;;  %2994 = vmatpush1.bf16.msra.mxu0 %v3667_v8 }
 0x1d9   :  { %v4035_v61 = vadd.f32 %v3401_v13, %v406_v28  ;;  %2996 = vmatprep.subr.bf16.mxu0 %v3669_v9 }
 0x1db   :  { %410 = vst [vmem:[%s4723_s7 + $0x8] sm:$0xff] %v4035_v61  ;;  %489 = vmatmul.mubr.f32.gmra.mrb[6].mxu0 %v4035_v61  ;;  %2651 = vmatmul.mubr.f32.vlgmr.msra.gmra.mrb[2].mxu1 %v4035_v61 }
 0x1dc   :  { %2998 = vmatpush1.bf16.msra.mxu0 %v3685_v14  ;;  %3026 = vmatpush3.bf16.msra.mxu1 %v3702_v20 }
 0x1dd   :  { %3000 = vmatprep.subr.bf16.mxu0 %v3694_v17  ;;  %3028 = vmatprep.subr.bf16.mxu1 %v3717_v25 }
 0x1de   :  { %758 = vmatprep.mubr.f32.mxu0 %v3604_v3 }
 0x1e0   :  { %3002 = vmatpush1.bf16.msra.mxu0 %v3720_v26  ;;  %3030 = vmatpush3.bf16.msra.mxu1 %v3717_v25 }
 0x1e1   :  { %3004 = vmatprep.subr.bf16.mxu0 %v3730_v29  ;;  %3032 = vmatprep.subr.bf16.mxu1 %v3742_v33 }
 0x1e4   :  { %3006 = vmatpush1.bf16.msra.mxu0 %v3754_v37  ;;  %3034 = vmatpush3.bf16.msra.mxu1 %v3742_v33 }
 0x1e5   :  { %3008 = vmatprep.subr.bf16.mxu0 %v3758_v38  ;;  %3036 = vmatprep.subr.bf16.mxu1 %v3770_v42 }
 0x1e8   :  { %3010 = vmatpush1.bf16.msra.mxu0 %v3782_v46  ;;  %3038 = vmatpush3.bf16.msra.mxu1 %v3770_v42 }
 0x1e9   :  { %3012 = vmatprep.subr.bf16.mxu0 %v3786_v47  ;;  %3040 = vmatprep.subr.bf16.mxu1 %v3798_v51 }
 0x1ec   :  { %3014 = vmatpush1.bf16.msra.mxu0 %v3810_v55  ;;  %3042 = vmatpush3.bf16.msra.mxu1 %v3798_v51 }
 0x1ed   :  { %3016 = vmatprep.subr.bf16.mxu0 %v3814_v56  ;;  %3044 = vmatprep.subr.bf16.mxu1 %v3826_v60 }
 0x1f0   :  { %3018 = vmatpush1.bf16.msra.mxu0 %v3838_v0  ;;  %3046 = vmatpush3.bf16.msra.mxu1 %v3826_v60 }
 0x1f1   :  { %3020 = vmatprep.subr.bf16.mxu0 %v3842_v1  ;;  %3048 = vmatprep.subr.bf16.mxu1 %v3851_v6 }
 0x1f4   :  { %3022 = vmatpush1.bf16.msra.mxu0 %v3860_v11  ;;  %3050 = vmatpush3.bf16.msra.mxu1 %v3851_v6 }
 0x1f5   :  { %3052 = vmatprep.subr.bf16.mxu1 %v3865_v12  ;;  %3056 = vmatprep.subr.bf16.mxu0 %v3656_v4 }
 0x1f8   :  { %3054 = vmatpush3.bf16.msra.mxu1 %v3865_v12 }
 0x1f9   :  { %3088 = vmatprep.subr.bf16.mxu1 %v3702_v20 }
 0x2aa   :  { %v484_v23 = vpop.f32.mrb[4].mxu0 }
 0x2ab   :  { %v485_v39 = vadd.f32 %v484_v23, %v3918_v21  ;;  %v486_v31 = vpop.f32.mrb[5].mxu0 }
 0x2ac   :  { %v487_v32 = vadd.f32 %v486_v31, %v3921_v22 }
 0x2ad   :  { %v576_v34 = vmul.f32 %v485_v39, %v485_v39 }
 0x2ae   :  { %v490_v36 = vpop.f32.mrb[6].mxu0  ;;  %v2652_v41 = vpop.f32.mrb[2].mxu1  ;;  %v570_v45 = vadd.f32 %v487_v32, %v485_v39  ;;  %v577_v48 = vmul.f32 %v487_v32, %v487_v32 }
 0x2af   :  { %v491_v43 = vadd.f32 %v490_v36, %v3918_v21  ;;  %v492_v54 = vpop.f32.mrb[7].mxu0  ;;  %v561_v62 = vpop.f32.mrb[3].mxu1  ;;  %v4083_v59 = vadd.f32 %v2652_v41, %v3941_v44 }
 0x2b0   :  { %v493_v2 = vadd.f32 %v492_v54, %v3921_v22  ;;  %571 = vadd.xlane.f32.xlu0 %v570_v45  ;;  %v580_v19 = vadd.f32 %v577_v48, %v576_v34  ;;  %v4080_v57 = vadd.f32 %v561_v62, %v3941_v44 }
 0x2b1   :  { %v578_v35 = vmul.f32 %v491_v43, %v491_v43  ;;  %v619_v7 = vmul.f32 %v4083_v59, %v4083_v59 }
 0x2b2   :  { %581 = vadd.xlane.f32.xlu1 %v580_v19  ;;  %v573_v49 = vadd.f32 %v493_v2, %v491_v43  ;;  %v579_v50 = vmul.f32 %v493_v2, %v493_v2  ;;  %v618_v5 = vmul.f32 %v4080_v57, %v4080_v57 }
 0x2b4   :  { %574 = vadd.xlane.f32.xlu0 %v573_v49  ;;  %v583_v58 = vadd.f32 %v579_v50, %v578_v35 }
 0x2b6   :  { %584 = vadd.xlane.f32.xlu1 %v583_v58 }
 0x2b8   :  { %614 = vadd.xlane.f32.xlu0 %v4080_v57 }
 0x2ba   :  { %620 = vadd.xlane.f32.xlu1 %v618_v5 }
 0x2bc   :  { %616 = vadd.xlane.f32.xlu0 %v4083_v59 }
 0x2be   :  { %622 = vadd.xlane.f32.xlu1 %v619_v7 }
 0x33d   :  { %v572_v24 = vpop.xlane.xlu0 %571 }
 0x33e   :  { %v586_v10 = vmul.f32 0.03125, %v572_v24 }
 0x33f   :  { %v582_v13 = vpop.xlane.xlu1 %581 }
 0x340   :  { %v588_v15 = vmul.f32 0.03125, %v582_v13  ;;  %v590_v18 = vmul.f32 %v586_v10, %v586_v10  ;;  %v594_v50 = vsub.f32 %v485_v39, %v586_v10  ;;  %v595_v24 = vsub.f32 %v487_v32, %v586_v10 }
 0x341   :  { %v575_v28 = vpop.xlane.xlu0 %574 }
 0x342   :  { %v592_v23 = vsub.f32 %v588_v15, %v590_v18  ;;  %v587_v31 = vmul.f32 0.03125, %v575_v28 }
 0x343   :  { %v585_v34 = vpop.xlane.xlu1 %584 }
 0x344   :  { %v598_v36 = vadd.f32 1e-05, %v592_v23  ;;  %v589_v41 = vmul.f32 0.03125, %v585_v34  ;;  %v591_v45 = vmul.f32 %v587_v31, %v587_v31  ;;  %v2355_v34 = vld [vmem:[%s4720_s0 + $0x30] sm:$0xff] }
 0x345   :  { %v615_v54 = vpop.xlane.xlu0 %614 }
 0x346   :  { %3404 = vrsqrt.f32 %v598_v36  ;;  %v593_v48 = vsub.f32 %v589_v41, %v591_v45  ;;  %v624_v19 = vmul.f32 0.0625, %v615_v54  ;;  %v596_v36 = vsub.f32 %v491_v43, %v587_v31  ;;  %v2358_v43 = vld [vmem:[%s4720_s0 + $0x48] sm:$0xff] }
 0x347   :  { %v621_v35 = vpop.xlane.xlu1 %620 }
 0x348   :  { %v599_v62 = vadd.f32 1e-05, %v593_v48  ;;  %v628_v5 = vmul.f32 %v624_v19, %v624_v19  ;;  %v626_v7 = vmul.f32 0.0625, %v621_v35 }
 0x349   :  { %v617_v49 = vpop.xlane.xlu0 %616 }
 0x34a   :  { %3406 = vrsqrt.f32 %v599_v62  ;;  %v625_v15 = vmul.f32 0.0625, %v617_v49  ;;  %v630_v41 = vsub.f32 %v626_v7, %v628_v5  ;;  %v597_v62 = vsub.f32 %v493_v2, %v587_v31  ;;  %v2356_v2 = vld [vmem:[%s4720_s0 + $0x38] sm:$0xff] }
 0x34b   :  { %v623_v18 = vpop.xlane.xlu1 %622 }
 0x34c   :  { %v629_v39 = vmul.f32 %v625_v15, %v625_v15  ;;  %v627_v54 = vmul.f32 0.0625, %v623_v18 }
 0x34e   :  { %v631_v5 = vsub.f32 %v627_v54, %v629_v39 }
 0x350   :  { %v3405_v58 = vpop.eup %3404 }
 0x351   :  { %v602_v13 = vmul.f32 %v3405_v58, %v594_v50  ;;  %v603_v28 = vmul.f32 %v3405_v58, %v595_v24  ;;  %v634_v58 = vadd.f32 1e-05, %v630_v41  ;;  %v2359_v41 = vld [vmem:[%s4720_s0 + $0x50] sm:$0xff] }
 0x353   :  { %v606_v23 = vmul.f32 %v602_v13, %v3968_v40  ;;  %v607_v32 = vmul.f32 %v603_v28, %v3976_v63  ;;  %v635_v28 = vadd.f32 1e-05, %v631_v5 }
 0x354   :  { %v3407_v45 = vpop.eup %3406 }
 0x355   :  { %v610_v48 = vadd.f32 %v606_v23, %v3972_v53  ;;  %v604_v35 = vmul.f32 %v3407_v45, %v596_v36  ;;  %v605_v49 = vmul.f32 %v3407_v45, %v597_v62  ;;  %v611_v13 = vadd.f32 %v607_v32, %v3986_v27 }
 0x357   :  { %v644_v10 = vadd.f32 %v2355_v34, %v610_v48  ;;  %v608_v50 = vmul.f32 %v604_v35, %v3968_v40  ;;  %v609_v31 = vmul.f32 %v605_v49, %v3976_v63  ;;  %v645_v34 = vadd.f32 %v2356_v2, %v611_v13 }
 0x358   :  { %v632_v35 = vsub.f32 %v4080_v57, %v624_v19  ;;  %v2357_v57 = vld [vmem:[%s4720_s0 + $0x40] sm:$0xff] }
 0x359   :  { %v2361_v24 = vmul.f32 -1.442695, %v644_v10  ;;  %v612_v7 = vadd.f32 %v608_v50, %v3972_v53  ;;  %v613_v36 = vadd.f32 %v609_v31, %v3986_v27  ;;  %v2362_v45 = vmul.f32 -1.442695, %v645_v34  ;;  %v2360_v34 = vld [vmem:[%s4720_s0 + $0x58] sm:$0xff] }
 0x35b   :  { %3408 = vpow2.f32 %v2361_v24  ;;  %v646_v18 = vadd.f32 %v2358_v43, %v612_v7  ;;  %v647_v48 = vadd.f32 %v2359_v41, %v613_v36  ;;  %v633_v24 = vsub.f32 %v4083_v59, %v625_v15 }
 0x35c   :  { %3410 = vrsqrt.f32 %v634_v58 }
 0x35d   :  { %v2363_v23 = vmul.f32 -1.442695, %v646_v18  ;;  %v2364_v32 = vmul.f32 -1.442695, %v647_v48 }
 0x35f   :  { %3412 = vpow2.f32 %v2363_v23 }
 0x360   :  { %3414 = vrsqrt.f32 %v635_v28 }
 0x361   :  { %3416 = vpow2.f32 %v2362_v45 }
 0x365   :  { %v3409_v39 = vpop.eup %3408 }
 0x366   :  { %v3411_v54 = vpop.eup %3410  ;;  %v660_v62 = vadd.f32 1.0, %v3409_v39 }
 0x367   :  { %v638_v10 = vmul.f32 %v3411_v54, %v632_v35 }
 0x368   :  { %3418 = vrcp.f32 %v660_v62 }
 0x369   :  { %v3413_v49 = vpop.eup %3412  ;;  %3420 = vpow2.f32 %v2364_v32  ;;  %v640_v43 = vmul.f32 %v4007_v30, %v638_v10 }
 0x36a   :  { %v3415_v50 = vpop.eup %3414  ;;  %v662_v58 = vadd.f32 1.0, %v3413_v49 }
 0x36b   :  { %v639_v5 = vmul.f32 %v3415_v50, %v633_v24  ;;  %v3417_v7 = vpop.eup %3416  ;;  %v642_v13 = vadd.f32 %v4014_v52, %v640_v43 }
 0x36c   :  { %3422 = vrcp.f32 %v662_v58  ;;  %v661_v18 = vadd.f32 1.0, %v3417_v7 }
 0x36d   :  { %v641_v19 = vmul.f32 %v4007_v30, %v639_v5 }
 0x36f   :  { %v643_v59 = vadd.f32 %v4014_v52, %v641_v19 }
 0x372   :  { %v3419_v2 = vpop.eup %3418 }
 0x373   :  { %v672_v31 = vmul.f32 %v3419_v2, %v642_v13  ;;  %v3421_v23 = vpop.eup %3420 }
 0x374   :  { %v663_v41 = vadd.f32 1.0, %v3421_v23 }
 0x375   :  { %v674_v28 = vadd.f32 %v2357_v57, %v672_v31 }
 0x376   :  { %v3423_v15 = vpop.eup %3422 }
 0x377   :  { %3424 = vtanh.f32 %v674_v28  ;;  %v673_v36 = vmul.f32 %v3423_v15, %v643_v59 }
 0x378   :  { %3426 = vrcp.f32 %v661_v18 }
 0x379   :  { %v675_v45 = vadd.f32 %v2360_v34, %v673_v36 }
 0x37b   :  { %3428 = vtanh.f32 %v675_v45 }
 0x37c   :  { %3430 = vrcp.f32 %v663_v41 }
 0x381   :  { %v3425_v48 = vpop.eup %3424 }
 0x382   :  { %v678_v39 = vsub.f32 %v4025_v16, %v3425_v48  ;;  %v3427_v54 = vpop.eup %3426 }
 0x384   :  { %v680_v62 = vmul.f32 %v3427_v54, %v678_v39 }
 0x385   :  { %v3429_v35 = vpop.eup %3428 }
 0x386   :  { %v4124_v32 = vadd.f32 %v3425_v48, %v680_v62  ;;  %v679_v10 = vsub.f32 %v4035_v61, %v3429_v35  ;;  %v3431_v49 = vpop.eup %3430 }
 0x388   :  { %2365 = vst [vmem:[%s4723_s7 + $0x10] sm:$0xff] %v4124_v32  ;;  %759 = vmatmul.mubr.f32.vlgmr.msra.gmra.mrb[8].mxu0 %v4124_v32  ;;  %2685 = vmatprep.mubr.f32.mxu1 %v4124_v32  ;;  %v681_v16 = vmul.f32 %v3431_v49, %v679_v10 }
 0x389   :  { %764 = vmatprep.mubr.f32.mxu0 %v3604_v3  ;;  %3058 = vmatpush1.bf16.msra.mxu0 %v3667_v8 }
 0x38a   :  { %3060 = vmatprep.subr.bf16.mxu0 %v3669_v9  ;;  %v4136_v50 = vadd.f32 %v3429_v35, %v681_v16 }
 0x38c   :  { %2366 = vst [vmem:[%s4723_s7 + $0x18] sm:$0xff] %v4136_v50  ;;  %765 = vmatmul.mubr.f32.gmra.mrb[10].mxu0 %v4136_v50  ;;  %2686 = vmatmul.mubr.f32.vlgmr.msra.gmra.mrb[4].mxu1 %v4136_v50 }
 0x38d   :  { %3062 = vmatpush1.bf16.msra.mxu0 %v3685_v14  ;;  %3090 = vmatpush3.bf16.msra.mxu1 %v3702_v20 }
 0x38e   :  { %3064 = vmatprep.subr.bf16.mxu0 %v3694_v17  ;;  %3092 = vmatprep.subr.bf16.mxu1 %v3717_v25 }
 0x38f   :  { %1034 = vmatprep.mubr.f32.mxu0 %v3604_v3 }
 0x391   :  { %3066 = vmatpush1.bf16.msra.mxu0 %v3720_v26  ;;  %3094 = vmatpush3.bf16.msra.mxu1 %v3717_v25 }
 0x392   :  { %3068 = vmatprep.subr.bf16.mxu0 %v3730_v29  ;;  %3096 = vmatprep.subr.bf16.mxu1 %v3742_v33 }
 0x395   :  { %3070 = vmatpush1.bf16.msra.mxu0 %v3754_v37  ;;  %3098 = vmatpush3.bf16.msra.mxu1 %v3742_v33 }
 0x396   :  { %3072 = vmatprep.subr.bf16.mxu0 %v3758_v38  ;;  %3100 = vmatprep.subr.bf16.mxu1 %v3770_v42 }
 0x399   :  { %3074 = vmatpush1.bf16.msra.mxu0 %v3782_v46  ;;  %3102 = vmatpush3.bf16.msra.mxu1 %v3770_v42 }
 0x39a   :  { %3076 = vmatprep.subr.bf16.mxu0 %v3786_v47  ;;  %3104 = vmatprep.subr.bf16.mxu1 %v3798_v51 }
 0x39d   :  { %3078 = vmatpush1.bf16.msra.mxu0 %v3810_v55  ;;  %3106 = vmatpush3.bf16.msra.mxu1 %v3798_v51 }
 0x39e   :  { %3080 = vmatprep.subr.bf16.mxu0 %v3814_v56  ;;  %3108 = vmatprep.subr.bf16.mxu1 %v3826_v60 }
 0x3a1   :  { %3082 = vmatpush1.bf16.msra.mxu0 %v3838_v0  ;;  %3110 = vmatpush3.bf16.msra.mxu1 %v3826_v60 }
 0x3a2   :  { %3084 = vmatprep.subr.bf16.mxu0 %v3842_v1  ;;  %3112 = vmatprep.subr.bf16.mxu1 %v3851_v6 }
 0x3a5   :  { %3086 = vmatpush1.bf16.msra.mxu0 %v3860_v11  ;;  %3114 = vmatpush3.bf16.msra.mxu1 %v3851_v6 }
 0x3a6   :  { %3116 = vmatprep.subr.bf16.mxu1 %v3865_v12  ;;  %3120 = vmatprep.subr.bf16.mxu0 %v3656_v4 }
 0x3a9   :  { %3118 = vmatpush3.bf16.msra.mxu1 %v3865_v12 }
 0x3aa   :  { %3152 = vmatprep.subr.bf16.mxu1 %v3702_v20 }
 0x45b   :  { %v760_v61 = vpop.f32.mrb[8].mxu0 }
 0x45c   :  { %v761_v58 = vadd.f32 %v760_v61, %v3918_v21  ;;  %v762_v24 = vpop.f32.mrb[9].mxu0 }
 0x45d   :  { %v763_v43 = vadd.f32 %v762_v24, %v3921_v22 }
 0x45e   :  { %v852_v5 = vmul.f32 %v761_v58, %v761_v58 }
 0x45f   :  { %v846_v7 = vadd.f32 %v763_v43, %v761_v58  ;;  %v853_v13 = vmul.f32 %v763_v43, %v763_v43  ;;  %v766_v2 = vpop.f32.mrb[10].mxu0  ;;  %v2687_v57 = vpop.f32.mrb[4].mxu1 }
 0x460   :  { %v767_v19 = vadd.f32 %v766_v2, %v3918_v21  ;;  %v768_v31 = vpop.f32.mrb[11].mxu0  ;;  %v837_v18 = vpop.f32.mrb[5].mxu1  ;;  %v4183_v45 = vadd.f32 %v2687_v57, %v3941_v44 }
 0x461   :  { %847 = vadd.xlane.f32.xlu0 %v846_v7  ;;  %v856_v28 = vadd.f32 %v853_v13, %v852_v5  ;;  %v769_v23 = vadd.f32 %v768_v31, %v3921_v22  ;;  %v4180_v36 = vadd.f32 %v837_v18, %v3941_v44 }
 0x462   :  { %v854_v59 = vmul.f32 %v767_v19, %v767_v19  ;;  %v895_v39 = vmul.f32 %v4183_v45, %v4183_v45 }
 0x463   :  { %857 = vadd.xlane.f32.xlu1 %v856_v28  ;;  %v849_v15 = vadd.f32 %v769_v23, %v767_v19  ;;  %v855_v34 = vmul.f32 %v769_v23, %v769_v23  ;;  %v894_v48 = vmul.f32 %v4180_v36, %v4180_v36 }
 0x465   :  { %850 = vadd.xlane.f32.xlu0 %v849_v15  ;;  %v859_v41 = vadd.f32 %v855_v34, %v854_v59 }
 0x467   :  { %860 = vadd.xlane.f32.xlu1 %v859_v41 }
 0x469   :  { %890 = vadd.xlane.f32.xlu0 %v4180_v36 }
 0x46b   :  { %896 = vadd.xlane.f32.xlu1 %v894_v48 }
 0x46d   :  { %892 = vadd.xlane.f32.xlu0 %v4183_v45 }
 0x46f   :  { %898 = vadd.xlane.f32.xlu1 %v895_v39 }
 0x4ee   :  { %v848_v54 = vpop.xlane.xlu0 %847 }
 0x4ef   :  { %v862_v62 = vmul.f32 0.03125, %v848_v54 }
 0x4f0   :  { %v858_v35 = vpop.xlane.xlu1 %857 }
 0x4f1   :  { %v864_v10 = vmul.f32 0.03125, %v858_v35  ;;  %v866_v49 = vmul.f32 %v862_v62, %v862_v62  ;;  %v870_v34 = vsub.f32 %v761_v58, %v862_v62  ;;  %v871_v54 = vsub.f32 %v763_v43, %v862_v62 }
 0x4f2   :  { %v851_v61 = vpop.xlane.xlu0 %850 }
 0x4f3   :  { %v868_v16 = vsub.f32 %v864_v10, %v866_v49  ;;  %v863_v24 = vmul.f32 0.03125, %v851_v61 }
 0x4f4   :  { %v861_v7 = vpop.xlane.xlu1 %860 }
 0x4f5   :  { %v874_v5 = vadd.f32 1e-05, %v868_v16  ;;  %v865_v13 = vmul.f32 0.03125, %v861_v7  ;;  %v867_v2 = vmul.f32 %v863_v24, %v863_v24  ;;  %v872_v7 = vsub.f32 %v767_v19, %v863_v24  ;;  %v2370_v19 = vld [vmem:[%s4720_s0 + $0x78] sm:$0xff] }
 0x4f6   :  { %v891_v31 = vpop.xlane.xlu0 %890 }
 0x4f7   :  { %3432 = vrsqrt.f32 %v874_v5  ;;  %v869_v57 = vsub.f32 %v865_v13, %v867_v2  ;;  %v900_v28 = vmul.f32 0.0625, %v891_v31  ;;  %v2367_v5 = vld [vmem:[%s4720_s0 + $0x60] sm:$0xff] }
 0x4f8   :  { %v897_v59 = vpop.xlane.xlu1 %896 }
 0x4f9   :  { %v875_v18 = vadd.f32 1e-05, %v869_v57  ;;  %v904_v48 = vmul.f32 %v900_v28, %v900_v28  ;;  %v902_v39 = vmul.f32 0.0625, %v897_v59 }
 0x4fa   :  { %v893_v15 = vpop.xlane.xlu0 %892 }
 0x4fb   :  { %3434 = vrsqrt.f32 %v875_v18  ;;  %v901_v10 = vmul.f32 0.0625, %v893_v15  ;;  %v906_v13 = vsub.f32 %v902_v39, %v904_v48  ;;  %v873_v18 = vsub.f32 %v769_v23, %v863_v24  ;;  %v2368_v23 = vld [vmem:[%s4720_s0 + $0x68] sm:$0xff] }
 0x4fc   :  { %v899_v49 = vpop.xlane.xlu1 %898 }
 0x4fd   :  { %v905_v58 = vmul.f32 %v901_v10, %v901_v10  ;;  %v903_v31 = vmul.f32 0.0625, %v899_v49 }
 0x4ff   :  { %v907_v48 = vsub.f32 %v903_v31, %v905_v58 }
 0x501   :  { %v3433_v41 = vpop.eup %3432 }
 0x502   :  { %v878_v35 = vmul.f32 %v3433_v41, %v870_v34  ;;  %v879_v16 = vmul.f32 %v3433_v41, %v871_v54  ;;  %v910_v41 = vadd.f32 1e-05, %v906_v13  ;;  %v2371_v13 = vld [vmem:[%s4720_s0 + $0x80] sm:$0xff] }
 0x504   :  { %v882_v61 = vmul.f32 %v878_v35, %v3968_v40  ;;  %v883_v43 = vmul.f32 %v879_v16, %v3976_v63  ;;  %v911_v16 = vadd.f32 1e-05, %v907_v48 }
 0x505   :  { %v3435_v2 = vpop.eup %3434 }
 0x506   :  { %v886_v57 = vadd.f32 %v882_v61, %v3972_v53  ;;  %v880_v59 = vmul.f32 %v3435_v2, %v872_v7  ;;  %v881_v15 = vmul.f32 %v3435_v2, %v873_v18  ;;  %v887_v35 = vadd.f32 %v883_v43, %v3986_v27 }
 0x508   :  { %v920_v62 = vadd.f32 %v2367_v5, %v886_v57  ;;  %v884_v34 = vmul.f32 %v880_v59, %v3968_v40  ;;  %v885_v24 = vmul.f32 %v881_v15, %v3976_v63  ;;  %v921_v5 = vadd.f32 %v2368_v23, %v887_v35 }
 0x509   :  { %v908_v59 = vsub.f32 %v4180_v36, %v900_v28  ;;  %v2369_v36 = vld [vmem:[%s4720_s0 + $0x70] sm:$0xff] }
 0x50a   :  { %v2373_v54 = vmul.f32 -1.442695, %v920_v62  ;;  %v888_v39 = vadd.f32 %v884_v34, %v3972_v53  ;;  %v889_v7 = vadd.f32 %v885_v24, %v3986_v27  ;;  %v2374_v2 = vmul.f32 -1.442695, %v921_v5  ;;  %v2372_v5 = vld [vmem:[%s4720_s0 + $0x88] sm:$0xff] }
 0x50c   :  { %3436 = vpow2.f32 %v2373_v54  ;;  %v922_v49 = vadd.f32 %v2370_v19, %v888_v39  ;;  %v923_v57 = vadd.f32 %v2371_v13, %v889_v7  ;;  %v909_v54 = vsub.f32 %v4183_v45, %v901_v10 }
 0x50d   :  { %3438 = vrsqrt.f32 %v910_v41 }
 0x50e   :  { %v2375_v61 = vmul.f32 -1.442695, %v922_v49  ;;  %v2376_v43 = vmul.f32 -1.442695, %v923_v57 }
 0x510   :  { %3440 = vpow2.f32 %v2375_v61 }
 0x511   :  { %3442 = vrsqrt.f32 %v911_v16 }
 0x512   :  { %3444 = vpow2.f32 %v2374_v2 }
 0x516   :  { %v3437_v58 = vpop.eup %3436 }
 0x517   :  { %v3439_v31 = vpop.eup %3438  ;;  %v936_v18 = vadd.f32 1.0, %v3437_v58 }
 0x518   :  { %v914_v62 = vmul.f32 %v3439_v31, %v908_v59 }
 0x519   :  { %3446 = vrcp.f32 %v936_v18 }
 0x51a   :  { %v3441_v15 = vpop.eup %3440  ;;  %3448 = vpow2.f32 %v2376_v43  ;;  %v916_v19 = vmul.f32 %v4007_v30, %v914_v62 }
 0x51b   :  { %v3443_v34 = vpop.eup %3442  ;;  %v938_v41 = vadd.f32 1.0, %v3441_v15 }
 0x51c   :  { %v915_v48 = vmul.f32 %v3443_v34, %v909_v54  ;;  %v3445_v39 = vpop.eup %3444  ;;  %v918_v35 = vadd.f32 %v4014_v52, %v916_v19 }
 0x51d   :  { %3450 = vrcp.f32 %v938_v41  ;;  %v937_v49 = vadd.f32 1.0, %v3445_v39 }
 0x51e   :  { %v917_v28 = vmul.f32 %v4007_v30, %v915_v48 }
 0x520   :  { %v919_v45 = vadd.f32 %v4014_v52, %v917_v28 }
 0x523   :  { %v3447_v23 = vpop.eup %3446 }
 0x524   :  { %v948_v24 = vmul.f32 %v3447_v23, %v918_v35  ;;  %v3449_v61 = vpop.eup %3448 }
 0x525   :  { %v939_v13 = vadd.f32 1.0, %v3449_v61 }
 0x526   :  { %v950_v16 = vadd.f32 %v2369_v36, %v948_v24 }
 0x527   :  { %v3451_v10 = vpop.eup %3450 }
 0x528   :  { %3452 = vtanh.f32 %v950_v16  ;;  %v949_v7 = vmul.f32 %v3451_v10, %v919_v45 }
 0x529   :  { %3454 = vrcp.f32 %v937_v49 }
 0x52a   :  { %v951_v2 = vadd.f32 %v2372_v5, %v949_v7 }
 0x52c   :  { %3456 = vtanh.f32 %v951_v2 }
 0x52d   :  { %3458 = vrcp.f32 %v939_v13 }
 0x532   :  { %v3453_v57 = vpop.eup %3452 }
 0x533   :  { %v954_v30 = vsub.f32 %v4124_v32, %v3453_v57  ;;  %v3455_v58 = vpop.eup %3454 }
 0x535   :  { %v956_v31 = vmul.f32 %v3455_v58, %v954_v30 }
 0x536   :  { %v3457_v18 = vpop.eup %3456 }
 0x537   :  { %v4224_v59 = vadd.f32 %v3453_v57, %v956_v31  ;;  %v955_v52 = vsub.f32 %v4136_v50, %v3457_v18  ;;  %v3459_v43 = vpop.eup %3458 }
 0x539   :  { %2377 = vst [vmem:[%s4723_s7 + $0x20] sm:$0xff] %v4224_v59  ;;  %1035 = vmatmul.mubr.f32.vlgmr.msra.gmra.mrb[12].mxu0 %v4224_v59  ;;  %2720 = vmatprep.mubr.f32.mxu1 %v4224_v59  ;;  %v957_v32 = vmul.f32 %v3459_v43, %v955_v52 }
 0x53a   :  { %1040 = vmatprep.mubr.f32.mxu0 %v3604_v3  ;;  %3122 = vmatpush1.bf16.msra.mxu0 %v3667_v8 }
 0x53b   :  { %3124 = vmatprep.subr.bf16.mxu0 %v3669_v9  ;;  %v4236_v62 = vadd.f32 %v3457_v18, %v957_v32 }
 0x53d   :  { %2378 = vst [vmem:[%s4723_s7 + $0x28] sm:$0xff] %v4236_v62  ;;  %1041 = vmatmul.mubr.f32.gmra.mrb[14].mxu0 %v4236_v62  ;;  %2721 = vmatmul.mubr.f32.vlgmr.msra.gmra.mrb[6].mxu1 %v4236_v62 }
 0x53e   :  { %3126 = vmatpush1.bf16.msra.mxu0 %v3685_v14  ;;  %3154 = vmatpush3.bf16.msra.mxu1 %v3702_v20 }
 0x53f   :  { %3128 = vmatprep.subr.bf16.mxu0 %v3694_v17  ;;  %3156 = vmatprep.subr.bf16.mxu1 %v3717_v25 }
 0x540   :  { %1310 = vmatprep.mubr.f32.mxu0 %v3604_v3 }
 0x542   :  { %3130 = vmatpush1.bf16.msra.mxu0 %v3720_v26  ;;  %3158 = vmatpush3.bf16.msra.mxu1 %v3717_v25 }
 0x543   :  { %3132 = vmatprep.subr.bf16.mxu0 %v3730_v29  ;;  %3160 = vmatprep.subr.bf16.mxu1 %v3742_v33 }
 0x546   :  { %3134 = vmatpush1.bf16.msra.mxu0 %v3754_v37  ;;  %3162 = vmatpush3.bf16.msra.mxu1 %v3742_v33 }
 0x547   :  { %3136 = vmatprep.subr.bf16.mxu0 %v3758_v38  ;;  %3164 = vmatprep.subr.bf16.mxu1 %v3770_v42 }
 0x54a   :  { %3138 = vmatpush1.bf16.msra.mxu0 %v3782_v46  ;;  %3166 = vmatpush3.bf16.msra.mxu1 %v3770_v42 }
 0x54b   :  { %3140 = vmatprep.subr.bf16.mxu0 %v3786_v47  ;;  %3168 = vmatprep.subr.bf16.mxu1 %v3798_v51 }
 0x54e   :  { %3142 = vmatpush1.bf16.msra.mxu0 %v3810_v55  ;;  %3170 = vmatpush3.bf16.msra.mxu1 %v3798_v51 }
 0x54f   :  { %3144 = vmatprep.subr.bf16.mxu0 %v3814_v56  ;;  %3172 = vmatprep.subr.bf16.mxu1 %v3826_v60 }
 0x552   :  { %3146 = vmatpush1.bf16.msra.mxu0 %v3838_v0  ;;  %3174 = vmatpush3.bf16.msra.mxu1 %v3826_v60 }
 0x553   :  { %3148 = vmatprep.subr.bf16.mxu0 %v3842_v1  ;;  %3176 = vmatprep.subr.bf16.mxu1 %v3851_v6 }
 0x556   :  { %3150 = vmatpush1.bf16.msra.mxu0 %v3860_v11  ;;  %3178 = vmatpush3.bf16.msra.mxu1 %v3851_v6 }
 0x557   :  { %3180 = vmatprep.subr.bf16.mxu1 %v3865_v12  ;;  %3184 = vmatprep.subr.bf16.mxu0 %v3656_v4 }
 0x55a   :  { %3182 = vmatpush3.bf16.msra.mxu1 %v3865_v12 }
 0x55b   :  { %3216 = vmatprep.subr.bf16.mxu1 %v3702_v20 }
 0x60c   :  { %v1036_v50 = vpop.f32.mrb[12].mxu0 }
 0x60d   :  { %v1037_v15 = vadd.f32 %v1036_v50, %v3918_v21  ;;  %v1038_v34 = vpop.f32.mrb[13].mxu0 }
 0x60e   :  { %v1039_v41 = vadd.f32 %v1038_v34, %v3921_v22 }
 0x60f   :  { %v1128_v54 = vmul.f32 %v1037_v15, %v1037_v15 }
 0x610   :  { %v1122_v19 = vadd.f32 %v1039_v41, %v1037_v15  ;;  %v1129_v48 = vmul.f32 %v1039_v41, %v1039_v41  ;;  %v1042_v39 = vpop.f32.mrb[14].mxu0  ;;  %v2722_v35 = vpop.f32.mrb[6].mxu1 }
 0x611   :  { %v1043_v23 = vadd.f32 %v1042_v39, %v3918_v21  ;;  %v1044_v36 = vpop.f32.mrb[15].mxu0  ;;  %v1113_v28 = vpop.f32.mrb[7].mxu1  ;;  %v4283_v7 = vadd.f32 %v2722_v35, %v3941_v44 }
 0x612   :  { %1123 = vadd.xlane.f32.xlu0 %v1122_v19  ;;  %v1132_v24 = vadd.f32 %v1129_v48, %v1128_v54  ;;  %v1045_v49 = vadd.f32 %v1044_v36, %v3921_v22  ;;  %v4280_v10 = vadd.f32 %v1113_v28, %v3941_v44 }
 0x613   :  { %v1130_v16 = vmul.f32 %v1043_v23, %v1043_v23  ;;  %v1171_v2 = vmul.f32 %v4283_v7, %v4283_v7 }
 0x614   :  { %1133 = vadd.xlane.f32.xlu1 %v1132_v24  ;;  %v1125_v61 = vadd.f32 %v1045_v49, %v1043_v23  ;;  %v1131_v45 = vmul.f32 %v1045_v49, %v1045_v49  ;;  %v1170_v13 = vmul.f32 %v4280_v10, %v4280_v10 }
 0x616   :  { %1126 = vadd.xlane.f32.xlu0 %v1125_v61  ;;  %v1135_v5 = vadd.f32 %v1131_v45, %v1130_v16 }
 0x618   :  { %1136 = vadd.xlane.f32.xlu1 %v1135_v5 }
 0x61a   :  { %1166 = vadd.xlane.f32.xlu0 %v4280_v10 }
 0x61c   :  { %1172 = vadd.xlane.f32.xlu1 %v1170_v13 }
 0x61e   :  { %1168 = vadd.xlane.f32.xlu0 %v4283_v7 }
 0x620   :  { %1174 = vadd.xlane.f32.xlu1 %v1171_v2 }
 0x69f   :  { %v1124_v57 = vpop.xlane.xlu0 %1123 }
 0x6a0   :  { %v1138_v30 = vmul.f32 0.03125, %v1124_v57 }
 0x6a1   :  { %v1134_v58 = vpop.xlane.xlu1 %1133 }
 0x6a2   :  { %v1140_v31 = vmul.f32 0.03125, %v1134_v58  ;;  %v1142_v18 = vmul.f32 %v1138_v30, %v1138_v30  ;;  %v1146_v16 = vsub.f32 %v1037_v15, %v1138_v30  ;;  %v1147_v13 = vsub.f32 %v1039_v41, %v1138_v30 }
 0x6a3   :  { %v1127_v43 = vpop.xlane.xlu0 %1126 }
 0x6a4   :  { %v1144_v52 = vsub.f32 %v1140_v31, %v1142_v18  ;;  %v1139_v32 = vmul.f32 0.03125, %v1127_v43 }
 0x6a5   :  { %v1137_v34 = vpop.xlane.xlu1 %1136 }
 0x6a6   :  { %v1150_v50 = vadd.f32 1e-05, %v1144_v52  ;;  %v1141_v54 = vmul.f32 0.03125, %v1137_v34  ;;  %v1143_v19 = vmul.f32 %v1139_v32, %v1139_v32  ;;  %v2379_v52 = vld [vmem:[%s4720_s0 + $0x90] sm:$0xff]  ;;  %v1148_v43 = vsub.f32 %v1043_v23, %v1139_v32  ;;  %v2382_v23 = vld [vmem:[%s4720_s0 + $0xa8] sm:$0xff] }
 0x6a7   :  { %v1167_v39 = vpop.xlane.xlu0 %1166 }
 0x6a8   :  { %3460 = vrsqrt.f32 %v1150_v50  ;;  %v1145_v48 = vsub.f32 %v1141_v54, %v1143_v19  ;;  %v1176_v36 = vmul.f32 0.0625, %v1167_v39 }
 0x6a9   :  { %v1173_v28 = vpop.xlane.xlu1 %1172 }
 0x6aa   :  { %v1151_v35 = vadd.f32 1e-05, %v1145_v48  ;;  %v1180_v45 = vmul.f32 %v1176_v36, %v1176_v36  ;;  %v1178_v5 = vmul.f32 0.0625, %v1173_v28  ;;  %v1149_v48 = vsub.f32 %v1045_v49, %v1139_v32  ;;  %v2380_v49 = vld [vmem:[%s4720_s0 + $0x98] sm:$0xff] }
 0x6ab   :  { %v1169_v24 = vpop.xlane.xlu0 %1168 }
 0x6ac   :  { %3462 = vrsqrt.f32 %v1151_v35  ;;  %v1177_v57 = vmul.f32 0.0625, %v1169_v24  ;;  %v1182_v50 = vsub.f32 %v1178_v5, %v1180_v45 }
 0x6ad   :  { %v1175_v58 = vpop.xlane.xlu1 %1174 }
 0x6ae   :  { %v1181_v15 = vmul.f32 %v1177_v57, %v1177_v57  ;;  %v1179_v19 = vmul.f32 0.0625, %v1175_v58  ;;  %v1186_v24 = vadd.f32 1e-05, %v1182_v50 }
 0x6b2   :  { %v3461_v61 = vpop.eup %3460 }
 0x6b3   :  { %v1154_v2 = vmul.f32 %v3461_v61, %v1146_v16  ;;  %v1155_v31 = vmul.f32 %v3461_v61, %v1147_v13  ;;  %v1183_v61 = vsub.f32 %v1179_v19, %v1181_v15  ;;  %v1184_v19 = vsub.f32 %v4280_v10, %v1176_v36  ;;  %v4322_v10 = vld [vmem:[%s4722_s6] ss:$0 sm:$0xff] }
 0x6b5   :  { %v1158_v18 = vmul.f32 %v1154_v2, %v3968_v40  ;;  %v1159_v41 = vmul.f32 %v1155_v31, %v3976_v63  ;;  %v1187_v2 = vadd.f32 1e-05, %v1183_v61 }
 0x6b6   :  { %v3463_v34 = vpop.eup %3462 }
 0x6b7   :  { %v1162_v54 = vadd.f32 %v1158_v18, %v3972_v53  ;;  %v1156_v39 = vmul.f32 %v3463_v34, %v1148_v43  ;;  %v1157_v35 = vmul.f32 %v3463_v34, %v1149_v48  ;;  %v1163_v5 = vadd.f32 %v1159_v41, %v3986_v27 }
 0x6b9   :  { %v1196_v30 = vadd.f32 %v2379_v52, %v1162_v54  ;;  %v1160_v28 = vmul.f32 %v1156_v39, %v3968_v40  ;;  %v1161_v32 = vmul.f32 %v1157_v35, %v3976_v63  ;;  %v1197_v31 = vadd.f32 %v2380_v49, %v1163_v5  ;;  %v2383_v52 = vld [vmem:[%s4720_s0 + $0xb0] sm:$0xff] }
 0x6bb   :  { %v2385_v16 = vmul.f32 -1.442695, %v1196_v30  ;;  %v1164_v45 = vadd.f32 %v1160_v28, %v3972_v53  ;;  %v1165_v18 = vadd.f32 %v1161_v32, %v3986_v27  ;;  %v2386_v43 = vmul.f32 -1.442695, %v1197_v31  ;;  %v2384_v31 = vld [vmem:[%s4720_s0 + $0xb8] sm:$0xff] }
 0x6bc   :  { %v1185_v28 = vsub.f32 %v4283_v7, %v1177_v57  ;;  %v2381_v7 = vld [vmem:[%s4720_s0 + $0xa0] sm:$0xff] }
 0x6bd   :  { %3464 = vpow2.f32 %v2385_v16  ;;  %v1198_v13 = vadd.f32 %v2382_v23, %v1164_v45  ;;  %v1199_v50 = vadd.f32 %v2383_v52, %v1165_v18 }
 0x6be   :  { %3466 = vrsqrt.f32 %v1186_v24  ;;  %v4316_v24 = vld [vmem:[%s4721_s5] ss:$0 sm:$0xff] }
 0x6bf   :  { %v2387_v58 = vmul.f32 -1.442695, %v1198_v13  ;;  %v2388_v48 = vmul.f32 -1.442695, %v1199_v50 }
 0x6c1   :  { %3468 = vpow2.f32 %v2387_v58 }
 0x6c2   :  { %3470 = vrsqrt.f32 %v1187_v2 }
 0x6c3   :  { %3472 = vpow2.f32 %v2386_v43 }
 0x6c7   :  { %v3465_v34 = vpop.eup %3464 }
 0x6c8   :  { %v3467_v54 = vpop.eup %3466  ;;  %v1212_v15 = vadd.f32 1.0, %v3465_v34 }
 0x6c9   :  { %v1190_v39 = vmul.f32 %v3467_v54, %v1184_v19 }
 0x6ca   :  { %3474 = vrcp.f32 %v1212_v15 }
 0x6cb   :  { %v3469_v41 = vpop.eup %3468  ;;  %3476 = vpow2.f32 %v2388_v48  ;;  %v1192_v16 = vmul.f32 %v4316_v24, %v1190_v39 }
 0x6cc   :  { %v3471_v30 = vpop.eup %3470  ;;  %v1214_v35 = vadd.f32 1.0, %v3469_v41 }
 0x6cd   :  { %v1191_v23 = vmul.f32 %v3471_v30, %v1185_v28  ;;  %v3473_v61 = vpop.eup %3472  ;;  %v1194_v36 = vadd.f32 %v4322_v10, %v1192_v16 }
 0x6ce   :  { %3478 = vrcp.f32 %v1214_v35  ;;  %v1213_v49 = vadd.f32 1.0, %v3473_v61 }
 0x6cf   :  { %v1193_v57 = vmul.f32 %v4316_v24, %v1191_v23 }
 0x6d1   :  { %v1195_v2 = vadd.f32 %v4322_v10, %v1193_v57 }
 0x6d4   :  { %v3475_v45 = vpop.eup %3474 }
 0x6d5   :  { %v1224_v5 = vmul.f32 %v3475_v45, %v1194_v36  ;;  %v3477_v13 = vpop.eup %3476 }
 0x6d6   :  { %v1215_v52 = vadd.f32 1.0, %v3477_v13 }
 0x6d7   :  { %v1226_v32 = vadd.f32 %v2381_v7, %v1224_v5 }
 0x6d8   :  { %v3479_v58 = vpop.eup %3478 }
 0x6d9   :  { %3480 = vtanh.f32 %v1226_v32  ;;  %v1225_v18 = vmul.f32 %v3479_v58, %v1195_v2 }
 0x6da   :  { %3482 = vrcp.f32 %v1213_v49 }
 0x6db   :  { %v1227_v43 = vadd.f32 %v2384_v31, %v1225_v18 }
 0x6dd   :  { %3484 = vtanh.f32 %v1227_v43 }
 0x6de   :  { %3486 = vrcp.f32 %v1215_v52 }
 0x6e3   :  { %v3481_v50 = vpop.eup %3480 }
 0x6e4   :  { %v1230_v34 = vsub.f32 %v4224_v59, %v3481_v50  ;;  %v3483_v54 = vpop.eup %3482 }
 0x6e6   :  { %v1232_v15 = vmul.f32 %v3483_v54, %v1230_v34 }
 0x6e7   :  { %v3485_v19 = vpop.eup %3484 }
 0x6e8   :  { %v4334_v48 = vadd.f32 %v3481_v50, %v1232_v15  ;;  %v1231_v39 = vsub.f32 %v4236_v62, %v3485_v19  ;;  %v3487_v41 = vpop.eup %3486 }
 0x6ea   :  { %2389 = vst [vmem:[%s4723_s7 + $0x30] sm:$0xff] %v4334_v48  ;;  %1311 = vmatmul.mubr.f32.vlgmr.msra.gmra.mrb[16].mxu0 %v4334_v48  ;;  %2755 = vmatprep.mubr.f32.mxu1 %v4334_v48  ;;  %v1233_v59 = vmul.f32 %v3487_v41, %v1231_v39 }
 0x6eb   :  { %1316 = vmatprep.mubr.f32.mxu0 %v3604_v3  ;;  %3186 = vmatpush1.bf16.msra.mxu0 %v3667_v8 }
 0x6ec   :  { %3188 = vmatprep.subr.bf16.mxu0 %v3669_v9  ;;  %v4346_v30 = vadd.f32 %v3485_v19, %v1233_v59 }
 0x6ee   :  { %2390 = vst [vmem:[%s4723_s7 + $0x38] sm:$0xff] %v4346_v30  ;;  %1317 = vmatmul.mubr.f32.gmra.mrb[18].mxu0 %v4346_v30  ;;  %2756 = vmatmul.mubr.f32.vlgmr.msra.gmra.mrb[8].mxu1 %v4346_v30 }
 0x6ef   :  { %3190 = vmatpush1.bf16.msra.mxu0 %v3685_v14  ;;  %3218 = vmatpush3.bf16.msra.mxu1 %v3702_v20 }
 0x6f0   :  { %3192 = vmatprep.subr.bf16.mxu0 %v3694_v17  ;;  %3220 = vmatprep.subr.bf16.mxu1 %v3717_v25 }
 0x6f1   :  { %1586 = vmatprep.mubr.f32.mxu0 %v3604_v3 }
 0x6f3   :  { %3194 = vmatpush1.bf16.msra.mxu0 %v3720_v26  ;;  %3222 = vmatpush3.bf16.msra.mxu1 %v3717_v25 }
 0x6f4   :  { %3196 = vmatprep.subr.bf16.mxu0 %v3730_v29  ;;  %3224 = vmatprep.subr.bf16.mxu1 %v3742_v33 }
 0x6f7   :  { %3198 = vmatpush1.bf16.msra.mxu0 %v3754_v37  ;;  %3226 = vmatpush3.bf16.msra.mxu1 %v3742_v33 }
 0x6f8   :  { %3200 = vmatprep.subr.bf16.mxu0 %v3758_v38  ;;  %3228 = vmatprep.subr.bf16.mxu1 %v3770_v42 }
 0x6fb   :  { %3202 = vmatpush1.bf16.msra.mxu0 %v3782_v46  ;;  %3230 = vmatpush3.bf16.msra.mxu1 %v3770_v42 }
 0x6fc   :  { %3204 = vmatprep.subr.bf16.mxu0 %v3786_v47  ;;  %3232 = vmatprep.subr.bf16.mxu1 %v3798_v51 }
 0x6ff   :  { %3206 = vmatpush1.bf16.msra.mxu0 %v3810_v55  ;;  %3234 = vmatpush3.bf16.msra.mxu1 %v3798_v51 }
 0x700   :  { %3208 = vmatprep.subr.bf16.mxu0 %v3814_v56  ;;  %3236 = vmatprep.subr.bf16.mxu1 %v3826_v60 }
 0x703   :  { %3210 = vmatpush1.bf16.msra.mxu0 %v3838_v0  ;;  %3238 = vmatpush3.bf16.msra.mxu1 %v3826_v60 }
 0x704   :  { %3212 = vmatprep.subr.bf16.mxu0 %v3842_v1  ;;  %3240 = vmatprep.subr.bf16.mxu1 %v3851_v6 }
 0x707   :  { %3214 = vmatpush1.bf16.msra.mxu0 %v3860_v11  ;;  %3242 = vmatpush3.bf16.msra.mxu1 %v3851_v6 }
 0x708   :  { %3244 = vmatprep.subr.bf16.mxu1 %v3865_v12  ;;  %3248 = vmatprep.subr.bf16.mxu0 %v3656_v4 }
 0x70b   :  { %3246 = vmatpush3.bf16.msra.mxu1 %v3865_v12 }
 0x70c   :  { %3280 = vmatprep.subr.bf16.mxu1 %v3702_v20 }
 0x7bd   :  { %v1312_v62 = vpop.f32.mrb[16].mxu0 }
 0x7be   :  { %v1313_v35 = vadd.f32 %v1312_v62, %v3918_v21  ;;  %v1314_v28 = vpop.f32.mrb[17].mxu0 }
 0x7bf   :  { %v1315_v16 = vadd.f32 %v1314_v28, %v3921_v22 }
 0x7c0   :  { %v1404_v23 = vmul.f32 %v1313_v35, %v1313_v35 }
 0x7c1   :  { %v1398_v61 = vadd.f32 %v1315_v16, %v1313_v35  ;;  %v1405_v36 = vmul.f32 %v1315_v16, %v1315_v16  ;;  %v1318_v45 = vpop.f32.mrb[18].mxu0  ;;  %v2757_v7 = vpop.f32.mrb[8].mxu1 }
 0x7c2   :  { %v1319_v57 = vadd.f32 %v1318_v45, %v3918_v21  ;;  %v1320_v5 = vpop.f32.mrb[19].mxu0  ;;  %v1389_v49 = vpop.f32.mrb[9].mxu1  ;;  %v4393_v43 = vadd.f32 %v2757_v7, %v3941_v44 }
 0x7c3   :  { %1399 = vadd.xlane.f32.xlu0 %v1398_v61  ;;  %v1408_v32 = vadd.f32 %v1405_v36, %v1404_v23  ;;  %v1321_v13 = vadd.f32 %v1320_v5, %v3921_v22  ;;  %v4390_v18 = vadd.f32 %v1389_v49, %v3941_v44 }
 0x7c4   :  { %v1406_v2 = vmul.f32 %v1319_v57, %v1319_v57  ;;  %v1447_v34 = vmul.f32 %v4393_v43, %v4393_v43 }
 0x7c5   :  { %1409 = vadd.xlane.f32.xlu1 %v1408_v32  ;;  %v1401_v58 = vadd.f32 %v1321_v13, %v1319_v57  ;;  %v1407_v31 = vmul.f32 %v1321_v13, %v1321_v13  ;;  %v1446_v50 = vmul.f32 %v4390_v18, %v4390_v18 }
 0x7c7   :  { %1402 = vadd.xlane.f32.xlu0 %v1401_v58  ;;  %v1411_v52 = vadd.f32 %v1407_v31, %v1406_v2 }
 0x7c9   :  { %1412 = vadd.xlane.f32.xlu1 %v1411_v52 }
 0x7cb   :  { %1442 = vadd.xlane.f32.xlu0 %v4390_v18 }
 0x7cd   :  { %1448 = vadd.xlane.f32.xlu1 %v1446_v50 }
 0x7cf   :  { %1444 = vadd.xlane.f32.xlu0 %v4393_v43 }
 0x7d1   :  { %1450 = vadd.xlane.f32.xlu1 %v1447_v34 }
 0x850   :  { %v1400_v54 = vpop.xlane.xlu0 %1399 }
 0x851   :  { %v1414_v15 = vmul.f32 0.03125, %v1400_v54 }
 0x852   :  { %v1410_v19 = vpop.xlane.xlu1 %1409 }
 0x853   :  { %v1416_v39 = vmul.f32 0.03125, %v1410_v19  ;;  %v1418_v41 = vmul.f32 %v1414_v15, %v1414_v15  ;;  %v1422_v31 = vsub.f32 %v1313_v35, %v1414_v15  ;;  %v1423_v54 = vsub.f32 %v1315_v16, %v1414_v15 }
 0x854   :  { %v1403_v62 = vpop.xlane.xlu0 %1402 }
 0x855   :  { %v1420_v59 = vsub.f32 %v1416_v39, %v1418_v41  ;;  %v1415_v28 = vmul.f32 0.03125, %v1403_v62 }
 0x856   :  { %v1413_v61 = vpop.xlane.xlu1 %1412 }
 0x857   :  { %v1426_v23 = vadd.f32 1e-05, %v1420_v59  ;;  %v1417_v36 = vmul.f32 0.03125, %v1413_v61  ;;  %v1419_v45 = vmul.f32 %v1415_v28, %v1415_v28  ;;  %v1424_v61 = vsub.f32 %v1319_v57, %v1415_v28  ;;  %v2394_v57 = vld [vmem:[%s4720_s0 + $0xd8] sm:$0xff] }
 0x858   :  { %v1443_v5 = vpop.xlane.xlu0 %1442 }
 0x859   :  { %3488 = vrsqrt.f32 %v1426_v23  ;;  %v1421_v7 = vsub.f32 %v1417_v36, %v1419_v45  ;;  %v1452_v32 = vmul.f32 0.0625, %v1443_v5  ;;  %v2391_v23 = vld [vmem:[%s4720_s0 + $0xc0] sm:$0xff] }
 0x85a   :  { %v1449_v2 = vpop.xlane.xlu1 %1448 }
 0x85b   :  { %v1427_v49 = vadd.f32 1e-05, %v1421_v7  ;;  %v1456_v50 = vmul.f32 %v1452_v32, %v1452_v32  ;;  %v1454_v34 = vmul.f32 0.0625, %v1449_v2 }
 0x85c   :  { %v1445_v58 = vpop.xlane.xlu0 %1444 }
 0x85d   :  { %3490 = vrsqrt.f32 %v1427_v49  ;;  %v1453_v39 = vmul.f32 0.0625, %v1445_v58  ;;  %v1458_v36 = vsub.f32 %v1454_v34, %v1456_v50  ;;  %v1425_v49 = vsub.f32 %v1321_v13, %v1415_v28  ;;  %v2392_v13 = vld [vmem:[%s4720_s0 + $0xc8] sm:$0xff] }
 0x85e   :  { %v1451_v41 = vpop.xlane.xlu1 %1450 }
 0x85f   :  { %v1457_v35 = vmul.f32 %v1453_v39, %v1453_v39  ;;  %v1455_v5 = vmul.f32 0.0625, %v1451_v41 }
 0x861   :  { %v1459_v50 = vsub.f32 %v1455_v5, %v1457_v35 }
 0x863   :  { %v3489_v52 = vpop.eup %3488 }
 0x864   :  { %v1430_v19 = vmul.f32 %v3489_v52, %v1422_v31  ;;  %v1431_v59 = vmul.f32 %v3489_v52, %v1423_v54  ;;  %v1462_v52 = vadd.f32 1e-05, %v1458_v36  ;;  %v2395_v36 = vld [vmem:[%s4720_s0 + $0xe0] sm:$0xff] }
 0x866   :  { %v1434_v62 = vmul.f32 %v1430_v19, %v3968_v40  ;;  %v1435_v16 = vmul.f32 %v1431_v59, %v3976_v63  ;;  %v1463_v59 = vadd.f32 1e-05, %v1459_v50 }
 0x867   :  { %v3491_v45 = vpop.eup %3490 }
 0x868   :  { %v1438_v7 = vadd.f32 %v1434_v62, %v3972_v53  ;;  %v1432_v2 = vmul.f32 %v3491_v45, %v1424_v61  ;;  %v1433_v58 = vmul.f32 %v3491_v45, %v1425_v49  ;;  %v1439_v19 = vadd.f32 %v1435_v16, %v3986_v27 }
 0x86a   :  { %v1472_v15 = vadd.f32 %v2391_v23, %v1438_v7  ;;  %v1436_v31 = vmul.f32 %v1432_v2, %v3968_v40  ;;  %v1437_v28 = vmul.f32 %v1433_v58, %v3976_v63  ;;  %v1473_v23 = vadd.f32 %v2392_v13, %v1439_v19 }
 0x86b   :  { %v1460_v2 = vsub.f32 %v4390_v18, %v1452_v32  ;;  %v2393_v18 = vld [vmem:[%s4720_s0 + $0xd0] sm:$0xff] }
 0x86c   :  { %v2397_v54 = vmul.f32 -1.442695, %v1472_v15  ;;  %v1440_v34 = vadd.f32 %v1436_v31, %v3972_v53  ;;  %v1441_v61 = vadd.f32 %v1437_v28, %v3986_v27  ;;  %v2398_v45 = vmul.f32 -1.442695, %v1473_v23  ;;  %v2396_v23 = vld [vmem:[%s4720_s0 + $0xe8] sm:$0xff] }
 0x86e   :  { %3492 = vpow2.f32 %v2397_v54  ;;  %v1474_v41 = vadd.f32 %v2394_v57, %v1440_v34  ;;  %v1475_v7 = vadd.f32 %v2395_v36, %v1441_v61  ;;  %v1461_v54 = vsub.f32 %v4393_v43, %v1453_v39 }
 0x86f   :  { %3494 = vrsqrt.f32 %v1462_v52 }
 0x870   :  { %v2399_v62 = vmul.f32 -1.442695, %v1474_v41  ;;  %v2400_v16 = vmul.f32 -1.442695, %v1475_v7 }
 0x872   :  { %3496 = vpow2.f32 %v2399_v62 }
 0x873   :  { %3498 = vrsqrt.f32 %v1463_v59 }
 0x874   :  { %3500 = vpow2.f32 %v2398_v45 }
 0x878   :  { %v3493_v35 = vpop.eup %3492 }
 0x879   :  { %v3495_v5 = vpop.eup %3494  ;;  %v1488_v49 = vadd.f32 1.0, %v3493_v35 }
 0x87a   :  { %v1466_v15 = vmul.f32 %v3495_v5, %v1460_v2 }
 0x87b   :  { %3502 = vrcp.f32 %v1488_v49 }
 0x87c   :  { %v3497_v58 = vpop.eup %3496  ;;  %3504 = vpow2.f32 %v2400_v16  ;;  %v1468_v57 = vmul.f32 %v4316_v24, %v1466_v15 }
 0x87d   :  { %v3499_v31 = vpop.eup %3498  ;;  %v1490_v52 = vadd.f32 1.0, %v3497_v58 }
 0x87e   :  { %v1467_v50 = vmul.f32 %v3499_v31, %v1461_v54  ;;  %v3501_v34 = vpop.eup %3500  ;;  %v1470_v19 = vadd.f32 %v4322_v10, %v1468_v57 }
 0x87f   :  { %3506 = vrcp.f32 %v1490_v52  ;;  %v1489_v41 = vadd.f32 1.0, %v3501_v34 }
 0x880   :  { %v1469_v32 = vmul.f32 %v4316_v24, %v1467_v50 }
 0x882   :  { %v1471_v43 = vadd.f32 %v4322_v10, %v1469_v32 }
 0x885   :  { %v3503_v13 = vpop.eup %3502 }
 0x886   :  { %v1500_v28 = vmul.f32 %v3503_v13, %v1470_v19  ;;  %v3505_v62 = vpop.eup %3504 }
 0x887   :  { %v1491_v36 = vadd.f32 1.0, %v3505_v62 }
 0x888   :  { %v1502_v59 = vadd.f32 %v2393_v18, %v1500_v28 }
 0x889   :  { %v3507_v39 = vpop.eup %3506 }
 0x88a   :  { %3508 = vtanh.f32 %v1502_v59  ;;  %v1501_v61 = vmul.f32 %v3507_v39, %v1471_v43 }
 0x88b   :  { %3510 = vrcp.f32 %v1489_v41 }
 0x88c   :  { %v1503_v45 = vadd.f32 %v2396_v23, %v1501_v61 }
 0x88e   :  { %3512 = vtanh.f32 %v1503_v45 }
 0x88f   :  { %3514 = vrcp.f32 %v1491_v36 }
 0x894   :  { %v3509_v7 = vpop.eup %3508 }
 0x895   :  { %v1506_v35 = vsub.f32 %v4334_v48, %v3509_v7  ;;  %v3511_v5 = vpop.eup %3510 }
 0x897   :  { %v1508_v49 = vmul.f32 %v3511_v5, %v1506_v35 }
 0x898   :  { %v3513_v2 = vpop.eup %3512 }
 0x899   :  { %v4434_v16 = vadd.f32 %v3509_v7, %v1508_v49  ;;  %v1507_v15 = vsub.f32 %v4346_v30, %v3513_v2  ;;  %v3515_v58 = vpop.eup %3514 }
 0x89b   :  { %2401 = vst [vmem:[%s4723_s7 + $0x40] sm:$0xff] %v4434_v16  ;;  %1587 = vmatmul.mubr.f32.vlgmr.msra.gmra.mrb[20].mxu0 %v4434_v16  ;;  %2790 = vmatprep.mubr.f32.mxu1 %v4434_v16  ;;  %v1509_v48 = vmul.f32 %v3515_v58, %v1507_v15 }
 0x89c   :  { %1592 = vmatprep.mubr.f32.mxu0 %v3604_v3  ;;  %3250 = vmatpush1.bf16.msra.mxu0 %v3667_v8 }
 0x89d   :  { %3252 = vmatprep.subr.bf16.mxu0 %v3669_v9  ;;  %v4446_v31 = vadd.f32 %v3513_v2, %v1509_v48 }
 0x89f   :  { %2402 = vst [vmem:[%s4723_s7 + $0x48] sm:$0xff] %v4446_v31  ;;  %1593 = vmatmul.mubr.f32.gmra.mrb[22].mxu0 %v4446_v31  ;;  %2791 = vmatmul.mubr.f32.vlgmr.msra.gmra.mrb[10].mxu1 %v4446_v31 }
 0x8a0   :  { %3254 = vmatpush1.bf16.msra.mxu0 %v3685_v14  ;;  %3282 = vmatpush3.bf16.msra.mxu1 %v3702_v20 }
 0x8a1   :  { %3256 = vmatprep.subr.bf16.mxu0 %v3694_v17  ;;  %3284 = vmatprep.subr.bf16.mxu1 %v3717_v25 }
 0x8a2   :  { %1862 = vmatprep.mubr.f32.mxu0 %v3604_v3 }
 0x8a4   :  { %3258 = vmatpush1.bf16.msra.mxu0 %v3720_v26  ;;  %3286 = vmatpush3.bf16.msra.mxu1 %v3717_v25 }
 0x8a5   :  { %3260 = vmatprep.subr.bf16.mxu0 %v3730_v29  ;;  %3288 = vmatprep.subr.bf16.mxu1 %v3742_v33 }
 0x8a8   :  { %3262 = vmatpush1.bf16.msra.mxu0 %v3754_v37  ;;  %3290 = vmatpush3.bf16.msra.mxu1 %v3742_v33 }
 0x8a9   :  { %3264 = vmatprep.subr.bf16.mxu0 %v3758_v38  ;;  %3292 = vmatprep.subr.bf16.mxu1 %v3770_v42 }
 0x8ac   :  { %3266 = vmatpush1.bf16.msra.mxu0 %v3782_v46  ;;  %3294 = vmatpush3.bf16.msra.mxu1 %v3770_v42 }
 0x8ad   :  { %3268 = vmatprep.subr.bf16.mxu0 %v3786_v47  ;;  %3296 = vmatprep.subr.bf16.mxu1 %v3798_v51 }
 0x8b0   :  { %3270 = vmatpush1.bf16.msra.mxu0 %v3810_v55  ;;  %3298 = vmatpush3.bf16.msra.mxu1 %v3798_v51 }
 0x8b1   :  { %3272 = vmatprep.subr.bf16.mxu0 %v3814_v56  ;;  %3300 = vmatprep.subr.bf16.mxu1 %v3826_v60 }
 0x8b4   :  { %3274 = vmatpush1.bf16.msra.mxu0 %v3838_v0  ;;  %3302 = vmatpush3.bf16.msra.mxu1 %v3826_v60 }
 0x8b5   :  { %3276 = vmatprep.subr.bf16.mxu0 %v3842_v1  ;;  %3304 = vmatprep.subr.bf16.mxu1 %v3851_v6 }
 0x8b8   :  { %3278 = vmatpush1.bf16.msra.mxu0 %v3860_v11  ;;  %3306 = vmatpush3.bf16.msra.mxu1 %v3851_v6 }
 0x8b9   :  { %3308 = vmatprep.subr.bf16.mxu1 %v3865_v12  ;;  %3312 = vmatprep.subr.bf16.mxu0 %v3656_v4 }
 0x8bc   :  { %3310 = vmatpush3.bf16.msra.mxu1 %v3865_v12 }
 0x8bd   :  { %3344 = vmatprep.subr.bf16.mxu1 %v3702_v20 }
 0x96e   :  { %v1588_v30 = vpop.f32.mrb[20].mxu0 }
 0x96f   :  { %v1589_v52 = vadd.f32 %v1588_v30, %v3918_v21  ;;  %v1590_v54 = vpop.f32.mrb[21].mxu0 }
 0x970   :  { %v1591_v57 = vadd.f32 %v1590_v54, %v3921_v22 }
 0x971   :  { %v1680_v50 = vmul.f32 %v1589_v52, %v1589_v52 }
 0x972   :  { %v1674_v34 = vadd.f32 %v1591_v57, %v1589_v52  ;;  %v1681_v19 = vmul.f32 %v1591_v57, %v1591_v57  ;;  %v1594_v13 = vpop.f32.mrb[22].mxu0  ;;  %v2792_v18 = vpop.f32.mrb[10].mxu1 }
 0x973   :  { %v1595_v32 = vadd.f32 %v1594_v13, %v3918_v21  ;;  %v1596_v28 = vpop.f32.mrb[23].mxu0  ;;  %v1665_v41 = vpop.f32.mrb[11].mxu1  ;;  %v4493_v36 = vadd.f32 %v2792_v18, %v3941_v44 }
 0x974   :  { %1675 = vadd.xlane.f32.xlu0 %v1674_v34  ;;  %v1684_v4 = vadd.f32 %v1681_v19, %v1680_v50  ;;  %v1597_v59 = vadd.f32 %v1596_v28, %v3921_v22  ;;  %v4490_v23 = vadd.f32 %v1665_v41, %v3941_v44 }
 0x975   :  { %v1682_v62 = vmul.f32 %v1595_v32, %v1595_v32  ;;  %v1723_v7 = vmul.f32 %v4493_v36, %v4493_v36 }
 0x976   :  { %1685 = vadd.xlane.f32.xlu1 %v1684_v4  ;;  %v1677_v43 = vadd.f32 %v1597_v59, %v1595_v32  ;;  %v1683_v39 = vmul.f32 %v1597_v59, %v1597_v59  ;;  %v1722_v45 = vmul.f32 %v4490_v23, %v4490_v23 }
 0x978   :  { %1678 = vadd.xlane.f32.xlu0 %v1677_v43  ;;  %v1687_v61 = vadd.f32 %v1683_v39, %v1682_v62 }
 0x97a   :  { %1688 = vadd.xlane.f32.xlu1 %v1687_v61 }
 0x97c   :  { %1718 = vadd.xlane.f32.xlu0 %v4490_v23 }
 0x97e   :  { %1724 = vadd.xlane.f32.xlu1 %v1722_v45 }
 0x980   :  { %1720 = vadd.xlane.f32.xlu0 %v4493_v36 }
 0x982   :  { %1726 = vadd.xlane.f32.xlu1 %v1723_v7 }
 0xa01   :  { %v1676_v35 = vpop.xlane.xlu0 %1675 }
 0xa02   :  { %v1690_v5 = vmul.f32 0.03125, %v1676_v35 }
 0xa03   :  { %v1686_v49 = vpop.xlane.xlu1 %1685 }
 0xa04   :  { %v1692_v2 = vmul.f32 0.03125, %v1686_v49  ;;  %v1694_v15 = vmul.f32 %v1690_v5, %v1690_v5  ;;  %v1698_v43 = vsub.f32 %v1589_v52, %v1690_v5  ;;  %v1699_v7 = vsub.f32 %v1591_v57, %v1690_v5 }
 0xa05   :  { %v1679_v48 = vpop.xlane.xlu0 %1678 }
 0xa06   :  { %v1696_v58 = vsub.f32 %v1692_v2, %v1694_v15  ;;  %v1691_v30 = vmul.f32 0.03125, %v1679_v48  ;;  %v2403_v48 = vld [vmem:[%s4720_s0 + $0xf0] sm:$0xff] }
 0xa07   :  { %v1689_v50 = vpop.xlane.xlu1 %1688 }
 0xa08   :  { %v1702_v54 = vadd.f32 1e-05, %v1696_v58  ;;  %v1693_v34 = vmul.f32 0.03125, %v1689_v50  ;;  %v1695_v19 = vmul.f32 %v1691_v30, %v1691_v30 }
 0xa09   :  { %v1719_v18 = vpop.xlane.xlu0 %1718 }
 0xa0a   :  { %3516 = vrsqrt.f32 %v1702_v54  ;;  %v1697_v13 = vsub.f32 %v1693_v34, %v1695_v19  ;;  %v1728_v41 = vmul.f32 0.0625, %v1719_v18  ;;  %v1700_v54 = vsub.f32 %v1595_v32, %v1691_v30  ;;  %v2406_v32 = vld [vmem:[%s4720_s0 + $0x108] sm:$0xff] }
 0xa0b   :  { %v1725_v4 = vpop.xlane.xlu1 %1724  ;;  %v1701_v18 = vsub.f32 %v1597_v59, %v1691_v30  ;;  %v2404_v59 = vld [vmem:[%s4720_s0 + $0xf8] sm:$0xff] }
 0xa0c   :  { %v1703_v28 = vadd.f32 1e-05, %v1697_v13  ;;  %v1732_v61 = vmul.f32 %v1728_v41, %v1728_v41  ;;  %v1730_v45 = vmul.f32 0.0625, %v1725_v4 }
 0xa0d   :  { %v1721_v62 = vpop.xlane.xlu0 %1720 }
 0xa0e   :  { %3518 = vrsqrt.f32 %v1703_v28  ;;  %v1729_v49 = vmul.f32 0.0625, %v1721_v62  ;;  %v1734_v50 = vsub.f32 %v1730_v45, %v1732_v61 }
 0xa0f   :  { %v1727_v2 = vpop.xlane.xlu1 %1726 }
 0xa10   :  { %v1733_v52 = vmul.f32 %v1729_v49, %v1729_v49  ;;  %v1731_v13 = vmul.f32 0.0625, %v1727_v2 }
 0xa12   :  { %v1735_v61 = vsub.f32 %v1731_v13, %v1733_v52 }
 0xa14   :  { %v3517_v39 = vpop.eup %3516  ;;  %v1739_v2 = vadd.f32 1e-05, %v1735_v61 }
 0xa15   :  { %v1706_v35 = vmul.f32 %v3517_v39, %v1698_v43  ;;  %v1707_v15 = vmul.f32 %v3517_v39, %v1699_v7  ;;  %v1738_v43 = vadd.f32 1e-05, %v1734_v50 }
 0xa17   :  { %v1710_v58 = vmul.f32 %v1706_v35, %v3968_v40  ;;  %v1711_v57 = vmul.f32 %v1707_v15, %v3976_v63 }
 0xa18   :  { %v3519_v34 = vpop.eup %3518 }
 0xa19   :  { %v1714_v19 = vadd.f32 %v1710_v58, %v3972_v53  ;;  %v1708_v28 = vmul.f32 %v3519_v34, %v1700_v54  ;;  %v1709_v4 = vmul.f32 %v3519_v34, %v1701_v18  ;;  %v1715_v7 = vadd.f32 %v1711_v57, %v3986_v27  ;;  %v2407_v54 = vld [vmem:[%s4720_s0 + $0x110] sm:$0xff] }
 0xa1a   :  { %v1736_v18 = vsub.f32 %v4490_v23, %v1728_v41  ;;  %v2405_v23 = vld [vmem:[%s4720_s0 + $0x100] sm:$0xff] }
 0xa1b   :  { %v1748_v5 = vadd.f32 %v2403_v48, %v1714_v19  ;;  %v1712_v62 = vmul.f32 %v1708_v28, %v3968_v40  ;;  %v1713_v30 = vmul.f32 %v1709_v4, %v3976_v63  ;;  %v1749_v58 = vadd.f32 %v2404_v59, %v1715_v7 }
 0xa1d   :  { %v2409_v39 = vmul.f32 -1.442695, %v1748_v5  ;;  %v1716_v45 = vadd.f32 %v1712_v62, %v3972_v53  ;;  %v1717_v48 = vadd.f32 %v1713_v30, %v3986_v27  ;;  %v2410_v50 = vmul.f32 -1.442695, %v1749_v58 }
 0xa1f   :  { %3520 = vpow2.f32 %v2409_v39  ;;  %v1750_v35 = vadd.f32 %v2406_v32, %v1716_v45  ;;  %v1751_v34 = vadd.f32 %v2407_v54, %v1717_v48 }
 0xa20   :  { %3522 = vrsqrt.f32 %v1738_v43  ;;  %v1737_v43 = vsub.f32 %v4493_v36, %v1729_v49 }
 0xa21   :  { %v2411_v15 = vmul.f32 -1.442695, %v1750_v35  ;;  %v2412_v28 = vmul.f32 -1.442695, %v1751_v34 }
 0xa23   :  { %3524 = vpow2.f32 %v2411_v15  ;;  %v2408_v15 = vld [vmem:[%s4720_s0 + $0x118] sm:$0xff] }
 0xa24   :  { %3526 = vrsqrt.f32 %v1739_v2 }
 0xa25   :  { %3528 = vpow2.f32 %v2410_v50 }
 0xa29   :  { %v3521_v19 = vpop.eup %3520 }
 0xa2a   :  { %v3523_v52 = vpop.eup %3522  ;;  %v1764_v13 = vadd.f32 1.0, %v3521_v19 }
 0xa2b   :  { %v1742_v57 = vmul.f32 %v3523_v52, %v1736_v18 }
 0xa2c   :  { %3530 = vrcp.f32 %v1764_v13 }
 0xa2d   :  { %v3525_v5 = vpop.eup %3524  ;;  %3532 = vpow2.f32 %v2412_v28  ;;  %v1744_v39 = vmul.f32 %v4316_v24, %v1742_v57 }
 0xa2e   :  { %v3527_v4 = vpop.eup %3526  ;;  %v1766_v62 = vadd.f32 1.0, %v3525_v5 }
 0xa2f   :  { %v1743_v32 = vmul.f32 %v3527_v4, %v1737_v43  ;;  %v3529_v61 = vpop.eup %3528  ;;  %v1746_v45 = vadd.f32 %v4322_v10, %v1744_v39 }
 0xa30   :  { %3534 = vrcp.f32 %v1766_v62  ;;  %v1765_v30 = vadd.f32 1.0, %v3529_v61 }
 0xa31   :  { %v1745_v41 = vmul.f32 %v4316_v24, %v1743_v32 }
 0xa33   :  { %v1747_v36 = vadd.f32 %v4322_v10, %v1745_v41 }
 0xa36   :  { %v3531_v7 = vpop.eup %3530 }
 0xa37   :  { %v1776_v59 = vmul.f32 %v3531_v7, %v1746_v45  ;;  %v3533_v2 = vpop.eup %3532 }
 0xa38   :  { %v1767_v48 = vadd.f32 1.0, %v3533_v2 }
 0xa39   :  { %v1778_v35 = vadd.f32 %v2405_v23, %v1776_v59 }
 0xa3a   :  { %v3535_v49 = vpop.eup %3534 }
 0xa3b   :  { %3536 = vtanh.f32 %v1778_v35  ;;  %v1777_v58 = vmul.f32 %v3535_v49, %v1747_v36 }
 0xa3c   :  { %3538 = vrcp.f32 %v1765_v30 }
 0xa3d   :  { %v1779_v54 = vadd.f32 %v2408_v15, %v1777_v58 }
 0xa3f   :  { %3540 = vtanh.f32 %v1779_v54 }
 0xa40   :  { %3542 = vrcp.f32 %v1767_v48 }
 0xa45   :  { %v3537_v50 = vpop.eup %3536 }
 0xa46   :  { %v1782_v24 = vsub.f32 %v4434_v16, %v3537_v50  ;;  %v3539_v34 = vpop.eup %3538 }
 0xa48   :  { %v1784_v19 = vmul.f32 %v3539_v34, %v1782_v24 }
 0xa49   :  { %v3541_v52 = vpop.eup %3540 }
 0xa4a   :  { %v4534_v13 = vadd.f32 %v3537_v50, %v1784_v19  ;;  %v1783_v10 = vsub.f32 %v4446_v31, %v3541_v52  ;;  %v3543_v18 = vpop.eup %3542 }
 0xa4c   :  { %2413 = vst [vmem:[%s4723_s7 + $0x50] sm:$0xff] %v4534_v13  ;;  %1863 = vmatmul.mubr.f32.vlgmr.msra.gmra.mrb[24].mxu0 %v4534_v13  ;;  %2825 = vmatprep.mubr.f32.mxu1 %v4534_v13  ;;  %v1785_v16 = vmul.f32 %v3543_v18, %v1783_v10 }
 0xa4d   :  { %1868 = vmatprep.mubr.f32.mxu0 %v3604_v3  ;;  %3314 = vmatpush1.bf16.msra.mxu0 %v3667_v8 }
 0xa4e   :  { %3316 = vmatprep.subr.bf16.mxu0 %v3669_v9  ;;  %v4546_v28 = vadd.f32 %v3541_v52, %v1785_v16  ;;  %v2415_v52 = vld [vmem:[%s4720_s0 + $0x120] sm:$0xff] }
 0xa50   :  { %2414 = vst [vmem:[%s4723_s7 + $0x58] sm:$0xff] %v4546_v28  ;;  %1869 = vmatmul.mubr.f32.gmra.mrb[26].mxu0 %v4546_v28  ;;  %2826 = vmatmul.mubr.f32.vlgmr.msra.gmra.mrb[12].mxu1 %v4546_v28 }
 0xa51   :  { %3318 = vmatpush1.bf16.msra.mxu0 %v3685_v14  ;;  %3346 = vmatpush3.bf16.msra.mxu1 %v3702_v20 }
 0xa52   :  { %3320 = vmatprep.subr.bf16.mxu0 %v3694_v17  ;;  %3348 = vmatprep.subr.bf16.mxu1 %v3717_v25 }
 0xa53   :  { %2138 = vmatprep.mubr.f32.mxu0 %v3604_v3 }
 0xa55   :  { %3322 = vmatpush1.bf16.msra.mxu0 %v3720_v26  ;;  %3350 = vmatpush3.bf16.msra.mxu1 %v3717_v25 }
 0xa56   :  { %3324 = vmatprep.subr.bf16.mxu0 %v3730_v29  ;;  %3352 = vmatprep.subr.bf16.mxu1 %v3742_v33 }
 0xa59   :  { %3326 = vmatpush1.bf16.msra.mxu0 %v3754_v37  ;;  %3354 = vmatpush3.bf16.msra.mxu1 %v3742_v33 }
 0xa5a   :  { %3328 = vmatprep.subr.bf16.mxu0 %v3758_v38  ;;  %3356 = vmatprep.subr.bf16.mxu1 %v3770_v42 }
 0xa5d   :  { %3330 = vmatpush1.bf16.msra.mxu0 %v3782_v46  ;;  %3358 = vmatpush3.bf16.msra.mxu1 %v3770_v42 }
 0xa5e   :  { %3332 = vmatprep.subr.bf16.mxu0 %v3786_v47  ;;  %3360 = vmatprep.subr.bf16.mxu1 %v3798_v51 }
 0xa61   :  { %3334 = vmatpush1.bf16.msra.mxu0 %v3810_v55  ;;  %3362 = vmatpush3.bf16.msra.mxu1 %v3798_v51 }
 0xa62   :  { %3336 = vmatprep.subr.bf16.mxu0 %v3814_v56  ;;  %3364 = vmatprep.subr.bf16.mxu1 %v3826_v60 }
 0xa65   :  { %3338 = vmatpush1.bf16.msra.mxu0 %v3838_v0  ;;  %3366 = vmatpush3.bf16.msra.mxu1 %v3826_v60 }
 0xa66   :  { %3340 = vmatprep.subr.bf16.mxu0 %v3842_v1  ;;  %3368 = vmatprep.subr.bf16.mxu1 %v3851_v6 }
 0xa69   :  { %3342 = vmatpush1.bf16.msra.mxu0 %v3860_v11  ;;  %3370 = vmatpush3.bf16.msra.mxu1 %v3851_v6 }
 0xa6a   :  { %3372 = vmatprep.subr.bf16.mxu1 %v3865_v12 }
 0xa6d   :  { %3374 = vmatpush3.bf16.msra.mxu1 %v3865_v12 }
 0xb1f   :  { %v1864_v8 = vpop.f32.mrb[24].mxu0 }
 0xb20   :  { %v1865_v9 = vadd.f32 %v1864_v8, %v3918_v21  ;;  %v1866_v14 = vpop.f32.mrb[25].mxu0 }
 0xb21   :  { %v1867_v17 = vadd.f32 %v1866_v14, %v3921_v22 }
 0xb22   :  { %v1956_v20 = vmul.f32 %v1865_v9, %v1865_v9 }
 0xb23   :  { %v1950_v25 = vadd.f32 %v1867_v17, %v1865_v9  ;;  %v1957_v26 = vmul.f32 %v1867_v17, %v1867_v17  ;;  %v1870_v29 = vpop.f32.mrb[26].mxu0  ;;  %v2827_v33 = vpop.f32.mrb[12].mxu1 }
 0xb24   :  { %v1871_v37 = vadd.f32 %v1870_v29, %v3918_v21  ;;  %v1872_v38 = vpop.f32.mrb[27].mxu0  ;;  %v1941_v42 = vpop.f32.mrb[13].mxu1  ;;  %v4591_v1 = vadd.f32 %v2827_v33, %v3941_v44 }
 0xb25   :  { %1951 = vadd.xlane.f32.xlu0 %v1950_v25  ;;  %v1960_v46 = vadd.f32 %v1957_v26, %v1956_v20  ;;  %v1873_v47 = vadd.f32 %v1872_v38, %v3921_v22  ;;  %v4588_v60 = vadd.f32 %v1941_v42, %v3941_v44 }
 0xb26   :  { %v1958_v51 = vmul.f32 %v1871_v37, %v1871_v37  ;;  %v1999_v11 = vmul.f32 %v4591_v1, %v4591_v1 }
 0xb27   :  { %1961 = vadd.xlane.f32.xlu1 %v1960_v46  ;;  %v1953_v55 = vadd.f32 %v1873_v47, %v1871_v37  ;;  %v1959_v56 = vmul.f32 %v1873_v47, %v1873_v47  ;;  %v1998_v6 = vmul.f32 %v4588_v60, %v4588_v60 }
 0xb29   :  { %1954 = vadd.xlane.f32.xlu0 %v1953_v55  ;;  %v1963_v0 = vadd.f32 %v1959_v56, %v1958_v51 }
 0xb2b   :  { %1964 = vadd.xlane.f32.xlu1 %v1963_v0 }
 0xb2d   :  { %1994 = vadd.xlane.f32.xlu0 %v4588_v60 }
 0xb2f   :  { %2000 = vadd.xlane.f32.xlu1 %v1998_v6 }
 0xb31   :  { %1996 = vadd.xlane.f32.xlu0 %v4591_v1 }
 0xb33   :  { %2002 = vadd.xlane.f32.xlu1 %v1999_v11 }
 0xbb2   :  { %v1952_v12 = vpop.xlane.xlu0 %1951 }
 0xbb3   :  { %v1966_v31 = vmul.f32 0.03125, %v1952_v12 }
 0xbb4   :  { %v1962_v57 = vpop.xlane.xlu1 %1961 }
 0xbb5   :  { %v1968_v5 = vmul.f32 0.03125, %v1962_v57  ;;  %v1970_v4 = vmul.f32 %v1966_v31, %v1966_v31  ;;  %v1974_v36 = vsub.f32 %v1865_v9, %v1966_v31  ;;  %v1975_v48 = vsub.f32 %v1867_v17, %v1966_v31  ;;  %v2419_v57 = vld [vmem:[%s4720_s0 + $0x140] sm:$0xff] }
 0xbb6   :  { %v1955_v43 = vpop.xlane.xlu0 %1954 }
 0xbb7   :  { %v1972_v62 = vsub.f32 %v1968_v5, %v1970_v4  ;;  %v1967_v39 = vmul.f32 0.03125, %v1955_v43 }
 0xbb8   :  { %v1965_v61 = vpop.xlane.xlu1 %1964 }
 0xbb9   :  { %v1978_v32 = vadd.f32 1e-05, %v1972_v62  ;;  %v1969_v45 = vmul.f32 0.03125, %v1965_v61  ;;  %v1971_v7 = vmul.f32 %v1967_v39, %v1967_v39  ;;  %v1976_v10 = vsub.f32 %v1871_v37, %v1967_v39  ;;  %v2418_v37 = vld [vmem:[%s4720_s0 + $0x138] sm:$0xff] }
 0xbba   :  { %v1995_v41 = vpop.xlane.xlu0 %1994  ;;  %v1977_v20 = vsub.f32 %v1873_v47, %v1967_v39  ;;  %v2416_v47 = vld [vmem:[%s4720_s0 + $0x128] sm:$0xff] }
 0xbbb   :  { %3544 = vrsqrt.f32 %v1978_v32  ;;  %v1973_v23 = vsub.f32 %v1969_v45, %v1971_v7  ;;  %v2004_v30 = vmul.f32 0.0625, %v1995_v41 }
 0xbbc   :  { %v2001_v35 = vpop.xlane.xlu1 %2000 }
 0xbbd   :  { %v1979_v59 = vadd.f32 1e-05, %v1973_v23  ;;  %v2008_v15 = vmul.f32 %v2004_v30, %v2004_v30  ;;  %v2006_v58 = vmul.f32 0.0625, %v2001_v35  ;;  %v2012_v32 = vsub.f32 %v4588_v60, %v2004_v30  ;;  %v4624_v35 = vld [vmem:[%s4721_s5] ss:$0 sm:$0xff] }
 0xbbe   :  { %v1997_v2 = vpop.xlane.xlu0 %1996  ;;  %v4630_v60 = vld [vmem:[%s4722_s6] ss:$0 sm:$0xff] }
 0xbbf   :  { %3546 = vrsqrt.f32 %v1979_v59  ;;  %v2005_v50 = vmul.f32 0.0625, %v1997_v2  ;;  %v2010_v18 = vsub.f32 %v2006_v58, %v2008_v15 }
 0xbc0   :  { %v2003_v24 = vpop.xlane.xlu1 %2002 }
 0xbc1   :  { %v2009_v9 = vmul.f32 %v2005_v50, %v2005_v50  ;;  %v2007_v14 = vmul.f32 0.0625, %v2003_v24  ;;  %v2014_v38 = vadd.f32 1e-05, %v2010_v18  ;;  %v2013_v59 = vsub.f32 %v4591_v1, %v2005_v50  ;;  %v2417_v1 = vld [vmem:[%s4720_s0 + $0x130] sm:$0xff] }
 0xbc3   :  { %v2011_v46 = vsub.f32 %v2007_v14, %v2009_v9 }
 0xbc5   :  { %v3545_v49 = vpop.eup %3544  ;;  %v2015_v6 = vadd.f32 1e-05, %v2011_v46 }
 0xbc6   :  { %v1982_v54 = vmul.f32 %v3545_v49, %v1974_v36  ;;  %v1983_v34 = vmul.f32 %v3545_v49, %v1975_v48 }
 0xbc8   :  { %v1986_v19 = vmul.f32 %v1982_v54, %v3968_v40  ;;  %v1987_v17 = vmul.f32 %v1983_v34, %v3976_v63 }
 0xbc9   :  { %v3547_v16 = vpop.eup %3546 }
 0xbca   :  { %v1990_v8 = vadd.f32 %v1986_v19, %v3972_v53  ;;  %v1984_v25 = vmul.f32 %v3547_v16, %v1976_v10  ;;  %v1985_v29 = vmul.f32 %v3547_v16, %v1977_v20  ;;  %v1991_v55 = vadd.f32 %v1987_v17, %v3986_v27 }
 0xbcc   :  { %v2024_v26 = vadd.f32 %v2415_v52, %v1990_v8  ;;  %v1988_v33 = vmul.f32 %v1984_v25, %v3968_v40  ;;  %v1989_v56 = vmul.f32 %v1985_v29, %v3976_v63  ;;  %v2025_v12 = vadd.f32 %v2416_v47, %v1991_v55  ;;  %v2420_v52 = vld [vmem:[%s4720_s0 + $0x148] sm:$0xff] }
 0xbce   :  { %v2421_v42 = vmul.f32 -1.442695, %v2024_v26  ;;  %v1992_v51 = vadd.f32 %v1988_v33, %v3972_v53  ;;  %v1993_v31 = vadd.f32 %v1989_v56, %v3986_v27  ;;  %v2422_v5 = vmul.f32 -1.442695, %v2025_v12 }
 0xbd0   :  { %3548 = vpow2.f32 %v2421_v42  ;;  %v2026_v0 = vadd.f32 %v2418_v37, %v1992_v51  ;;  %v2027_v4 = vadd.f32 %v2419_v57, %v1993_v31 }
 0xbd1   :  { %3550 = vrsqrt.f32 %v2014_v38 }
 0xbd2   :  { %v2423_v11 = vmul.f32 -1.442695, %v2026_v0  ;;  %v2424_v61 = vmul.f32 -1.442695, %v2027_v4 }
 0xbd4   :  { %3552 = vpow2.f32 %v2423_v11 }
 0xbd5   :  { %3554 = vrsqrt.f32 %v2015_v6 }
 0xbd6   :  { %3556 = vpow2.f32 %v2422_v5 }
 0xbda   :  { %v3549_v62 = vpop.eup %3548 }
 0xbdb   :  { %v3551_v43 = vpop.eup %3550  ;;  %v2040_v39 = vadd.f32 1.0, %v3549_v62 }
 0xbdc   :  { %v2018_v45 = vmul.f32 %v3551_v43, %v2012_v32 }
 0xbdd   :  { %3558 = vrcp.f32 %v2040_v39 }
 0xbde   :  { %v3553_v7 = vpop.eup %3552  ;;  %3560 = vpow2.f32 %v2424_v61  ;;  %v2020_v2 = vmul.f32 %v4624_v35, %v2018_v45 }
 0xbdf   :  { %v3555_v23 = vpop.eup %3554  ;;  %v2042_v41 = vadd.f32 1.0, %v3553_v7 }
 0xbe0   :  { %v2019_v36 = vmul.f32 %v3555_v23, %v2013_v59  ;;  %v3557_v49 = vpop.eup %3556  ;;  %v2022_v30 = vadd.f32 %v4630_v60, %v2020_v2 }
 0xbe1   :  { %3562 = vrcp.f32 %v2042_v41  ;;  %v2041_v54 = vadd.f32 1.0, %v3557_v49 }
 0xbe2   :  { %v2021_v58 = vmul.f32 %v4624_v35, %v2019_v36 }
 0xbe4   :  { %v2023_v34 = vadd.f32 %v4630_v60, %v2021_v58 }
 0xbe7   :  { %v3559_v15 = vpop.eup %3558 }
 0xbe8   :  { %v2052_v48 = vmul.f32 %v3559_v15, %v2022_v30  ;;  %v3561_v24 = vpop.eup %3560 }
 0xbe9   :  { %v2043_v18 = vadd.f32 1.0, %v3561_v24 }
 0xbea   :  { %v2054_v50 = vadd.f32 %v2417_v1, %v2052_v48 }
 0xbeb   :  { %v3563_v19 = vpop.eup %3562 }
 0xbec   :  { %3564 = vtanh.f32 %v2054_v50  ;;  %v2053_v10 = vmul.f32 %v3563_v19, %v2023_v34 }
 0xbed   :  { %3566 = vrcp.f32 %v2041_v54 }
 0xbee   :  { %v2055_v16 = vadd.f32 %v2420_v52, %v2053_v10 }
 0xbf0   :  { %3568 = vtanh.f32 %v2055_v16 }
 0xbf1   :  { %3570 = vrcp.f32 %v2043_v18 }
 0xbf6   :  { %v3565_v8 = vpop.eup %3564 }
 0xbf7   :  { %v2058_v9 = vsub.f32 %v4534_v13, %v3565_v8  ;;  %v3567_v14 = vpop.eup %3566 }
 0xbf9   :  { %v2060_v20 = vmul.f32 %v3567_v14, %v2058_v9 }
 0xbfa   :  { %v3569_v25 = vpop.eup %3568 }
 0xbfb   :  { %v4642_v17 = vadd.f32 %v3565_v8, %v2060_v20  ;;  %v2059_v26 = vsub.f32 %v4546_v28, %v3569_v25  ;;  %v3571_v29 = vpop.eup %3570  ;;  %v2427_v20 = vld [vmem:[%s4720_s0 + $0x150] sm:$0xff] }
 0xbfd   :  { %2425 = vst [vmem:[%s4723_s7 + $0x60] sm:$0xff] %v4642_v17  ;;  %2139 = vmatmul.mubr.f32.vlgmr.msra.gmra.mrb[28].mxu0 %v4642_v17  ;;  %2860 = vmatprep.mubr.f32.mxu1 %v4642_v17  ;;  %v2061_v13 = vmul.f32 %v3571_v29, %v2059_v26 }
 0xbfe   :  { %2144 = vmatprep.mubr.f32.mxu0 %v3604_v3 }
 0xbff   :  { %v4652_v33 = vadd.f32 %v3569_v25, %v2061_v13 }
 0xc01   :  { %2426 = vst [vmem:[%s4723_s7 + $0x68] sm:$0xff] %v4652_v33  ;;  %2145 = vmatmul.mubr.f32.gmra.mrb[30].mxu0 %v4652_v33  ;;  %2861 = vmatmul.mubr.f32.vlgmr.msra.gmra.mrb[14].mxu1 %v4652_v33 }
 0xcd0   :  { %v2140_v28 = vpop.f32.mrb[28].mxu0 }
 0xcd1   :  { %v2141_v38 = vadd.f32 %v2140_v28, %v3918_v21  ;;  %v2142_v42 = vpop.f32.mrb[29].mxu0 }
 0xcd2   :  { %v2143_v37 = vadd.f32 %v2142_v42, %v3921_v22 }
 0xcd3   :  { %v2232_v3 = vmul.f32 %v2141_v38, %v2141_v38 }
 0xcd4   :  { %v2226_v46 = vadd.f32 %v2143_v37, %v2141_v38  ;;  %v2233_v51 = vmul.f32 %v2143_v37, %v2143_v37  ;;  %v2146_v55 = vpop.f32.mrb[30].mxu0  ;;  %v2862_v47 = vpop.f32.mrb[14].mxu1 }
 0xcd5   :  { %v2147_v56 = vadd.f32 %v2146_v55, %v3918_v21  ;;  %v2148_v0 = vpop.f32.mrb[31].mxu0  ;;  %v2217_v6 = vpop.f32.mrb[15].mxu1  ;;  %v4671_v43 = vadd.f32 %v2862_v47, %v3941_v44 }
 0xcd6   :  { %2227 = vadd.xlane.f32.xlu0 %v2226_v46  ;;  %v2149_v11 = vadd.f32 %v2148_v0, %v3921_v22  ;;  %v2236_v12 = vadd.f32 %v2233_v51, %v2232_v3  ;;  %v4665_v4 = vadd.f32 %v2217_v6, %v3941_v44 }
 0xcd7   :  { %v2234_v57 = vmul.f32 %v2147_v56, %v2147_v56  ;;  %v2275_v22 = vmul.f32 %v4671_v43, %v4671_v43 }
 0xcd8   :  { %v2229_v31 = vadd.f32 %v2149_v11, %v2147_v56  ;;  %v2235_v5 = vmul.f32 %v2149_v11, %v2149_v11  ;;  %v2274_v21 = vmul.f32 %v4665_v4, %v4665_v4 }
 0xcda   :  { %2237 = vadd.xlane.f32.xlu0 %v2236_v12  ;;  %2230 = vadd.xlane.f32.xlu1 %v2229_v31  ;;  %v2239_v62 = vadd.f32 %v2235_v5, %v2234_v57 }
 0xcde   :  { %2270 = vadd.xlane.f32.xlu0 %v4665_v4  ;;  %2240 = vadd.xlane.f32.xlu1 %v2239_v62 }
 0xce2   :  { %2276 = vadd.xlane.f32.xlu0 %v2274_v21  ;;  %2272 = vadd.xlane.f32.xlu1 %v4671_v43 }
 0xce6   :  { %2278 = vadd.xlane.f32.xlu1 %v2275_v22 }
 0xd63   :  { %v2228_v39 = vpop.xlane.xlu0 %2227 }
 0xd64   :  { %v2242_v32 = vmul.f32 0.03125, %v2228_v39 }
 0xd66   :  { %v2246_v7 = vmul.f32 %v2242_v32, %v2242_v32  ;;  %v2250_v50 = vsub.f32 %v2141_v38, %v2242_v32  ;;  %v2251_v19 = vsub.f32 %v2143_v37, %v2242_v32 }
 0xd67   :  { %v2238_v61 = vpop.xlane.xlu0 %2237  ;;  %v2231_v45 = vpop.xlane.xlu1 %2230 }
 0xd68   :  { %v2244_v23 = vmul.f32 0.03125, %v2238_v61  ;;  %v2243_v41 = vmul.f32 0.03125, %v2231_v45 }
 0xd6a   :  { %v2248_v59 = vsub.f32 %v2244_v23, %v2246_v7  ;;  %v2247_v49 = vmul.f32 %v2243_v41, %v2243_v41  ;;  %v2252_v14 = vsub.f32 %v2147_v56, %v2243_v41  ;;  %v2253_v28 = vsub.f32 %v2149_v11, %v2243_v41  ;;  %v2430_v56 = vld [vmem:[%s4720_s0 + $0x168] sm:$0xff]  ;;  %v2428_v11 = vld [vmem:[%s4720_s0 + $0x158] sm:$0xff] }
 0xd6b   :  { %v2241_v36 = vpop.xlane.xlu1 %2240  ;;  %v2271_v15 = vpop.xlane.xlu0 %2270 }
 0xd6c   :  { %v2254_v2 = vadd.f32 1e-05, %v2248_v59  ;;  %v2245_v44 = vmul.f32 0.03125, %v2241_v36  ;;  %v2280_v54 = vmul.f32 0.0625, %v2271_v15 }
 0xd6e   :  { %3572 = vrsqrt.f32 %v2254_v2  ;;  %v2249_v30 = vsub.f32 %v2245_v44, %v2247_v49  ;;  %v2284_v10 = vmul.f32 %v2280_v54, %v2280_v54 }
 0xd6f   :  { %v2273_v58 = vpop.xlane.xlu1 %2272  ;;  %v2277_v48 = vpop.xlane.xlu0 %2276 }
 0xd70   :  { %v2255_v1 = vadd.f32 1e-05, %v2249_v30  ;;  %v2282_v34 = vmul.f32 0.0625, %v2277_v48  ;;  %v2281_v9 = vmul.f32 0.0625, %v2273_v58 }
 0xd72   :  { %3574 = vrsqrt.f32 %v2255_v1  ;;  %v2286_v25 = vsub.f32 %v2282_v34, %v2284_v10  ;;  %v2285_v46 = vmul.f32 %v2281_v9, %v2281_v9  ;;  %v2289_v2 = vsub.f32 %v4671_v43, %v2281_v9  ;;  %v2432_v34 = vld [vmem:[%s4720_s0 + $0x178] sm:$0xff] }
 0xd73   :  { %v2279_v18 = vpop.xlane.xlu1 %2278 }
 0xd74   :  { %v2283_v13 = vmul.f32 0.0625, %v2279_v18  ;;  %v2290_v55 = vadd.f32 1e-05, %v2286_v25 }
 0xd76   :  { %v2287_v0 = vsub.f32 %v2283_v13, %v2285_v46 }
 0xd78   :  { %v3573_v24 = vpop.eup %3572 }
 0xd79   :  { %v2258_v52 = vmul.f32 %v3573_v24, %v2250_v50  ;;  %v2259_v16 = vmul.f32 %v3573_v24, %v2251_v19 }
 0xd7b   :  { %v2262_v8 = vmul.f32 %v2258_v52, %v3968_v40  ;;  %v2263_v42 = vmul.f32 %v2259_v16, %v3976_v63 }
 0xd7c   :  { %v3575_v26 = vpop.eup %3574 }
 0xd7d   :  { %v2266_v29 = vadd.f32 %v2262_v8, %v3972_v53  ;;  %v2260_v38 = vmul.f32 %v3575_v26, %v2252_v14  ;;  %v2261_v3 = vmul.f32 %v3575_v26, %v2253_v28  ;;  %v2267_v12 = vadd.f32 %v2263_v42, %v3986_v27 }
 0xd7f   :  { %v2300_v37 = vadd.f32 %v2427_v20, %v2266_v29  ;;  %v2264_v51 = vmul.f32 %v2260_v38, %v3968_v40  ;;  %v2265_v31 = vmul.f32 %v2261_v3, %v3976_v63  ;;  %v2291_v40 = vadd.f32 1e-05, %v2287_v0 }
 0xd80   :  { %v2301_v62 = vadd.f32 %v2428_v11, %v2267_v12  ;;  %v2288_v63 = vsub.f32 %v4665_v4, %v2280_v54  ;;  %v2429_v4 = vld [vmem:[%s4720_s0 + $0x160] sm:$0xff] }
 0xd81   :  { %v2433_v47 = vmul.f32 -1.442695, %v2300_v37  ;;  %v2268_v6 = vadd.f32 %v2264_v51, %v3972_v53  ;;  %v2269_v21 = vadd.f32 %v2265_v31, %v3986_v27  ;;  %v2431_v53 = vld [vmem:[%s4720_s0 + $0x170] sm:$0xff] }
 0xd82   :  { %v2434_v22 = vmul.f32 -1.442695, %v2301_v62 }
 0xd83   :  { %3576 = vpow2.f32 %v2433_v47  ;;  %v2302_v57 = vadd.f32 %v2430_v56, %v2268_v6  ;;  %v2303_v39 = vadd.f32 %v2431_v53, %v2269_v21 }
 0xd84   :  { %3578 = vrsqrt.f32 %v2290_v55 }
 0xd85   :  { %v2435_v5 = vmul.f32 -1.442695, %v2302_v57  ;;  %v2436_v7 = vmul.f32 -1.442695, %v2303_v39 }
 0xd87   :  { %3580 = vpow2.f32 %v2435_v5 }
 0xd88   :  { %3582 = vrsqrt.f32 %v2291_v40 }
 0xd89   :  { %3584 = vpow2.f32 %v2434_v22 }
 0xd8d   :  { %v3577_v32 = vpop.eup %3576 }
 0xd8e   :  { %v3579_v61 = vpop.eup %3578  ;;  %v2316_v45 = vadd.f32 1.0, %v3577_v32 }
 0xd8f   :  { %v2294_v23 = vmul.f32 %v3579_v61, %v2288_v63 }
 0xd90   :  { %3586 = vrcp.f32 %v2316_v45 }
 0xd91   :  { %v3581_v41 = vpop.eup %3580  ;;  %3588 = vpow2.f32 %v2436_v7  ;;  %v2296_v36 = vmul.f32 %v4624_v35, %v2294_v23 }
 0xd92   :  { %v3583_v59 = vpop.eup %3582  ;;  %v2318_v27 = vadd.f32 1.0, %v3581_v41 }
 0xd93   :  { %v2295_v49 = vmul.f32 %v3583_v59, %v2289_v2  ;;  %v3585_v44 = vpop.eup %3584  ;;  %v2298_v30 = vadd.f32 %v4630_v60, %v2296_v36 }
 0xd94   :  { %3590 = vrcp.f32 %v2318_v27  ;;  %v2317_v48 = vadd.f32 1.0, %v3585_v44 }
 0xd95   :  { %v2297_v1 = vmul.f32 %v4624_v35, %v2295_v49 }
 0xd97   :  { %v2299_v43 = vadd.f32 %v4630_v60, %v2297_v1 }
 0xd9a   :  { %v3587_v15 = vpop.eup %3586 }
 0xd9b   :  { %v2328_v58 = vmul.f32 %v3587_v15, %v2298_v30  ;;  %v3589_v50 = vpop.eup %3588 }
 0xd9c   :  { %v2319_v52 = vadd.f32 1.0, %v3589_v50 }
 0xd9d   :  { %v2330_v54 = vadd.f32 %v2429_v4, %v2328_v58 }
 0xd9e   :  { %v3591_v24 = vpop.eup %3590 }
 0xd9f   :  { %3592 = vtanh.f32 %v2330_v54  ;;  %v2329_v19 = vmul.f32 %v3591_v24, %v2299_v43 }
 0xda0   :  { %3594 = vrcp.f32 %v2317_v48 }
 0xda1   :  { %v2331_v10 = vadd.f32 %v2432_v34, %v2329_v19 }
 0xda3   :  { %3596 = vtanh.f32 %v2331_v10 }
 0xda4   :  { %3598 = vrcp.f32 %v2319_v52 }
 0xda9   :  { %v3593_v18 = vpop.eup %3592 }
 0xdaa   :  { %v2334_v35 = vsub.f32 %v4642_v17, %v3593_v18  ;;  %v3595_v16 = vpop.eup %3594 }
 0xdac   :  { %v2336_v8 = vmul.f32 %v3595_v16, %v2334_v35 }
 0xdad   :  { %v3597_v9 = vpop.eup %3596 }
 0xdae   :  { %v2338_v14 = vadd.f32 %v3593_v18, %v2336_v8  ;;  %v2335_v60 = vsub.f32 %v4652_v33, %v3597_v9  ;;  %v3599_v20 = vpop.eup %3598 }
 0xdb0   :  { %2437 = vst [vmem:[%s4723_s7 + $0x70] sm:$0xff] %v2338_v14  ;;  %v2337_v25 = vmul.f32 %v3599_v20, %v2335_v60 }
 0xdb2   :  { %v2339_v26 = vadd.f32 %v3597_v9, %v2337_v25 }
 0xdb4   :  { %2438 = vst [vmem:[%s4723_s7 + $0x78] sm:$0xff] %v2339_v26 }

</bundles_post_ra>
